<compile_context>
chip_gen: v7x
topology: tpu7x:2x2x1
jax: 0.10.0
libtpu: 0.0.40
codegen_flags: <defaults>
</compile_context>

<pallas_src>
import functools

import jax
import jax.numpy as jnp
from jax.experimental import pallas as pl
from jax.experimental.pallas import tpu as pltpu

EPS = 1e-5


def basic_block_kernel(x_ref, w1_ref, b1_ref, w2_ref, b2_ref,
                       out_ref, pad_ref, col_ref):
    """One batch image per grid step, NHWC layout.

    x_ref   : (1, H, W, C)  f32 input tile
    w1_ref  : (9*C, C)      BN-folded conv1 weights (row = kh*3*C + kw*C + cin)
    b1_ref  : (1, C)        f32 folded BN1 bias
    w2_ref  : (9*C, C)      BN-folded conv2 weights
    b2_ref  : (1, C)        f32 folded BN2 bias
    out_ref : (1, H, W, C)  f32 output tile
    pad_ref : (H+2, W+2, C) f32 VMEM scratch (spatially padded activation)
    col_ref : (H*W, 9*C)    VMEM scratch (im2col), compute dtype
    """
    _, H, W, C = x_ref.shape
    Hp, Wp = H + 2, W + 2
    M = H * W

    # Zero only the 1-pixel halo; the interior is fully overwritten below.
    zrow = jnp.zeros((1, Wp, C), pad_ref.dtype)
    pad_ref[0:1, :, :] = zrow
    pad_ref[Hp - 1:Hp, :, :] = zrow
    zcol = jnp.zeros((Hp, 1, C), pad_ref.dtype)
    pad_ref[:, 0:1, :] = zcol
    pad_ref[:, Wp - 1:Wp, :] = zcol

    def im2col():
        # Gather the 9 shifted taps into an (M, 9C) matrix so each conv is a
        # single MXU matmul with contraction dimension 9*C.
        for kh in range(3):
            for kw in range(3):
                t = kh * 3 + kw
                col_ref[:, t * C:(t + 1) * C] = (
                    pad_ref[kh:kh + H, kw:kw + W, :]
                    .reshape(M, C).astype(col_ref.dtype))

    # conv1 (+ folded BN1) -> relu
    pad_ref[1:H + 1, 1:W + 1, :] = x_ref[0]
    im2col()
    out1 = jnp.dot(col_ref[...], w1_ref[...],
                   preferred_element_type=jnp.float32)
    out1 = jnp.maximum(out1 + b1_ref[...], 0.0)

    # conv2 (+ folded BN2)
    pad_ref[1:H + 1, 1:W + 1, :] = out1.reshape(H, W, C)
    im2col()
    out2 = jnp.dot(col_ref[...], w2_ref[...],
                   preferred_element_type=jnp.float32)
    out2 = out2 + b2_ref[...]

    # residual add on matching dense layouts -> relu
    res = out2.reshape(1, H, W, C) + x_ref[...]
    out_ref[...] = jnp.maximum(res, 0.0).astype(out_ref.dtype)


def basic_block_pallas(x_nchw, params, *, compute_dtype=jnp.float32):
    """x_nchw: (N, C, H, W) float32. Returns (N, C, H, W) float32."""
    w1, w2, bn1, bn2 = params["w1"], params["w2"], params["bn1"], params["bn2"]
    N, C, H, W = x_nchw.shape

    # NCHW -> NHWC (channels-last: C maps to the TPU lane dim).
    x_nhwc = jnp.transpose(x_nchw, (0, 2, 3, 1)).astype(jnp.float32)

    def fold(w_oihw, bn):
        # Fold eval-mode BN into the conv:  w' = w * scale[cout],
        # bias = beta - mean * scale,  scale = gamma * rsqrt(var + eps).
        g, b, m, v = [p.astype(jnp.float32) for p in bn]
        scale = g * jax.lax.rsqrt(v + EPS)                       # (C,)
        w_hwio = jnp.transpose(w_oihw.astype(jnp.float32), (2, 3, 1, 0))
        wk = (w_hwio * scale).reshape(9 * C, C).astype(compute_dtype)
        bias = (b - m * scale).reshape(1, C)
        return wk, bias

    w1k, b1 = fold(w1, bn1)
    w2k, b2 = fold(w2, bn2)

    const2d = lambda n: (0, 0)                 # resident weights / biases
    out_nhwc = pl.pallas_call(
        basic_block_kernel,
        out_shape=jax.ShapeDtypeStruct((N, H, W, C), jnp.float32),
        grid_spec=pltpu.PrefetchScalarGridSpec(
            num_scalar_prefetch=0,
            grid=(N,),
            in_specs=[
                pl.BlockSpec((1, H, W, C), lambda n: (n, 0, 0, 0)),
                pl.BlockSpec((9 * C, C), const2d),
                pl.BlockSpec((1, C), const2d),
                pl.BlockSpec((9 * C, C), const2d),
                pl.BlockSpec((1, C), const2d),
            ],
            out_specs=pl.BlockSpec((1, H, W, C), lambda n: (n, 0, 0, 0)),
            scratch_shapes=[
                pltpu.VMEM((H + 2, W + 2, C), jnp.float32),      # padded act
                pltpu.VMEM((H * W, 9 * C), compute_dtype),       # im2col
            ]),
        compiler_params=pltpu.CompilerParams(
            dimension_semantics=("parallel",),
            vmem_limit_bytes=32 * 1024 * 1024),
    )(x_nhwc, w1k, b1, w2k, b2)

    return jnp.transpose(out_nhwc, (0, 3, 1, 2))


def basic_block_reference(x_nchw, params):
    """Pure-JAX (XLA) reference for correctness checking."""
    w1, w2, bn1, bn2 = params["w1"], params["w2"], params["bn1"], params["bn2"]
    x = jnp.transpose(x_nchw, (0, 2, 3, 1)).astype(jnp.float32)  # NHWC

    def conv(x, w_oihw):
        w_hwio = jnp.transpose(w_oihw, (2, 3, 1, 0))
        return jax.lax.conv_general_dilated(
            x, w_hwio, window_strides=(1, 1), padding="SAME",
            dimension_numbers=("NHWC", "HWIO", "NHWC"))

    def bn(x, p):
        g, b, m, v = [q.reshape(1, 1, 1, -1) for q in p]
        return (x - m) * jax.lax.rsqrt(v + EPS) * g + b

    out = jax.nn.relu(bn(conv(x, w1), bn1))
    out = bn(conv(out, w2), bn2)
    out = jax.nn.relu(out + x)
    return jnp.transpose(out, (0, 3, 1, 2))


def make_params(key, planes):
    k1, k2, k3, k4, k5, k6 = jax.random.split(key, 6)
    fan_in = planes * 9
    std = (2.0 / fan_in) ** 0.5
    w1 = jax.random.normal(k1, (planes, planes, 3, 3), jnp.float32) * std
    w2 = jax.random.normal(k2, (planes, planes, 3, 3), jnp.float32) * std
    # BN params (gamma, beta, running_mean, running_var) — deterministic,
    # non-trivial values so the BN math is actually exercised.
    bn1 = (jax.random.uniform(k3, (planes,), minval=0.5, maxval=1.5),
           jax.random.normal(k4, (planes,)) * 0.1,
           jax.random.normal(k5, (planes,)) * 0.1,
           jax.random.uniform(k6, (planes,), minval=0.5, maxval=1.5))
    k7, k8, k9, k10 = jax.random.split(k6, 4)
    bn2 = (jax.random.uniform(k7, (planes,), minval=0.5, maxval=1.5),
           jax.random.normal(k8, (planes,)) * 0.1,
           jax.random.normal(k9, (planes,)) * 0.1,
           jax.random.uniform(k10, (planes,), minval=0.5, maxval=1.5))
    return {"w1": w1, "w2": w2, "bn1": bn1, "bn2": bn2}


if __name__ == "__main__":
    key = jax.random.PRNGKey(0)
    kx, kp = jax.random.split(key)

    N, C, H, W = 2, 4, 16, 16      # inplanes == planes, stride=1, no downsample
    x = jax.random.normal(kx, (N, C, H, W), jnp.float32)
    params = make_params(kp, C)

    ref = jax.block_until_ready(basic_block_reference(x, params))

    # f32 compute path: tight correctness check.
    fwd_f32 = jax.jit(functools.partial(basic_block_pallas,
                                        compute_dtype=jnp.float32))
    out = jax.block_until_ready(fwd_f32(x, params))
    assert out.shape == (N, C, H, W)
    assert jnp.max(jnp.abs(out - ref)) < 5e-4, "f32 kernel mismatch vs reference"

    # bf16 MXU path (weights + im2col in bf16, f32 accumulation): loose check
    # sized for the expected bf16 quantization error.
    fwd_bf16 = jax.jit(functools.partial(basic_block_pallas,
                                         compute_dtype=jnp.bfloat16))
    out_bf16 = jax.block_until_ready(fwd_bf16(x, params))
    assert jnp.allclose(out_bf16, ref, rtol=1e-1, atol=1e-1), \
        "bf16 kernel mismatch vs reference"

    print("KERNEL_OK")
</pallas_src>

<mosaic_0001>
module attributes {stable_mosaic.version = 11 : i64} {
  func.func @basic_block_kernel(%arg0: i32, %arg1: memref<1x16x16x4xf32, #tpu.memory_space<vmem>>, %arg2: memref<36x4xf32, #tpu.memory_space<vmem>>, %arg3: memref<1x4xf32, #tpu.memory_space<vmem>>, %arg4: memref<36x4xf32, #tpu.memory_space<vmem>>, %arg5: memref<1x4xf32, #tpu.memory_space<vmem>>, %arg6: memref<1x16x16x4xf32, #tpu.memory_space<vmem>>, %arg7: memref<18x18x4xf32, #tpu.memory_space<vmem>>, %arg8: memref<256x36xf32, #tpu.memory_space<vmem>>) attributes {dimension_semantics = [#tpu.dimension_semantics<parallel>], iteration_bounds = array<i64: 2>, scalar_prefetch = 0 : i64, scratch_operands = 2 : i64, tpu.core_type = #tpu.core_type<tc>, window_params = [{transform_indices = @transform_0, window_bounds = array<i64: 1, 16, 16, 4>}, {pipeline_mode = #tpu.pipeline_mode<synchronous>, transform_indices = @transform_1, window_bounds = array<i64: 36, 4>}, {pipeline_mode = #tpu.pipeline_mode<synchronous>, transform_indices = @transform_2, window_bounds = array<i64: 1, 4>}, {pipeline_mode = #tpu.pipeline_mode<synchronous>, transform_indices = @transform_3, window_bounds = array<i64: 36, 4>}, {pipeline_mode = #tpu.pipeline_mode<synchronous>, transform_indices = @transform_4, window_bounds = array<i64: 1, 4>}, {transform_indices = @transform_5, window_bounds = array<i64: 1, 16, 16, 4>}]} {
    %cst = arith.constant 0.000000e+00 : f32
    %0 = vector.broadcast %cst : f32 to vector<1x18x4xf32>
    %c0 = arith.constant 0 : index
    %c0_0 = arith.constant 0 : index
    %c0_1 = arith.constant 0 : index
    %1 = vector.load %arg7[%c0, %c0_0, %c0_1] : memref<18x18x4xf32, #tpu.memory_space<vmem>>, vector<1x18x4xf32>
    tpu.vector_store %arg7[%c0, %c0_0, %c0_1], %0 {strides = array<i32>} : memref<18x18x4xf32, #tpu.memory_space<vmem>>, vector<1x18x4xf32>,
    %c17 = arith.constant 17 : index
    %c0_2 = arith.constant 0 : index
    %c0_3 = arith.constant 0 : index
    %2 = vector.load %arg7[%c17, %c0_2, %c0_3] : memref<18x18x4xf32, #tpu.memory_space<vmem>>, vector<1x18x4xf32>
    tpu.vector_store %arg7[%c17, %c0_2, %c0_3], %0 {strides = array<i32>} : memref<18x18x4xf32, #tpu.memory_space<vmem>>, vector<1x18x4xf32>,
    %cst_4 = arith.constant 0.000000e+00 : f32
    %3 = vector.broadcast %cst_4 : f32 to vector<18x1x4xf32>
    %c0_5 = arith.constant 0 : index
    %c0_6 = arith.constant 0 : index
    %c0_7 = arith.constant 0 : index
    %4 = vector.load %arg7[%c0_5, %c0_6, %c0_7] : memref<18x18x4xf32, #tpu.memory_space<vmem>>, vector<18x1x4xf32>
    tpu.vector_store %arg7[%c0_5, %c0_6, %c0_7], %3 {strides = array<i32>} : memref<18x18x4xf32, #tpu.memory_space<vmem>>, vector<18x1x4xf32>,
    %c0_8 = arith.constant 0 : index
    %c17_9 = arith.constant 17 : index
    %c0_10 = arith.constant 0 : index
    %5 = vector.load %arg7[%c0_8, %c17_9, %c0_10] : memref<18x18x4xf32, #tpu.memory_space<vmem>>, vector<18x1x4xf32>
    tpu.vector_store %arg7[%c0_8, %c17_9, %c0_10], %3 {strides = array<i32>} : memref<18x18x4xf32, #tpu.memory_space<vmem>>, vector<18x1x4xf32>,
    %c0_11 = arith.constant 0 : index
    %c0_12 = arith.constant 0 : index
    %c0_13 = arith.constant 0 : index
    %c0_14 = arith.constant 0 : index
    %6 = vector.load %arg1[%c0_11, %c0_12, %c0_13, %c0_14] : memref<1x16x16x4xf32, #tpu.memory_space<vmem>>, vector<1x16x16x4xf32>
    %7 = vector.shape_cast %6 : vector<1x16x16x4xf32> to vector<16x16x4xf32>
    %c1 = arith.constant 1 : index
    %c1_15 = arith.constant 1 : index
    %c0_16 = arith.constant 0 : index
    %8 = vector.load %arg7[%c1, %c1_15, %c0_16] : memref<18x18x4xf32, #tpu.memory_space<vmem>>, vector<16x16x4xf32>
    tpu.vector_store %arg7[%c1, %c1_15, %c0_16], %7 {strides = array<i32>} : memref<18x18x4xf32, #tpu.memory_space<vmem>>, vector<16x16x4xf32>,
    %c0_17 = arith.constant 0 : index
    %c0_18 = arith.constant 0 : index
    %c0_19 = arith.constant 0 : index
    %9 = vector.load %arg7[%c0_17, %c0_18, %c0_19] : memref<18x18x4xf32, #tpu.memory_space<vmem>>, vector<16x16x4xf32>
    %10 = vector.shape_cast %9 : vector<16x16x4xf32> to vector<256x4xf32>
    %c0_20 = arith.constant 0 : index
    %c0_21 = arith.constant 0 : index
    %11 = vector.load %arg8[%c0_20, %c0_21] : memref<256x36xf32, #tpu.memory_space<vmem>>, vector<256x4xf32>
    tpu.vector_store %arg8[%c0_20, %c0_21], %10 {strides = array<i32>} : memref<256x36xf32, #tpu.memory_space<vmem>>, vector<256x4xf32>,
    %c0_22 = arith.constant 0 : index
    %c1_23 = arith.constant 1 : index
    %c0_24 = arith.constant 0 : index
    %12 = vector.load %arg7[%c0_22, %c1_23, %c0_24] : memref<18x18x4xf32, #tpu.memory_space<vmem>>, vector<16x16x4xf32>
    %13 = vector.shape_cast %12 : vector<16x16x4xf32> to vector<256x4xf32>
    %c0_25 = arith.constant 0 : index
    %c4 = arith.constant 4 : index
    %14 = vector.load %arg8[%c0_25, %c4] : memref<256x36xf32, #tpu.memory_space<vmem>>, vector<256x4xf32>
    tpu.vector_store %arg8[%c0_25, %c4], %13 {strides = array<i32>} : memref<256x36xf32, #tpu.memory_space<vmem>>, vector<256x4xf32>,
    %c0_26 = arith.constant 0 : index
    %c2 = arith.constant 2 : index
    %c0_27 = arith.constant 0 : index
    %15 = vector.load %arg7[%c0_26, %c2, %c0_27] : memref<18x18x4xf32, #tpu.memory_space<vmem>>, vector<16x16x4xf32>
    %16 = vector.shape_cast %15 : vector<16x16x4xf32> to vector<256x4xf32>
    %c0_28 = arith.constant 0 : index
    %c8 = arith.constant 8 : index
    %17 = vector.load %arg8[%c0_28, %c8] : memref<256x36xf32, #tpu.memory_space<vmem>>, vector<256x4xf32>
    tpu.vector_store %arg8[%c0_28, %c8], %16 {strides = array<i32>} : memref<256x36xf32, #tpu.memory_space<vmem>>, vector<256x4xf32>,
    %c1_29 = arith.constant 1 : index
    %c0_30 = arith.constant 0 : index
    %c0_31 = arith.constant 0 : index
    %18 = vector.load %arg7[%c1_29, %c0_30, %c0_31] : memref<18x18x4xf32, #tpu.memory_space<vmem>>, vector<16x16x4xf32>
    %19 = vector.shape_cast %18 : vector<16x16x4xf32> to vector<256x4xf32>
    %c0_32 = arith.constant 0 : index
    %c12 = arith.constant 12 : index
    %20 = vector.load %arg8[%c0_32, %c12] : memref<256x36xf32, #tpu.memory_space<vmem>>, vector<256x4xf32>
    tpu.vector_store %arg8[%c0_32, %c12], %19 {strides = array<i32>} : memref<256x36xf32, #tpu.memory_space<vmem>>, vector<256x4xf32>,
    %c1_33 = arith.constant 1 : index
    %c1_34 = arith.constant 1 : index
    %c0_35 = arith.constant 0 : index
    %21 = vector.load %arg7[%c1_33, %c1_34, %c0_35] : memref<18x18x4xf32, #tpu.memory_space<vmem>>, vector<16x16x4xf32>
    %22 = vector.shape_cast %21 : vector<16x16x4xf32> to vector<256x4xf32>
    %c0_36 = arith.constant 0 : index
    %c16 = arith.constant 16 : index
    %23 = vector.load %arg8[%c0_36, %c16] : memref<256x36xf32, #tpu.memory_space<vmem>>, vector<256x4xf32>
    tpu.vector_store %arg8[%c0_36, %c16], %22 {strides = array<i32>} : memref<256x36xf32, #tpu.memory_space<vmem>>, vector<256x4xf32>,
    %c1_37 = arith.constant 1 : index
    %c2_38 = arith.constant 2 : index
    %c0_39 = arith.constant 0 : index
    %24 = vector.load %arg7[%c1_37, %c2_38, %c0_39] : memref<18x18x4xf32, #tpu.memory_space<vmem>>, vector<16x16x4xf32>
    %25 = vector.shape_cast %24 : vector<16x16x4xf32> to vector<256x4xf32>
    %c0_40 = arith.constant 0 : index
    %c20 = arith.constant 20 : index
    %26 = vector.load %arg8[%c0_40, %c20] : memref<256x36xf32, #tpu.memory_space<vmem>>, vector<256x4xf32>
    tpu.vector_store %arg8[%c0_40, %c20], %25 {strides = array<i32>} : memref<256x36xf32, #tpu.memory_space<vmem>>, vector<256x4xf32>,
    %c2_41 = arith.constant 2 : index
    %c0_42 = arith.constant 0 : index
    %c0_43 = arith.constant 0 : index
    %27 = vector.load %arg7[%c2_41, %c0_42, %c0_43] : memref<18x18x4xf32, #tpu.memory_space<vmem>>, vector<16x16x4xf32>
    %28 = vector.shape_cast %27 : vector<16x16x4xf32> to vector<256x4xf32>
    %c0_44 = arith.constant 0 : index
    %c24 = arith.constant 24 : index
    %29 = vector.load %arg8[%c0_44, %c24] : memref<256x36xf32, #tpu.memory_space<vmem>>, vector<256x4xf32>
    tpu.vector_store %arg8[%c0_44, %c24], %28 {strides = array<i32>} : memref<256x36xf32, #tpu.memory_space<vmem>>, vector<256x4xf32>,
    %c2_45 = arith.constant 2 : index
    %c1_46 = arith.constant 1 : index
    %c0_47 = arith.constant 0 : index
    %30 = vector.load %arg7[%c2_45, %c1_46, %c0_47] : memref<18x18x4xf32, #tpu.memory_space<vmem>>, vector<16x16x4xf32>
    %31 = vector.shape_cast %30 : vector<16x16x4xf32> to vector<256x4xf32>
    %c0_48 = arith.constant 0 : index
    %c28 = arith.constant 28 : index
    %32 = vector.load %arg8[%c0_48, %c28] : memref<256x36xf32, #tpu.memory_space<vmem>>, vector<256x4xf32>
    tpu.vector_store %arg8[%c0_48, %c28], %31 {strides = array<i32>} : memref<256x36xf32, #tpu.memory_space<vmem>>, vector<256x4xf32>,
    %c2_49 = arith.constant 2 : index
    %c2_50 = arith.constant 2 : index
    %c0_51 = arith.constant 0 : index
    %33 = vector.load %arg7[%c2_49, %c2_50, %c0_51] : memref<18x18x4xf32, #tpu.memory_space<vmem>>, vector<16x16x4xf32>
    %34 = vector.shape_cast %33 : vector<16x16x4xf32> to vector<256x4xf32>
    %c0_52 = arith.constant 0 : index
    %c32 = arith.constant 32 : index
    %35 = vector.load %arg8[%c0_52, %c32] : memref<256x36xf32, #tpu.memory_space<vmem>>, vector<256x4xf32>
    tpu.vector_store %arg8[%c0_52, %c32], %34 {strides = array<i32>} : memref<256x36xf32, #tpu.memory_space<vmem>>, vector<256x4xf32>,
    %c0_53 = arith.constant 0 : index
    %c0_54 = arith.constant 0 : index
    %36 = vector.load %arg8[%c0_53, %c0_54] : memref<256x36xf32, #tpu.memory_space<vmem>>, vector<256x36xf32>
    %c0_55 = arith.constant 0 : index
    %c0_56 = arith.constant 0 : index
    %37 = vector.load %arg2[%c0_55, %c0_56] : memref<36x4xf32, #tpu.memory_space<vmem>>, vector<36x4xf32>
    %cst_57 = arith.constant dense<0.000000e+00> : vector<256x4xf32>
    %38 = tpu.matmul %36, %37, %cst_57 {dimension_numbers = #tpu.dot_dimension_numbers<[1], [0], [0], [1], [0, 0, 1, 1], [], []>} : vector<256x36xf32>, vector<36x4xf32>, vector<256x4xf32> -> vector<256x4xf32>
    %c0_58 = arith.constant 0 : index
    %c0_59 = arith.constant 0 : index
    %39 = vector.load %arg3[%c0_58, %c0_59] : memref<1x4xf32, #tpu.memory_space<vmem>>, vector<1x4xf32>
    %40 = vector.broadcast %39 : vector<1x4xf32> to vector<256x4xf32>
    %41 = arith.addf %38, %40 : vector<256x4xf32>
    %cst_60 = arith.constant 0.000000e+00 : f32
    %42 = vector.broadcast %cst_60 : f32 to vector<256x4xf32>
    %43 = arith.maximumf %41, %42 : vector<256x4xf32>
    %44 = vector.shape_cast %43 : vector<256x4xf32> to vector<16x16x4xf32>
    %c1_61 = arith.constant 1 : index
    %c1_62 = arith.constant 1 : index
    %c0_63 = arith.constant 0 : index
    %45 = vector.load %arg7[%c1_61, %c1_62, %c0_63] : memref<18x18x4xf32, #tpu.memory_space<vmem>>, vector<16x16x4xf32>
    tpu.vector_store %arg7[%c1_61, %c1_62, %c0_63], %44 {strides = array<i32>} : memref<18x18x4xf32, #tpu.memory_space<vmem>>, vector<16x16x4xf32>,
    %c0_64 = arith.constant 0 : index
    %c0_65 = arith.constant 0 : index
    %c0_66 = arith.constant 0 : index
    %46 = vector.load %arg7[%c0_64, %c0_65, %c0_66] : memref<18x18x4xf32, #tpu.memory_space<vmem>>, vector<16x16x4xf32>
    %47 = vector.shape_cast %46 : vector<16x16x4xf32> to vector<256x4xf32>
    %c0_67 = arith.constant 0 : index
    %c0_68 = arith.constant 0 : index
    %48 = vector.load %arg8[%c0_67, %c0_68] : memref<256x36xf32, #tpu.memory_space<vmem>>, vector<256x4xf32>
    tpu.vector_store %arg8[%c0_67, %c0_68], %47 {strides = array<i32>} : memref<256x36xf32, #tpu.memory_space<vmem>>, vector<256x4xf32>,
    %c0_69 = arith.constant 0 : index
    %c1_70 = arith.constant 1 : index
    %c0_71 = arith.constant 0 : index
    %49 = vector.load %arg7[%c0_69, %c1_70, %c0_71] : memref<18x18x4xf32, #tpu.memory_space<vmem>>, vector<16x16x4xf32>
    %50 = vector.shape_cast %49 : vector<16x16x4xf32> to vector<256x4xf32>
    %c0_72 = arith.constant 0 : index
    %c4_73 = arith.constant 4 : index
    %51 = vector.load %arg8[%c0_72, %c4_73] : memref<256x36xf32, #tpu.memory_space<vmem>>, vector<256x4xf32>
    tpu.vector_store %arg8[%c0_72, %c4_73], %50 {strides = array<i32>} : memref<256x36xf32, #tpu.memory_space<vmem>>, vector<256x4xf32>,
    %c0_74 = arith.constant 0 : index
    %c2_75 = arith.constant 2 : index
    %c0_76 = arith.constant 0 : index
    %52 = vector.load %arg7[%c0_74, %c2_75, %c0_76] : memref<18x18x4xf32, #tpu.memory_space<vmem>>, vector<16x16x4xf32>
    %53 = vector.shape_cast %52 : vector<16x16x4xf32> to vector<256x4xf32>
    %c0_77 = arith.constant 0 : index
    %c8_78 = arith.constant 8 : index
    %54 = vector.load %arg8[%c0_77, %c8_78] : memref<256x36xf32, #tpu.memory_space<vmem>>, vector<256x4xf32>
    tpu.vector_store %arg8[%c0_77, %c8_78], %53 {strides = array<i32>} : memref<256x36xf32, #tpu.memory_space<vmem>>, vector<256x4xf32>,
    %c1_79 = arith.constant 1 : index
    %c0_80 = arith.constant 0 : index
    %c0_81 = arith.constant 0 : index
    %55 = vector.load %arg7[%c1_79, %c0_80, %c0_81] : memref<18x18x4xf32, #tpu.memory_space<vmem>>, vector<16x16x4xf32>
    %56 = vector.shape_cast %55 : vector<16x16x4xf32> to vector<256x4xf32>
    %c0_82 = arith.constant 0 : index
    %c12_83 = arith.constant 12 : index
    %57 = vector.load %arg8[%c0_82, %c12_83] : memref<256x36xf32, #tpu.memory_space<vmem>>, vector<256x4xf32>
    tpu.vector_store %arg8[%c0_82, %c12_83], %56 {strides = array<i32>} : memref<256x36xf32, #tpu.memory_space<vmem>>, vector<256x4xf32>,
    %c1_84 = arith.constant 1 : index
    %c1_85 = arith.constant 1 : index
    %c0_86 = arith.constant 0 : index
    %58 = vector.load %arg7[%c1_84, %c1_85, %c0_86] : memref<18x18x4xf32, #tpu.memory_space<vmem>>, vector<16x16x4xf32>
    %59 = vector.shape_cast %58 : vector<16x16x4xf32> to vector<256x4xf32>
    %c0_87 = arith.constant 0 : index
    %c16_88 = arith.constant 16 : index
    %60 = vector.load %arg8[%c0_87, %c16_88] : memref<256x36xf32, #tpu.memory_space<vmem>>, vector<256x4xf32>
    tpu.vector_store %arg8[%c0_87, %c16_88], %59 {strides = array<i32>} : memref<256x36xf32, #tpu.memory_space<vmem>>, vector<256x4xf32>,
    %c1_89 = arith.constant 1 : index
    %c2_90 = arith.constant 2 : index
    %c0_91 = arith.constant 0 : index
    %61 = vector.load %arg7[%c1_89, %c2_90, %c0_91] : memref<18x18x4xf32, #tpu.memory_space<vmem>>, vector<16x16x4xf32>
    %62 = vector.shape_cast %61 : vector<16x16x4xf32> to vector<256x4xf32>
    %c0_92 = arith.constant 0 : index
    %c20_93 = arith.constant 20 : index
    %63 = vector.load %arg8[%c0_92, %c20_93] : memref<256x36xf32, #tpu.memory_space<vmem>>, vector<256x4xf32>
    tpu.vector_store %arg8[%c0_92, %c20_93], %62 {strides = array<i32>} : memref<256x36xf32, #tpu.memory_space<vmem>>, vector<256x4xf32>,
    %c2_94 = arith.constant 2 : index
    %c0_95 = arith.constant 0 : index
    %c0_96 = arith.constant 0 : index
    %64 = vector.load %arg7[%c2_94, %c0_95, %c0_96] : memref<18x18x4xf32, #tpu.memory_space<vmem>>, vector<16x16x4xf32>
    %65 = vector.shape_cast %64 : vector<16x16x4xf32> to vector<256x4xf32>
    %c0_97 = arith.constant 0 : index
    %c24_98 = arith.constant 24 : index
    %66 = vector.load %arg8[%c0_97, %c24_98] : memref<256x36xf32, #tpu.memory_space<vmem>>, vector<256x4xf32>
    tpu.vector_store %arg8[%c0_97, %c24_98], %65 {strides = array<i32>} : memref<256x36xf32, #tpu.memory_space<vmem>>, vector<256x4xf32>,
    %c2_99 = arith.constant 2 : index
    %c1_100 = arith.constant 1 : index
    %c0_101 = arith.constant 0 : index
    %67 = vector.load %arg7[%c2_99, %c1_100, %c0_101] : memref<18x18x4xf32, #tpu.memory_space<vmem>>, vector<16x16x4xf32>
    %68 = vector.shape_cast %67 : vector<16x16x4xf32> to vector<256x4xf32>
    %c0_102 = arith.constant 0 : index
    %c28_103 = arith.constant 28 : index
    %69 = vector.load %arg8[%c0_102, %c28_103] : memref<256x36xf32, #tpu.memory_space<vmem>>, vector<256x4xf32>
    tpu.vector_store %arg8[%c0_102, %c28_103], %68 {strides = array<i32>} : memref<256x36xf32, #tpu.memory_space<vmem>>, vector<256x4xf32>,
    %c2_104 = arith.constant 2 : index
    %c2_105 = arith.constant 2 : index
    %c0_106 = arith.constant 0 : index
    %70 = vector.load %arg7[%c2_104, %c2_105, %c0_106] : memref<18x18x4xf32, #tpu.memory_space<vmem>>, vector<16x16x4xf32>
    %71 = vector.shape_cast %70 : vector<16x16x4xf32> to vector<256x4xf32>
    %c0_107 = arith.constant 0 : index
    %c32_108 = arith.constant 32 : index
    %72 = vector.load %arg8[%c0_107, %c32_108] : memref<256x36xf32, #tpu.memory_space<vmem>>, vector<256x4xf32>
    tpu.vector_store %arg8[%c0_107, %c32_108], %71 {strides = array<i32>} : memref<256x36xf32, #tpu.memory_space<vmem>>, vector<256x4xf32>,
    %c0_109 = arith.constant 0 : index
    %c0_110 = arith.constant 0 : index
    %73 = vector.load %arg8[%c0_109, %c0_110] : memref<256x36xf32, #tpu.memory_space<vmem>>, vector<256x36xf32>
    %c0_111 = arith.constant 0 : index
    %c0_112 = arith.constant 0 : index
    %74 = vector.load %arg4[%c0_111, %c0_112] : memref<36x4xf32, #tpu.memory_space<vmem>>, vector<36x4xf32>
    %cst_113 = arith.constant dense<0.000000e+00> : vector<256x4xf32>
    %75 = tpu.matmul %73, %74, %cst_113 {dimension_numbers = #tpu.dot_dimension_numbers<[1], [0], [0], [1], [0, 0, 1, 1], [], []>} : vector<256x36xf32>, vector<36x4xf32>, vector<256x4xf32> -> vector<256x4xf32>
    %c0_114 = arith.constant 0 : index
    %c0_115 = arith.constant 0 : index
    %76 = vector.load %arg5[%c0_114, %c0_115] : memref<1x4xf32, #tpu.memory_space<vmem>>, vector<1x4xf32>
    %77 = vector.broadcast %76 : vector<1x4xf32> to vector<256x4xf32>
    %78 = arith.addf %75, %77 : vector<256x4xf32>
    %79 = vector.shape_cast %78 : vector<256x4xf32> to vector<1x16x16x4xf32>
    %c0_116 = arith.constant 0 : index
    %c0_117 = arith.constant 0 : index
    %c0_118 = arith.constant 0 : index
    %c0_119 = arith.constant 0 : index
    %80 = vector.load %arg1[%c0_116, %c0_117, %c0_118, %c0_119] : memref<1x16x16x4xf32, #tpu.memory_space<vmem>>, vector<1x16x16x4xf32>
    %81 = arith.addf %79, %80 : vector<1x16x16x4xf32>
    %cst_120 = arith.constant 0.000000e+00 : f32
    %82 = vector.broadcast %cst_120 : f32 to vector<1x16x16x4xf32>
    %83 = arith.maximumf %81, %82 : vector<1x16x16x4xf32>
    %c0_121 = arith.constant 0 : index
    %c0_122 = arith.constant 0 : index
    %c0_123 = arith.constant 0 : index
    %c0_124 = arith.constant 0 : index
    %84 = vector.load %arg6[%c0_121, %c0_122, %c0_123, %c0_124] : memref<1x16x16x4xf32, #tpu.memory_space<vmem>>, vector<1x16x16x4xf32>
    tpu.vector_store %arg6[%c0_121, %c0_122, %c0_123, %c0_124], %83 {strides = array<i32>} : memref<1x16x16x4xf32, #tpu.memory_space<vmem>>, vector<1x16x16x4xf32>,
    return
  }
  func.func @transform_0(%arg0: i32) -> (i32, i32, i32, i32) {
    %c0_i32 = arith.constant 0 : i32
    %c0_i32_0 = arith.constant 0 : i32
    %c0_i32_1 = arith.constant 0 : i32
    %c0_i32_2 = arith.constant 0 : i32
    return %arg0, %c0_i32, %c0_i32_0, %c0_i32_1 : i32, i32, i32, i32
  }
  func.func @transform_1(%arg0: i32) -> (i32, i32) {
    %c0_i32 = arith.constant 0 : i32
    %c0_i32_0 = arith.constant 0 : i32
    %c0_i32_1 = arith.constant 0 : i32
    return %c0_i32, %c0_i32_0 : i32, i32
  }
  func.func @transform_2(%arg0: i32) -> (i32, i32) {
    %c0_i32 = arith.constant 0 : i32
    %c0_i32_0 = arith.constant 0 : i32
    %c0_i32_1 = arith.constant 0 : i32
    return %c0_i32, %c0_i32_0 : i32, i32
  }
  func.func @transform_3(%arg0: i32) -> (i32, i32) {
    %c0_i32 = arith.constant 0 : i32
    %c0_i32_0 = arith.constant 0 : i32
    %c0_i32_1 = arith.constant 0 : i32
    return %c0_i32, %c0_i32_0 : i32, i32
  }
  func.func @transform_4(%arg0: i32) -> (i32, i32) {
    %c0_i32 = arith.constant 0 : i32
    %c0_i32_0 = arith.constant 0 : i32
    %c0_i32_1 = arith.constant 0 : i32
    return %c0_i32, %c0_i32_0 : i32, i32
  }
  func.func @transform_5(%arg0: i32) -> (i32, i32, i32, i32) {
    %c0_i32 = arith.constant 0 : i32
    %c0_i32_0 = arith.constant 0 : i32
    %c0_i32_1 = arith.constant 0 : i32
    %c0_i32_2 = arith.constant 0 : i32
    return %arg0, %c0_i32, %c0_i32_0, %c0_i32_1 : i32, i32, i32, i32
  }
}

</mosaic_0001>

<bundles_post_ra>
// kernel: basic_block_pallas.1
= control target key start
LH: loop header
LB: loop body
LE: loop exit
PB: predicated region body
PF: predicated region fallthrough
CT: control target
= control target key end

     0   :  { %s4881_s18 = smov 0   ;;  %s7084_s0 = inlined_call_operand.vmem [shape: f32[2,16,16,4], index: 0, kind: input, shape index: {}]   ;;  %s7085_s1 = inlined_call_operand.vmem [shape: f32[36,4], index: 1, kind: input, shape index: {}]   ;;  %s7086_s2 = inlined_call_operand.vmem [shape: f32[1,4], index: 2, kind: input, shape index: {}]   ;;  %s7087_s3 = inlined_call_operand.vmem [shape: f32[36,4], index: 3, kind: input, shape index: {}]   ;;  %s7088_s4 = inlined_call_operand.vmem [shape: f32[1,4], index: 4, kind: input, shape index: {}]   ;;  %s7089_s5 = inlined_call_operand.vmem [shape: f32[2,16,16,4], index: 5, kind: output, shape index: {}]  }
   0x1 LB: > { %s4530_s19 = sadd.s32 4294967295, %s4840_s18   ;;  %p4534_p0 = scmp.ge.s32.totalorder %s4840_s18, 1  ;;  %s4840_s18 = sphi %s4881_s18, %s15_s18  }
   0x2   : > { %p187_p1 = scmp.lt.s32.totalorder %s4840_s18, 3 }
   0x4   : > { %p188_p2 = pnand %p4534_p0, %p187_p1 }
   0x6   : > { %191 = sbr.rel (%p188_p2) target bundleno = 1679 (0x68f), region = 40 }
   0xd   : > { %vm225_vm0 = vcmask 31744   ;;  %p4891_p3 = scmp.lt.s32.totalorder %s4530_s19, 1  ;;  %vm228_vm1 = vcmask 25600   ;;  %vm234_vm2 = vcmask 24576   ;;  %v4842_v0 = vmov 0.0   ;;  %s4843_s25 = smov 4  }
   0xe   : > { %226 = vst.msk [vmem:[#allocation2] sm:$0xff] %vm225_vm0, %v4842_v0  ;;  %227 = vst.msk [vmem:[#allocation2 + $0x8] sm:$0xff] %vm225_vm0, %v4842_v0  ;;  %s4844_s26 = smov 8   ;;  %vm560_vm3 = vcmask 64544   ;;  %s4845_s27 = smov 12   ;;  %vm753_vm4 = vcmask 97344  }
   0xf   : > { %231 = vst.msk [vmem:[#allocation2 + $0x198] sm:$0xff] %vm225_vm0, %v4842_v0  ;;  %232 = vst.msk [vmem:[#allocation2 + $0x1a0] sm:$0xff] %vm225_vm0, %v4842_v0  ;;  %s7182_s19 = smov (!%p4891_p3, %s4530_s19), 1  ;;  %s4846_s28 = smov 16   ;;  %vm946_vm5 = vcmask 130144   ;;  %vm1139_vm6 = vcmask 162944  }
  0x10   : > { %229 = vst.msk [vmem:[#allocation2 + $0x10] sm:$0x3] %vm228_vm1, %v4842_v0  ;;  %233 = vst.msk [vmem:[#allocation2 + $0x1a8] sm:$0x3] %vm228_vm1, %v4842_v0  ;;  %s4609_s21 = sshll.u32 %s7182_s19, 8  ;;  %s4847_s29 = smov 20  }
  0x11   : > { %236 = vst.msk [vmem:[#allocation2 + $0x18] sm:$0x1] %vm234_vm2, %v4842_v0  ;;  %237 = vst.msk [vmem:[#allocation2 + $0x30] sm:$0x1] %vm234_vm2, %v4842_v0  ;;  %s4947_s24 = scalar_lea.vmem %s7084_s0, %s4609_s21  ;;  %s4848_s30 = smov 24   ;;  %vm1332_vm7 = vcmask 195744  }
  0x12   : > { %238 = vst.msk [vmem:[#allocation2 + $0x48] sm:$0x1] %vm234_vm2, %v4842_v0  ;;  %239 = vst.msk [vmem:[#allocation2 + $0x60] sm:$0x1] %vm234_vm2, %v4842_v0  ;;  %v271_v1 = vld [vmem:[%s4947_s24] sm:$0xff]  ;;  %v272_v2 = vld [vmem:[%s4947_s24 + $0x8] sm:$0xff]  ;;  %s6892_s13 = scalar_lea.vmem %s7089_s5, %s4609_s21 }
  0x13   : > { %240 = vst.msk [vmem:[#allocation2 + $0x78] sm:$0x1] %vm234_vm2, %v4842_v0  ;;  %241 = vst.msk [vmem:[#allocation2 + $0x90] sm:$0x1] %vm234_vm2, %v4842_v0  ;;  %v273_v3 = vld [vmem:[%s4947_s24 + $0x10] sm:$0xff]  ;;  %v274_v4 = vld [vmem:[%s4947_s24 + $0x18] sm:$0xff] }
  0x14   : > { %242 = vst.msk [vmem:[#allocation2 + $0xa8] sm:$0x1] %vm234_vm2, %v4842_v0  ;;  %243 = vst.msk [vmem:[#allocation2 + $0xc0] sm:$0x1] %vm234_vm2, %v4842_v0  ;;  %v275_v5 = vld [vmem:[%s4947_s24 + $0x20] sm:$0xff]  ;;  %v276_v6 = vld [vmem:[%s4947_s24 + $0x28] sm:$0xff] }
  0x15   : > { %244 = vst.msk [vmem:[#allocation2 + $0xd8] sm:$0x1] %vm234_vm2, %v4842_v0  ;;  %245 = vst.msk [vmem:[#allocation2 + $0xf0] sm:$0x1] %vm234_vm2, %v4842_v0  ;;  %v400_v7 = vld [vmem:[#allocation2 + $0x1] sm:$0xff]  ;;  %v277_v9 = vld [vmem:[%s4947_s24 + $0x30] sm:$0xff] }
  0x16   : > { %246 = vst.msk [vmem:[#allocation2 + $0x108] sm:$0x1] %vm234_vm2, %v4842_v0  ;;  %247 = vst.msk [vmem:[#allocation2 + $0x120] sm:$0x1] %vm234_vm2, %v4842_v0  ;;  %464 = vrot.lane.b32.xlu0 %v400_v7, %s4843_s25  ;;  %v278_v10 = vld [vmem:[%s4947_s24 + $0x38] sm:$0xff]  ;;  %v279_v11 = vld [vmem:[%s4947_s24 + $0x40] sm:$0xff] }
  0x17   : > { %248 = vst.msk [vmem:[#allocation2 + $0x138] sm:$0x1] %vm234_vm2, %v4842_v0  ;;  %249 = vst.msk [vmem:[#allocation2 + $0x150] sm:$0x1] %vm234_vm2, %v4842_v0  ;;  %v401_v8 = vld [vmem:[#allocation2 + $0x9] sm:$0xff]  ;;  %v282_v14 = vld [vmem:[%s4947_s24 + $0x58] sm:$0xff] }
  0x18   : > { %250 = vst.msk [vmem:[#allocation2 + $0x168] sm:$0x1] %vm234_vm2, %v4842_v0  ;;  %251 = vst.msk [vmem:[#allocation2 + $0x180] sm:$0x1] %vm234_vm2, %v4842_v0  ;;  %v280_v12 = vld [vmem:[%s4947_s24 + $0x48] sm:$0xff]  ;;  %v281_v13 = vld [vmem:[%s4947_s24 + $0x50] sm:$0xff] }
  0x19   : > { %254 = vst.msk [vmem:[#allocation2 + $0x29] sm:$0x1] %vm234_vm2, %v4842_v0  ;;  %255 = vst.msk [vmem:[#allocation2 + $0x41] sm:$0x1] %vm234_vm2, %v4842_v0  ;;  %v283_v15 = vld [vmem:[%s4947_s24 + $0x60] sm:$0xff]  ;;  %v284_v16 = vld [vmem:[%s4947_s24 + $0x68] sm:$0xff] }
  0x1a   : > { %256 = vst.msk [vmem:[#allocation2 + $0x59] sm:$0x1] %vm234_vm2, %v4842_v0  ;;  %257 = vst.msk [vmem:[#allocation2 + $0x71] sm:$0x1] %vm234_vm2, %v4842_v0  ;;  %v285_v17 = vld [vmem:[%s4947_s24 + $0x70] sm:$0xff]  ;;  %v286_v18 = vld [vmem:[%s4947_s24 + $0x78] sm:$0xff]  ;;  %466 = vrot.lane.b32.xlu0 %v401_v8, %s4843_s25 }
  0x1b   : > { %258 = vst.msk [vmem:[#allocation2 + $0x89] sm:$0x1] %vm234_vm2, %v4842_v0  ;;  %259 = vst.msk [vmem:[#allocation2 + $0xa1] sm:$0x1] %vm234_vm2, %v4842_v0  ;;  %v287_v19 = vld [vmem:[%s4947_s24 + $0x80] sm:$0xff]  ;;  %v288_v20 = vld [vmem:[%s4947_s24 + $0x88] sm:$0xff] }
  0x1c   : > { %260 = vst.msk [vmem:[#allocation2 + $0xb9] sm:$0x1] %vm234_vm2, %v4842_v0  ;;  %261 = vst.msk [vmem:[#allocation2 + $0xd1] sm:$0x1] %vm234_vm2, %v4842_v0  ;;  %v289_v21 = vld [vmem:[%s4947_s24 + $0x90] sm:$0xff]  ;;  %v290_v22 = vld [vmem:[%s4947_s24 + $0x98] sm:$0xff] }
  0x1d   : > { %262 = vst.msk [vmem:[#allocation2 + $0xe9] sm:$0x1] %vm234_vm2, %v4842_v0  ;;  %263 = vst.msk [vmem:[#allocation2 + $0x101] sm:$0x1] %vm234_vm2, %v4842_v0  ;;  %v291_v23 = vld [vmem:[%s4947_s24 + $0xa0] sm:$0xff]  ;;  %v292_v24 = vld [vmem:[%s4947_s24 + $0xa8] sm:$0xff] }
  0x1e   : > { %264 = vst.msk [vmem:[#allocation2 + $0x119] sm:$0x1] %vm234_vm2, %v4842_v0  ;;  %265 = vst.msk [vmem:[#allocation2 + $0x131] sm:$0x1] %vm234_vm2, %v4842_v0  ;;  %v293_v28 = vld [vmem:[%s4947_s24 + $0xb0] sm:$0xff]  ;;  %v294_v29 = vld [vmem:[%s4947_s24 + $0xb8] sm:$0xff] }
  0x1f   : > { %266 = vst.msk [vmem:[#allocation2 + $0x149] sm:$0x1] %vm234_vm2, %v4842_v0  ;;  %267 = vst.msk [vmem:[#allocation2 + $0x161] sm:$0x1] %vm234_vm2, %v4842_v0  ;;  %v295_v33 = vld [vmem:[%s4947_s24 + $0xc0] sm:$0xff]  ;;  %v296_v34 = vld [vmem:[%s4947_s24 + $0xc8] sm:$0xff] }
  0x20   : > { %268 = vst.msk [vmem:[#allocation2 + $0x179] sm:$0x1] %vm234_vm2, %v4842_v0  ;;  %269 = vst.msk [vmem:[#allocation2 + $0x191] sm:$0x1] %vm234_vm2, %v4842_v0  ;;  %v297_v35 = vld [vmem:[%s4947_s24 + $0xd0] sm:$0xff]  ;;  %v298_v36 = vld [vmem:[%s4947_s24 + $0xd8] sm:$0xff] }
  0x21   : > { %253 = vst.msk [vmem:[#allocation2 + $0x11] sm:$0x1] %vm234_vm2, %v4842_v0  ;;  %235 = vst.msk [vmem:[#allocation2] sm:$0x1] %vm234_vm2, %v4842_v0  ;;  %v299_v37 = vld [vmem:[%s4947_s24 + $0xe0] sm:$0xff]  ;;  %v300_v38 = vld [vmem:[%s4947_s24 + $0xe8] sm:$0xff] }
  0x22   : > { %252 = vst.msk [vmem:[#allocation2 + $0x198] sm:$0x1] %vm234_vm2, %v4842_v0  ;;  %270 = vst.msk [vmem:[#allocation2 + $0x1a9] sm:$0x1] %vm234_vm2, %v4842_v0  ;;  %v337_v48 = vld [vmem:[#allocation2 + $0x8] sm:$0xff]  ;;  %s4849_s14 = smov 28  }
  0x23   : > { %304 = vst.msk [vmem:[#allocation2 + $0x19] sm:$0xff] %vm225_vm0, %v271_v1  ;;  %305 = vst.msk [vmem:[#allocation2 + $0x21] sm:$0xff] %vm225_vm0, %v272_v2  ;;  %vm2086_vm8 = vcmask 1043456   ;;  %s4850_s17 = smov 32   ;;  %vm1526_vm9 = vcmask 228544   ;;  %vm1719_vm10 = vcmask 261344  }
  0x24   : > { %306 = vst.msk [vmem:[#allocation2 + $0x31] sm:$0xff] %vm225_vm0, %v273_v3  ;;  %307 = vst.msk [vmem:[#allocation2 + $0x39] sm:$0xff] %vm225_vm0, %v274_v4  ;;  %vm1912_vm11 = vcmask 294144   ;;  %vm1989_vm12 = vcmask 293888  }
  0x25   : > { %308 = vst.msk [vmem:[#allocation2 + $0x49] sm:$0xff] %vm225_vm0, %v275_v5  ;;  %309 = vst.msk [vmem:[#allocation2 + $0x51] sm:$0xff] %vm225_vm0, %v276_v6 }
  0x26   : > { %310 = vst.msk [vmem:[#allocation2 + $0x61] sm:$0xff] %vm225_vm0, %v277_v9  ;;  %311 = vst.msk [vmem:[#allocation2 + $0x69] sm:$0xff] %vm225_vm0, %v278_v10 }
  0x27   : > { %312 = vst.msk [vmem:[#allocation2 + $0x79] sm:$0xff] %vm225_vm0, %v279_v11  ;;  %313 = vst.msk [vmem:[#allocation2 + $0x81] sm:$0xff] %vm225_vm0, %v280_v12 }
  0x28   : > { %314 = vst.msk [vmem:[#allocation2 + $0x91] sm:$0xff] %vm225_vm0, %v281_v13  ;;  %315 = vst.msk [vmem:[#allocation2 + $0x99] sm:$0xff] %vm225_vm0, %v282_v14  ;;  %v336_v45 = vld [vmem:[#allocation2] sm:$0xff] }
  0x29   : > { %316 = vst.msk [vmem:[#allocation2 + $0xa9] sm:$0xff] %vm225_vm0, %v283_v15  ;;  %317 = vst.msk [vmem:[#allocation2 + $0xb1] sm:$0xff] %vm225_vm0, %v284_v16 }
  0x2a   : > { %318 = vst.msk [vmem:[#allocation2 + $0xc1] sm:$0xff] %vm225_vm0, %v285_v17  ;;  %319 = vst.msk [vmem:[#allocation2 + $0xc9] sm:$0xff] %vm225_vm0, %v286_v18  ;;  %v4992_v25 = vld [vmem:[#allocation2 + $0x19] sm:$0xff]  ;;  %v5001_v27 = vld [vmem:[#allocation2 + $0x21] sm:$0xff] }
  0x2b   : > { %320 = vst.msk [vmem:[#allocation2 + $0xd9] sm:$0xff] %vm225_vm0, %v287_v19  ;;  %321 = vst.msk [vmem:[#allocation2 + $0xe1] sm:$0xff] %vm225_vm0, %v288_v20  ;;  %v4994_v26 = vld [vmem:[#allocation2 + $0x31] sm:$0xff]  ;;  %468 = vrot.lane.b32.xlu1 %v4992_v25, %s4843_s25  ;;  %v5013_v31 = vld [vmem:[#allocation2 + $0x39] sm:$0xff] }
  0x2c   : > { %322 = vst.msk [vmem:[#allocation2 + $0xf1] sm:$0xff] %vm225_vm0, %v289_v21  ;;  %323 = vst.msk [vmem:[#allocation2 + $0xf9] sm:$0xff] %vm225_vm0, %v290_v22  ;;  %472 = vrot.lane.b32.xlu0 %v4994_v26, %s4843_s25  ;;  %v5009_v30 = vld [vmem:[#allocation2 + $0x49] sm:$0xff]  ;;  %v5030_v39 = vld [vmem:[#allocation2 + $0x51] sm:$0xff] }
  0x2d   : > { %324 = vst.msk [vmem:[#allocation2 + $0x109] sm:$0xff] %vm225_vm0, %v291_v23  ;;  %325 = vst.msk [vmem:[#allocation2 + $0x111] sm:$0xff] %vm225_vm0, %v292_v24  ;;  %v5017_v32 = vld [vmem:[#allocation2 + $0x61] sm:$0xff]  ;;  %v5041_v41 = vld [vmem:[#allocation2 + $0x69] sm:$0xff] }
  0x2e   : > { %326 = vst.msk [vmem:[#allocation2 + $0x121] sm:$0xff] %vm225_vm0, %v293_v28  ;;  %327 = vst.msk [vmem:[#allocation2 + $0x129] sm:$0xff] %vm225_vm0, %v294_v29  ;;  %v5037_v40 = vld [vmem:[#allocation2 + $0x79] sm:$0xff]  ;;  %v5049_v43 = vld [vmem:[#allocation2 + $0x81] sm:$0xff] }
  0x2f   : > { %470 = vrot.lane.b32.xlu1 %v5001_v27, %s4843_s25  ;;  %328 = vst.msk [vmem:[#allocation2 + $0x139] sm:$0xff] %vm225_vm0, %v295_v33  ;;  %329 = vst.msk [vmem:[#allocation2 + $0x141] sm:$0xff] %vm225_vm0, %v296_v34  ;;  %v5045_v42 = vld [vmem:[#allocation2 + $0x91] sm:$0xff]  ;;  %v5059_v47 = vld [vmem:[#allocation2 + $0x99] sm:$0xff] }
  0x30   : > { %476 = vrot.lane.b32.xlu0 %v5009_v30, %s4843_s25  ;;  %330 = vst.msk [vmem:[#allocation2 + $0x151] sm:$0xff] %vm225_vm0, %v297_v35  ;;  %331 = vst.msk [vmem:[#allocation2 + $0x159] sm:$0xff] %vm225_vm0, %v298_v36  ;;  %v5053_v44 = vld [vmem:[#allocation2 + $0xa9] sm:$0xff]  ;;  %v5057_v46 = vld [vmem:[#allocation2 + $0x18] sm:$0xff] }
  0x31   : > { %332 = vst.msk [vmem:[#allocation2 + $0x169] sm:$0xff] %vm225_vm0, %v299_v37  ;;  %333 = vst.msk [vmem:[#allocation2 + $0x171] sm:$0xff] %vm225_vm0, %v300_v38  ;;  %v5067_v49 = vld [vmem:[#allocation2 + $0x20] sm:$0xff]  ;;  %v5073_v51 = vld [vmem:[#allocation2 + $0x30] sm:$0xff] }
  0x32   : > { %368 = vst.msk [vmem:[#allocation3] sm:$0xff] %vm225_vm0, %v336_v45  ;;  %370 = vst.msk [vmem:[#allocation3 + $0x10] sm:$0xff] %vm225_vm0, %v5057_v46  ;;  %v5069_v50 = vld [vmem:[#allocation2 + $0xc1] sm:$0xff]  ;;  %v5075_v52 = vld [vmem:[#allocation2 + $0x38] sm:$0xff] }
  0x33   : > { %474 = vrot.lane.b32.xlu1 %v5013_v31, %s4843_s25  ;;  %369 = vst.msk [vmem:[#allocation3 + $0x8] sm:$0xff] %vm225_vm0, %v337_v48  ;;  %371 = vst.msk [vmem:[#allocation3 + $0x18] sm:$0xff] %vm225_vm0, %v5067_v49  ;;  %v5079_v53 = vld [vmem:[#allocation2 + $0xb1] sm:$0xff]  ;;  %v5085_v54 = vld [vmem:[#allocation2 + $0x48] sm:$0xff] }
  0x34   : > { %480 = vrot.lane.b32.xlu0 %v5017_v32, %s4843_s25  ;;  %372 = vst.msk [vmem:[#allocation3 + $0x20] sm:$0xff] %vm225_vm0, %v5073_v51  ;;  %373 = vst.msk [vmem:[#allocation3 + $0x28] sm:$0xff] %vm225_vm0, %v5075_v52  ;;  %v5087_v55 = vld [vmem:[#allocation2 + $0x50] sm:$0xff]  ;;  %v5089_v56 = vld [vmem:[#allocation2 + $0xd9] sm:$0xff] }
  0x35   : > { %374 = vst.msk [vmem:[#allocation3 + $0x30] sm:$0xff] %vm225_vm0, %v5085_v54  ;;  %375 = vst.msk [vmem:[#allocation3 + $0x38] sm:$0xff] %vm225_vm0, %v5087_v55  ;;  %v5095_v57 = vld [vmem:[#allocation2 + $0x60] sm:$0xff]  ;;  %v5097_v58 = vld [vmem:[#allocation2 + $0x68] sm:$0xff] }
  0x36   : > { %v5099_v59 = vld [vmem:[#allocation2 + $0x78] sm:$0xff]  ;;  %376 = vst.msk [vmem:[#allocation3 + $0x40] sm:$0xff] %vm225_vm0, %v5095_v57  ;;  %377 = vst.msk [vmem:[#allocation3 + $0x48] sm:$0xff] %vm225_vm0, %v5097_v58  ;;  %v5109_v60 = vld [vmem:[#allocation2 + $0x80] sm:$0xff] }
  0x37   : > { %478 = vrot.lane.b32.xlu1 %v5030_v39, %s4843_s25  ;;  %378 = vst.msk [vmem:[#allocation3 + $0x50] sm:$0xff] %vm225_vm0, %v5099_v59  ;;  %v5111_v61 = vld [vmem:[#allocation2 + $0x90] sm:$0xff]  ;;  %v5113_v62 = vld [vmem:[#allocation2 + $0x98] sm:$0xff]  ;;  %379 = vst.msk [vmem:[#allocation3 + $0x58] sm:$0xff] %vm225_vm0, %v5109_v60 }
  0x38   : > { %484 = vrot.lane.b32.xlu0 %v5037_v40, %s4843_s25  ;;  %v5115_v63 = vld [vmem:[#allocation2 + $0xc9] sm:$0xff]  ;;  %380 = vst.msk [vmem:[#allocation3 + $0x60] sm:$0xff] %vm225_vm0, %v5111_v61  ;;  %381 = vst.msk [vmem:[#allocation3 + $0x68] sm:$0xff] %vm225_vm0, %v5113_v62  ;;  %v5127_v2 = vld [vmem:[#allocation2 + $0xc0] sm:$0xff] }
  0x39   : > { %v5123_v0 = vld [vmem:[#allocation2 + $0xa8] sm:$0xff]  ;;  %v5125_v1 = vld [vmem:[#allocation2 + $0xb0] sm:$0xff]  ;;  %384 = vst.msk [vmem:[#allocation3 + $0x80] sm:$0xff] %vm225_vm0, %v5127_v2  ;;  %v5139_v4 = vld [vmem:[#allocation2 + $0xd8] sm:$0xff] }
  0x3a   : > { %382 = vst.msk [vmem:[#allocation3 + $0x70] sm:$0xff] %vm225_vm0, %v5123_v0  ;;  %383 = vst.msk [vmem:[#allocation3 + $0x78] sm:$0xff] %vm225_vm0, %v5125_v1  ;;  %v5137_v3 = vld [vmem:[#allocation2 + $0xc8] sm:$0xff]  ;;  %v5141_v5 = vld [vmem:[#allocation2 + $0xe0] sm:$0xff] }
  0x3b   : > { %482 = vrot.lane.b32.xlu1 %v5041_v41, %s4843_s25  ;;  %385 = vst.msk [vmem:[#allocation3 + $0x88] sm:$0xff] %vm225_vm0, %v5137_v3  ;;  %386 = vst.msk [vmem:[#allocation3 + $0x90] sm:$0xff] %vm225_vm0, %v5139_v4  ;;  %v5149_v6 = vld [vmem:[#allocation2 + $0xf0] sm:$0xff]  ;;  %v5151_v7 = vld [vmem:[#allocation2 + $0xf8] sm:$0xff] }
  0x3c   : > { %488 = vrot.lane.b32.xlu0 %v5045_v42, %s4843_s25  ;;  %387 = vst.msk [vmem:[#allocation3 + $0x98] sm:$0xff] %vm225_vm0, %v5141_v5  ;;  %v5153_v8 = vld [vmem:[#allocation2 + $0x108] sm:$0xff]  ;;  %388 = vst.msk [vmem:[#allocation3 + $0xa0] sm:$0xff] %vm225_vm0, %v5149_v6  ;;  %v5163_v9 = vld [vmem:[#allocation2 + $0x110] sm:$0xff] }
  0x3d   : > { %389 = vst.msk [vmem:[#allocation3 + $0xa8] sm:$0xff] %vm225_vm0, %v5151_v7  ;;  %390 = vst.msk [vmem:[#allocation3 + $0xb0] sm:$0xff] %vm225_vm0, %v5153_v8  ;;  %v5165_v10 = vld [vmem:[#allocation2 + $0xf1] sm:$0xff]  ;;  %v5171_v11 = vld [vmem:[#allocation2 + $0x120] sm:$0xff] }
  0x3e   : > { %391 = vst.msk [vmem:[#allocation3 + $0xb8] sm:$0xff] %vm225_vm0, %v5163_v9  ;;  %v5173_v12 = vld [vmem:[#allocation2 + $0x128] sm:$0xff]  ;;  %392 = vst.msk [vmem:[#allocation3 + $0xc0] sm:$0xff] %vm225_vm0, %v5171_v11  ;;  %v5187_v15 = vld [vmem:[#allocation2 + $0x138] sm:$0xff] }
  0x3f   : > { %486 = vrot.lane.b32.xlu1 %v5049_v43, %s4843_s25  ;;  %v5175_v13 = vld [vmem:[#allocation2 + $0xe1] sm:$0xff]  ;;  %393 = vst.msk [vmem:[#allocation3 + $0xc8] sm:$0xff] %vm225_vm0, %v5173_v12  ;;  %v5183_v14 = vld [vmem:[#allocation2 + $0x109] sm:$0xff]  ;;  %v5191_v17 = vld [vmem:[#allocation2 + $0xf9] sm:$0xff] }
  0x40   : > { %492 = vrot.lane.b32.xlu0 %v5053_v44, %s4843_s25  ;;  %v5189_v16 = vld [vmem:[#allocation2 + $0x140] sm:$0xff]  ;;  %394 = vst.msk [vmem:[#allocation3 + $0xd0] sm:$0xff] %vm225_vm0, %v5187_v15  ;;  %v5203_v19 = vld [vmem:[#allocation2 + $0x150] sm:$0xff]  ;;  %v5205_v20 = vld [vmem:[#allocation2 + $0x158] sm:$0xff] }
  0x41   : > { %395 = vst.msk [vmem:[#allocation3 + $0xd8] sm:$0xff] %vm225_vm0, %v5189_v16  ;;  %v5199_v18 = vld [vmem:[#allocation2 + $0x121] sm:$0xff]  ;;  %v5207_v21 = vld [vmem:[#allocation2 + $0x111] sm:$0xff]  ;;  %396 = vst.msk [vmem:[#allocation3 + $0xe0] sm:$0xff] %vm225_vm0, %v5203_v19 }
  0x42   : > { %397 = vst.msk [vmem:[#allocation3 + $0xe8] sm:$0xff] %vm225_vm0, %v5205_v20  ;;  %v5215_v22 = vld [vmem:[#allocation2 + $0x139] sm:$0xff]  ;;  %v5219_v23 = vld [vmem:[#allocation2 + $0x168] sm:$0xff]  ;;  %v5221_v24 = vld [vmem:[#allocation2 + $0x170] sm:$0xff] }
  0x43   : > { %490 = vrot.lane.b32.xlu1 %v5059_v47, %s4843_s25  ;;  %v5223_v28 = vld [vmem:[#allocation2 + $0x129] sm:$0xff]  ;;  %398 = vst.msk [vmem:[#allocation3 + $0xf0] sm:$0xff] %vm225_vm0, %v5219_v23  ;;  %399 = vst.msk [vmem:[#allocation3 + $0xf8] sm:$0xff] %vm225_vm0, %v5221_v24  ;;  %v5231_v29 = vld [vmem:[#allocation2 + $0x151] sm:$0xff] }
  0x44   : > { %496 = vrot.lane.b32.xlu0 %v5069_v50, %s4843_s25  ;;  %v5235_v33 = vld [vmem:[#allocation2 + $0x141] sm:$0xff]  ;;  %v301_v34 = vld [vmem:[%s4947_s24 + $0xf0] sm:$0xff]  ;;  %v302_v36 = vld [vmem:[%s4947_s24 + $0xf8] sm:$0xff] }
  0x45   : > { %7121 = vst [vmem:[#allocation4_spill] sm:$0xff] %v5235_v33  ;;  %v5240_v35 = vld [vmem:[#allocation2 + $0x169] sm:$0xff]  ;;  %334 = vst.msk [vmem:[#allocation2 + $0x181] sm:$0xff] %vm225_vm0, %v301_v34  ;;  %v5247_v37 = vld [vmem:[#allocation2 + $0x159] sm:$0xff] }
  0x46   : > { %7122 = vst [vmem:[#allocation5_spill] sm:$0xff] %v5240_v35  ;;  %335 = vst.msk [vmem:[#allocation2 + $0x189] sm:$0xff] %vm225_vm0, %v302_v36  ;;  %v593_v38 = vld [vmem:[#allocation2 + $0x2] sm:$0xff]  ;;  %v5253_v45 = vld [vmem:[#allocation2 + $0x171] sm:$0xff] }
  0x47   : > { %494 = vrot.lane.b32.xlu1 %v5079_v53, %s4843_s25  ;;  %7123 = vst [vmem:[#allocation6_spill] sm:$0xff] %v5247_v37  ;;  %7124 = vst [vmem:[#allocation7_spill] sm:$0xff] %v5253_v45  ;;  %v5256_v48 = vld [vmem:[#allocation2 + $0x1a] sm:$0xff]  ;;  %v594_v34 = vld [vmem:[#allocation2 + $0xa] sm:$0xff] }
  0x48   : > { %500 = vrot.lane.b32.xlu0 %v5089_v56, %s4843_s25  ;;  %7125 = vst [vmem:[#allocation8_spill] sm:$0xff] %v5256_v48  ;;  %v5262_v36 = vld [vmem:[#allocation2 + $0x32] sm:$0xff] }
  0x49   : > { %7126 = vst [vmem:[#allocation9_spill] sm:$0xff] %v5262_v36 }
  0x4b   : > { %498 = vrot.lane.b32.xlu1 %v5115_v63, %s4843_s25 }
  0x4c   : > { %504 = vrot.lane.b32.xlu0 %v5165_v10, %s4843_s25 }
  0x4f   : > { %502 = vrot.lane.b32.xlu1 %v5175_v13, %s4843_s25 }
  0x50   : > { %508 = vrot.lane.b32.xlu0 %v5183_v14, %s4843_s25 }
  0x53   : > { %506 = vrot.lane.b32.xlu1 %v5191_v17, %s4843_s25 }
  0x54   : > { %512 = vrot.lane.b32.xlu0 %v5199_v18, %s4843_s25 }
  0x57   : > { %510 = vrot.lane.b32.xlu1 %v5207_v21, %s4843_s25 }
  0x58   : > { %516 = vrot.lane.b32.xlu0 %v5215_v22, %s4843_s25 }
  0x5b   : > { %514 = vrot.lane.b32.xlu1 %v5223_v28, %s4843_s25 }
  0x5c   : > { %520 = vrot.lane.b32.xlu0 %v5231_v29, %s4843_s25 }
  0x5f   : > { %518 = vrot.lane.b32.xlu1 %v5235_v33, %s4843_s25 }
  0x60   : > { %524 = vrot.lane.b32.xlu0 %v5240_v35, %s4843_s25  ;;  %v5265_v35 = vld [vmem:[#allocation2 + $0x22] sm:$0xff] }
  0x61   : > { %7127 = vst [vmem:[#allocation10_spill] sm:$0xff] %v5265_v35 }
  0x63   : > { %522 = vrot.lane.b32.xlu1 %v5247_v37, %s4843_s25  ;;  %v5269_v37 = vld [vmem:[#allocation2 + $0x4a] sm:$0xff] }
  0x64   : > { %657 = vrot.lane.b32.xlu0 %v593_v38, %s4844_s26  ;;  %7128 = vst [vmem:[#allocation11_spill] sm:$0xff] %v5269_v37  ;;  %v5273_v38 = vld [vmem:[#allocation2 + $0x3a] sm:$0xff] }
  0x65   : > { %7129 = vst [vmem:[#allocation12_spill] sm:$0xff] %v5273_v38 }
  0x67   : > { %526 = vrot.lane.b32.xlu1 %v5253_v45, %s4843_s25  ;;  %v5353_v45 = vld [vmem:[#allocation2 + $0x12a] sm:$0xff] }
  0x68   : > { %661 = vrot.lane.b32.xlu0 %v5256_v48, %s4844_s26  ;;  %v5277_v48 = vld [vmem:[#allocation2 + $0x62] sm:$0xff]  ;;  %7149 = vst [vmem:[#allocation32_spill] sm:$0xff] %v5353_v45 }
  0x69   : > { %7130 = vst [vmem:[#allocation13_spill] sm:$0xff] %v5277_v48 }
  0x6b   : > { %659 = vrot.lane.b32.xlu1 %v594_v34, %s4844_s26  ;;  %v5281_v34 = vld [vmem:[#allocation2 + $0x52] sm:$0xff] }
  0x6c   : > { %665 = vrot.lane.b32.xlu0 %v5262_v36, %s4844_s26  ;;  %7131 = vst [vmem:[#allocation14_spill] sm:$0xff] %v5281_v34  ;;  %v5285_v36 = vld [vmem:[#allocation2 + $0x7a] sm:$0xff] }
  0x6d   : > { %7132 = vst [vmem:[#allocation15_spill] sm:$0xff] %v5285_v36 }
  0x6f   : > { %663 = vrot.lane.b32.xlu1 %v5265_v35, %s4844_s26  ;;  %v5289_v35 = vld [vmem:[#allocation2 + $0x6a] sm:$0xff] }
  0x70   : > { %669 = vrot.lane.b32.xlu0 %v5269_v37, %s4844_s26  ;;  %7133 = vst [vmem:[#allocation16_spill] sm:$0xff] %v5289_v35  ;;  %v5293_v37 = vld [vmem:[#allocation2 + $0x92] sm:$0xff] }
  0x71   : > { %7134 = vst [vmem:[#allocation17_spill] sm:$0xff] %v5293_v37 }
  0x73   : > { %667 = vrot.lane.b32.xlu1 %v5273_v38, %s4844_s26  ;;  %v5297_v38 = vld [vmem:[#allocation2 + $0x82] sm:$0xff] }
  0x74   : > { %673 = vrot.lane.b32.xlu0 %v5277_v48, %s4844_s26  ;;  %7135 = vst [vmem:[#allocation18_spill] sm:$0xff] %v5297_v38  ;;  %v5301_v48 = vld [vmem:[#allocation2 + $0xaa] sm:$0xff] }
  0x75   : > { %7136 = vst [vmem:[#allocation19_spill] sm:$0xff] %v5301_v48 }
  0x77   : > { %671 = vrot.lane.b32.xlu1 %v5281_v34, %s4844_s26  ;;  %v5305_v34 = vld [vmem:[#allocation2 + $0x9a] sm:$0xff] }
  0x78   : > { %677 = vrot.lane.b32.xlu0 %v5285_v36, %s4844_s26  ;;  %7137 = vst [vmem:[#allocation20_spill] sm:$0xff] %v5305_v34  ;;  %v5309_v36 = vld [vmem:[#allocation2 + $0xc2] sm:$0xff] }
  0x79   : > { %7138 = vst [vmem:[#allocation21_spill] sm:$0xff] %v5309_v36 }
  0x7b   : > { %675 = vrot.lane.b32.xlu1 %v5289_v35, %s4844_s26  ;;  %v5313_v35 = vld [vmem:[#allocation2 + $0xb2] sm:$0xff] }
  0x7c   : > { %681 = vrot.lane.b32.xlu0 %v5293_v37, %s4844_s26  ;;  %7139 = vst [vmem:[#allocation22_spill] sm:$0xff] %v5313_v35  ;;  %v5317_v37 = vld [vmem:[#allocation2 + $0xda] sm:$0xff] }
  0x7d   : > { %7140 = vst [vmem:[#allocation23_spill] sm:$0xff] %v5317_v37 }
  0x7f   : > { %679 = vrot.lane.b32.xlu1 %v5297_v38, %s4844_s26  ;;  %v5321_v38 = vld [vmem:[#allocation2 + $0xca] sm:$0xff] }
  0x80   : > { %685 = vrot.lane.b32.xlu0 %v5301_v48, %s4844_s26  ;;  %7141 = vst [vmem:[#allocation24_spill] sm:$0xff] %v5321_v38  ;;  %v5325_v48 = vld [vmem:[#allocation2 + $0xf2] sm:$0xff] }
  0x81   : > { %7142 = vst [vmem:[#allocation25_spill] sm:$0xff] %v5325_v48 }
  0x83   : > { %683 = vrot.lane.b32.xlu1 %v5305_v34, %s4844_s26  ;;  %v5329_v34 = vld [vmem:[#allocation2 + $0xe2] sm:$0xff] }
  0x84   : > { %689 = vrot.lane.b32.xlu0 %v5309_v36, %s4844_s26  ;;  %7143 = vst [vmem:[#allocation26_spill] sm:$0xff] %v5329_v34  ;;  %v5333_v36 = vld [vmem:[#allocation2 + $0x10a] sm:$0xff] }
  0x85   : > { %7144 = vst [vmem:[#allocation27_spill] sm:$0xff] %v5333_v36 }
  0x87   : > { %687 = vrot.lane.b32.xlu1 %v5313_v35, %s4844_s26  ;;  %v5337_v35 = vld [vmem:[#allocation2 + $0xfa] sm:$0xff] }
  0x88   : > { %693 = vrot.lane.b32.xlu0 %v5317_v37, %s4844_s26  ;;  %7145 = vst [vmem:[#allocation28_spill] sm:$0xff] %v5337_v35  ;;  %v5341_v37 = vld [vmem:[#allocation2 + $0x122] sm:$0xff] }
  0x89   : > { %7146 = vst [vmem:[#allocation29_spill] sm:$0xff] %v5341_v37 }
  0x8b   : > { %691 = vrot.lane.b32.xlu1 %v5321_v38, %s4844_s26  ;;  %v5345_v38 = vld [vmem:[#allocation2 + $0x112] sm:$0xff] }
  0x8c   : > { %697 = vrot.lane.b32.xlu0 %v5325_v48, %s4844_s26  ;;  %7147 = vst [vmem:[#allocation30_spill] sm:$0xff] %v5345_v38  ;;  %v5349_v48 = vld [vmem:[#allocation2 + $0x13a] sm:$0xff] }
  0x8d   : > { %7148 = vst [vmem:[#allocation31_spill] sm:$0xff] %v5349_v48 }
  0x8f   : > { %695 = vrot.lane.b32.xlu1 %v5329_v34, %s4844_s26  ;;  %v465_v34 = vpop.permute.xlu0 %464 }
  0x90   : > { %701 = vrot.lane.b32.xlu0 %v5333_v36, %s4844_s26  ;;  %561 = vst.msk [vmem:[#allocation3] sm:$0xff] %vm560_vm3, %v465_v34  ;;  %v5362_v36 = vld [vmem:[#allocation2 + $0x142] sm:$0xff]  ;;  %v5368_v34 = vld [vmem:[#allocation2 + $0x16a] sm:$0xff] }
  0x91   : > { %7150 = vst [vmem:[#allocation33_spill] sm:$0xff] %v5362_v36 }
  0x93   : > { %699 = vrot.lane.b32.xlu1 %v5337_v35, %s4844_s26  ;;  %v5358_v35 = vld [vmem:[#allocation2 + $0x152] sm:$0xff] }
  0x94   : > { %705 = vrot.lane.b32.xlu0 %v5341_v37, %s4844_s26  ;;  %v467_v37 = vpop.permute.xlu0 %466 }
  0x95   : > { %562 = vst.msk [vmem:[#allocation3 + $0x8] sm:$0xff] %vm560_vm3, %v467_v37  ;;  %v5380_v37 = vld [vmem:[#allocation2 + $0x172] sm:$0xff] }
  0x97   : > { %703 = vrot.lane.b32.xlu1 %v5345_v38, %s4844_s26  ;;  %v5372_v38 = vld [vmem:[#allocation2 + $0x15a] sm:$0xff] }
  0x98   : > { %709 = vrot.lane.b32.xlu0 %v5349_v48, %s4844_s26 }
  0x9b   : > { %707 = vrot.lane.b32.xlu1 %v5353_v45, %s4844_s26 }
  0x9c   : > { %713 = vrot.lane.b32.xlu0 %v5358_v35, %s4844_s26 }
  0x9d   : > { %v469_v33 = vpop.permute.xlu1 %468 }
  0x9e   : > { %563 = vst.msk [vmem:[#allocation3 + $0x10] sm:$0xff] %vm560_vm3, %v469_v33  ;;  %v473_v48 = vpop.permute.xlu0 %472 }
  0x9f   : > { %711 = vrot.lane.b32.xlu1 %v5362_v36, %s4844_s26  ;;  %565 = vst.msk [vmem:[#allocation3 + $0x20] sm:$0xff] %vm560_vm3, %v473_v48 }
  0xa0   : > { %717 = vrot.lane.b32.xlu0 %v5368_v34, %s4844_s26 }
  0xa1   : > { %v471_v45 = vpop.permute.xlu1 %470 }
  0xa2   : > { %564 = vst.msk [vmem:[#allocation3 + $0x18] sm:$0xff] %vm560_vm3, %v471_v45  ;;  %v477_v33 = vpop.permute.xlu0 %476 }
  0xa3   : > { %715 = vrot.lane.b32.xlu1 %v5372_v38, %s4844_s26  ;;  %567 = vst.msk [vmem:[#allocation3 + $0x30] sm:$0xff] %vm560_vm3, %v477_v33 }
  0xa4   : > { %850 = vrot.lane.b32.xlu0 %v5057_v46, %s4845_s27 }
  0xa5   : > { %v475_v36 = vpop.permute.xlu1 %474 }
  0xa6   : > { %566 = vst.msk [vmem:[#allocation3 + $0x28] sm:$0xff] %vm560_vm3, %v475_v36  ;;  %v481_v48 = vpop.permute.xlu0 %480 }
  0xa7   : > { %719 = vrot.lane.b32.xlu1 %v5380_v37, %s4844_s26  ;;  %569 = vst.msk [vmem:[#allocation3 + $0x40] sm:$0xff] %vm560_vm3, %v481_v48 }
  0xa8   : > { %854 = vrot.lane.b32.xlu0 %v5073_v51, %s4845_s27 }
  0xa9   : > { %v479_v45 = vpop.permute.xlu1 %478 }
  0xaa   : > { %568 = vst.msk [vmem:[#allocation3 + $0x38] sm:$0xff] %vm560_vm3, %v479_v45  ;;  %v485_v33 = vpop.permute.xlu0 %484 }
  0xab   : > { %852 = vrot.lane.b32.xlu1 %v5067_v49, %s4845_s27  ;;  %571 = vst.msk [vmem:[#allocation3 + $0x50] sm:$0xff] %vm560_vm3, %v485_v33 }
  0xac   : > { %858 = vrot.lane.b32.xlu0 %v5085_v54, %s4845_s27 }
  0xad   : > { %v483_v46 = vpop.permute.xlu1 %482 }
  0xae   : > { %570 = vst.msk [vmem:[#allocation3 + $0x48] sm:$0xff] %vm560_vm3, %v483_v46  ;;  %v489_v36 = vpop.permute.xlu0 %488 }
  0xaf   : > { %856 = vrot.lane.b32.xlu1 %v5075_v52, %s4845_s27  ;;  %573 = vst.msk [vmem:[#allocation3 + $0x60] sm:$0xff] %vm560_vm3, %v489_v36 }
  0xb0   : > { %862 = vrot.lane.b32.xlu0 %v5095_v57, %s4845_s27 }
  0xb1   : > { %v487_v48 = vpop.permute.xlu1 %486 }
  0xb2   : > { %572 = vst.msk [vmem:[#allocation3 + $0x58] sm:$0xff] %vm560_vm3, %v487_v48  ;;  %v493_v49 = vpop.permute.xlu0 %492 }
  0xb3   : > { %860 = vrot.lane.b32.xlu1 %v5087_v55, %s4845_s27  ;;  %575 = vst.msk [vmem:[#allocation3 + $0x70] sm:$0xff] %vm560_vm3, %v493_v49 }
  0xb4   : > { %866 = vrot.lane.b32.xlu0 %v5099_v59, %s4845_s27 }
  0xb5   : > { %v491_v45 = vpop.permute.xlu1 %490 }
  0xb6   : > { %574 = vst.msk [vmem:[#allocation3 + $0x68] sm:$0xff] %vm560_vm3, %v491_v45  ;;  %v497_v33 = vpop.permute.xlu0 %496 }
  0xb7   : > { %864 = vrot.lane.b32.xlu1 %v5097_v58, %s4845_s27  ;;  %577 = vst.msk [vmem:[#allocation3 + $0x80] sm:$0xff] %vm560_vm3, %v497_v33 }
  0xb8   : > { %870 = vrot.lane.b32.xlu0 %v5111_v61, %s4845_s27 }
  0xb9   : > { %v495_v46 = vpop.permute.xlu1 %494 }
  0xba   : > { %576 = vst.msk [vmem:[#allocation3 + $0x78] sm:$0xff] %vm560_vm3, %v495_v46  ;;  %v501_v36 = vpop.permute.xlu0 %500 }
  0xbb   : > { %868 = vrot.lane.b32.xlu1 %v5109_v60, %s4845_s27  ;;  %579 = vst.msk [vmem:[#allocation3 + $0x90] sm:$0xff] %vm560_vm3, %v501_v36 }
  0xbc   : > { %874 = vrot.lane.b32.xlu0 %v5123_v0, %s4845_s27 }
  0xbd   : > { %v499_v48 = vpop.permute.xlu1 %498 }
  0xbe   : > { %578 = vst.msk [vmem:[#allocation3 + $0x88] sm:$0xff] %vm560_vm3, %v499_v48  ;;  %v505_v49 = vpop.permute.xlu0 %504 }
  0xbf   : > { %872 = vrot.lane.b32.xlu1 %v5113_v62, %s4845_s27  ;;  %581 = vst.msk [vmem:[#allocation3 + $0xa0] sm:$0xff] %vm560_vm3, %v505_v49 }
  0xc0   : > { %878 = vrot.lane.b32.xlu0 %v5127_v2, %s4845_s27 }
  0xc1   : > { %v503_v45 = vpop.permute.xlu1 %502 }
  0xc2   : > { %580 = vst.msk [vmem:[#allocation3 + $0x98] sm:$0xff] %vm560_vm3, %v503_v45  ;;  %v509_v33 = vpop.permute.xlu0 %508 }
  0xc3   : > { %876 = vrot.lane.b32.xlu1 %v5125_v1, %s4845_s27  ;;  %583 = vst.msk [vmem:[#allocation3 + $0xb0] sm:$0xff] %vm560_vm3, %v509_v33 }
  0xc4   : > { %882 = vrot.lane.b32.xlu0 %v5139_v4, %s4845_s27 }
  0xc5   : > { %v507_v46 = vpop.permute.xlu1 %506 }
  0xc6   : > { %582 = vst.msk [vmem:[#allocation3 + $0xa8] sm:$0xff] %vm560_vm3, %v507_v46  ;;  %v513_v36 = vpop.permute.xlu0 %512 }
  0xc7   : > { %880 = vrot.lane.b32.xlu1 %v5137_v3, %s4845_s27  ;;  %585 = vst.msk [vmem:[#allocation3 + $0xc0] sm:$0xff] %vm560_vm3, %v513_v36 }
  0xc8   : > { %886 = vrot.lane.b32.xlu0 %v5149_v6, %s4845_s27 }
  0xc9   : > { %v511_v48 = vpop.permute.xlu1 %510 }
  0xca   : > { %584 = vst.msk [vmem:[#allocation3 + $0xb8] sm:$0xff] %vm560_vm3, %v511_v48  ;;  %v517_v49 = vpop.permute.xlu0 %516 }
  0xcb   : > { %884 = vrot.lane.b32.xlu1 %v5141_v5, %s4845_s27  ;;  %587 = vst.msk [vmem:[#allocation3 + $0xd0] sm:$0xff] %vm560_vm3, %v517_v49 }
  0xcc   : > { %890 = vrot.lane.b32.xlu0 %v5153_v8, %s4845_s27 }
  0xcd   : > { %v515_v45 = vpop.permute.xlu1 %514 }
  0xce   : > { %586 = vst.msk [vmem:[#allocation3 + $0xc8] sm:$0xff] %vm560_vm3, %v515_v45  ;;  %v521_v33 = vpop.permute.xlu0 %520 }
  0xcf   : > { %888 = vrot.lane.b32.xlu1 %v5151_v7, %s4845_s27  ;;  %589 = vst.msk [vmem:[#allocation3 + $0xe0] sm:$0xff] %vm560_vm3, %v521_v33 }
  0xd0   : > { %894 = vrot.lane.b32.xlu0 %v5171_v11, %s4845_s27 }
  0xd1   : > { %v519_v46 = vpop.permute.xlu1 %518 }
  0xd2   : > { %588 = vst.msk [vmem:[#allocation3 + $0xd8] sm:$0xff] %vm560_vm3, %v519_v46  ;;  %v525_v36 = vpop.permute.xlu0 %524 }
  0xd3   : > { %892 = vrot.lane.b32.xlu1 %v5163_v9, %s4845_s27  ;;  %591 = vst.msk [vmem:[#allocation3 + $0xf0] sm:$0xff] %vm560_vm3, %v525_v36  ;;  %v5470_v36 = vld [vmem:[#allocation2 + $0x180] sm:$0xff] }
  0xd4   : > { %898 = vrot.lane.b32.xlu0 %v5187_v15, %s4845_s27 }
  0xd5   : > { %v523_v48 = vpop.permute.xlu1 %522 }
  0xd6   : > { %590 = vst.msk [vmem:[#allocation3 + $0xe8] sm:$0xff] %vm560_vm3, %v523_v48  ;;  %v658_v49 = vpop.permute.xlu0 %657 }
  0xd7   : > { %896 = vrot.lane.b32.xlu1 %v5173_v12, %s4845_s27  ;;  %754 = vst.msk [vmem:[#allocation3] sm:$0xff] %vm753_vm4, %v658_v49 }
  0xd8   : > { %902 = vrot.lane.b32.xlu0 %v5203_v19, %s4845_s27 }
  0xd9   : > { %v527_v45 = vpop.permute.xlu1 %526 }
  0xda   : > { %592 = vst.msk [vmem:[#allocation3 + $0xf8] sm:$0xff] %vm560_vm3, %v527_v45  ;;  %v662_v33 = vpop.permute.xlu0 %661 }
  0xdb   : > { %900 = vrot.lane.b32.xlu1 %v5189_v16, %s4845_s27  ;;  %756 = vst.msk [vmem:[#allocation3 + $0x10] sm:$0xff] %vm753_vm4, %v662_v33  ;;  %v5480_v33 = vld [vmem:[#allocation2 + $0x188] sm:$0xff] }
  0xdc   : > { %906 = vrot.lane.b32.xlu0 %v5219_v23, %s4845_s27 }
  0xdd   : > { %v660_v46 = vpop.permute.xlu1 %659 }
  0xde   : > { %755 = vst.msk [vmem:[#allocation3 + $0x8] sm:$0xff] %vm753_vm4, %v660_v46  ;;  %v666_v48 = vpop.permute.xlu0 %665 }
  0xdf   : > { %904 = vrot.lane.b32.xlu1 %v5205_v20, %s4845_s27  ;;  %758 = vst.msk [vmem:[#allocation3 + $0x20] sm:$0xff] %vm753_vm4, %v666_v48 }
  0xe0   : > { %910 = vrot.lane.b32.xlu0 %v5470_v36, %s4845_s27 }
  0xe1   : > { %v664_v49 = vpop.permute.xlu1 %663 }
  0xe2   : > { %757 = vst.msk [vmem:[#allocation3 + $0x18] sm:$0xff] %vm753_vm4, %v664_v49  ;;  %v670_v45 = vpop.permute.xlu0 %669 }
  0xe3   : > { %908 = vrot.lane.b32.xlu1 %v5221_v24, %s4845_s27  ;;  %760 = vst.msk [vmem:[#allocation3 + $0x30] sm:$0xff] %vm753_vm4, %v670_v45 }
  0xe4   : > { %1043 = vrot.lane.b32.xlu0 %v4992_v25, %s4846_s28 }
  0xe5   : > { %v668_v46 = vpop.permute.xlu1 %667 }
  0xe6   : > { %759 = vst.msk [vmem:[#allocation3 + $0x28] sm:$0xff] %vm753_vm4, %v668_v46  ;;  %v674_v48 = vpop.permute.xlu0 %673 }
  0xe7   : > { %912 = vrot.lane.b32.xlu1 %v5480_v33, %s4845_s27  ;;  %762 = vst.msk [vmem:[#allocation3 + $0x40] sm:$0xff] %vm753_vm4, %v674_v48 }
  0xe8   : > { %1047 = vrot.lane.b32.xlu0 %v4994_v26, %s4846_s28 }
  0xe9   : > { %v672_v49 = vpop.permute.xlu1 %671 }
  0xea   : > { %761 = vst.msk [vmem:[#allocation3 + $0x38] sm:$0xff] %vm753_vm4, %v672_v49  ;;  %v678_v45 = vpop.permute.xlu0 %677  ;;  %v7152_v49 = vld [vmem:[#allocation5_spill] sm:$0xff] }
  0xeb   : > { %1045 = vrot.lane.b32.xlu1 %v5001_v27, %s4846_s28  ;;  %764 = vst.msk [vmem:[#allocation3 + $0x50] sm:$0xff] %vm753_vm4, %v678_v45  ;;  %v7153_v45 = vld [vmem:[#allocation6_spill] sm:$0xff] }
  0xec   : > { %1051 = vrot.lane.b32.xlu0 %v5009_v30, %s4846_s28 }
  0xed   : > { %v676_v25 = vpop.permute.xlu1 %675 }
  0xee   : > { %763 = vst.msk [vmem:[#allocation3 + $0x48] sm:$0xff] %vm753_vm4, %v676_v25  ;;  %v682_v46 = vpop.permute.xlu0 %681 }
  0xef   : > { %1049 = vrot.lane.b32.xlu1 %v5013_v31, %s4846_s28  ;;  %766 = vst.msk [vmem:[#allocation3 + $0x60] sm:$0xff] %vm753_vm4, %v682_v46  ;;  %v7154_v46 = vld [vmem:[#allocation7_spill] sm:$0xff] }
  0xf0   : > { %1055 = vrot.lane.b32.xlu0 %v5017_v32, %s4846_s28 }
  0xf1   : > { %v680_v26 = vpop.permute.xlu1 %679 }
  0xf2   : > { %765 = vst.msk [vmem:[#allocation3 + $0x58] sm:$0xff] %vm753_vm4, %v680_v26  ;;  %v686_v27 = vpop.permute.xlu0 %685 }
  0xf3   : > { %1053 = vrot.lane.b32.xlu1 %v5030_v39, %s4846_s28  ;;  %768 = vst.msk [vmem:[#allocation3 + $0x70] sm:$0xff] %vm753_vm4, %v686_v27  ;;  %v5580_v27 = vld [vmem:[#allocation2 + $0x189] sm:$0xff] }
  0xf4   : > { %1059 = vrot.lane.b32.xlu0 %v5037_v40, %s4846_s28 }
  0xf5   : > { %v684_v30 = vpop.permute.xlu1 %683 }
  0xf6   : > { %767 = vst.msk [vmem:[#allocation3 + $0x68] sm:$0xff] %vm753_vm4, %v684_v30  ;;  %v690_v31 = vpop.permute.xlu0 %689 }
  0xf7   : > { %1057 = vrot.lane.b32.xlu1 %v5041_v41, %s4846_s28  ;;  %770 = vst.msk [vmem:[#allocation3 + $0x80] sm:$0xff] %vm753_vm4, %v690_v31  ;;  %v7155_v31 = vld [vmem:[#allocation8_spill] sm:$0xff] }
  0xf8   : > { %1063 = vrot.lane.b32.xlu0 %v5045_v42, %s4846_s28 }
  0xf9   : > { %v688_v32 = vpop.permute.xlu1 %687 }
  0xfa   : > { %769 = vst.msk [vmem:[#allocation3 + $0x78] sm:$0xff] %vm753_vm4, %v688_v32  ;;  %v694_v39 = vpop.permute.xlu0 %693 }
  0xfb   : > { %1061 = vrot.lane.b32.xlu1 %v5049_v43, %s4846_s28  ;;  %772 = vst.msk [vmem:[#allocation3 + $0x90] sm:$0xff] %vm753_vm4, %v694_v39 }
  0xfc   : > { %1067 = vrot.lane.b32.xlu0 %v5053_v44, %s4846_s28 }
  0xfd   : > { %v692_v40 = vpop.permute.xlu1 %691 }
  0xfe   : > { %771 = vst.msk [vmem:[#allocation3 + $0x88] sm:$0xff] %vm753_vm4, %v692_v40  ;;  %v698_v41 = vpop.permute.xlu0 %697  ;;  %v7156_v40 = vld [vmem:[#allocation9_spill] sm:$0xff] }
  0xff   : > { %1065 = vrot.lane.b32.xlu1 %v5059_v47, %s4846_s28  ;;  %774 = vst.msk [vmem:[#allocation3 + $0xa0] sm:$0xff] %vm753_vm4, %v698_v41  ;;  %v7157_v41 = vld [vmem:[#allocation10_spill] sm:$0xff] }
 0x100   : > { %1071 = vrot.lane.b32.xlu0 %v5069_v50, %s4846_s28 }
 0x101   : > { %v696_v42 = vpop.permute.xlu1 %695 }
 0x102   : > { %773 = vst.msk [vmem:[#allocation3 + $0x98] sm:$0xff] %vm753_vm4, %v696_v42  ;;  %v702_v43 = vpop.permute.xlu0 %701 }
 0x103   : > { %1069 = vrot.lane.b32.xlu1 %v5079_v53, %s4846_s28  ;;  %776 = vst.msk [vmem:[#allocation3 + $0xb0] sm:$0xff] %vm753_vm4, %v702_v43 }
 0x104   : > { %1075 = vrot.lane.b32.xlu0 %v5089_v56, %s4846_s28 }
 0x105   : > { %v700_v44 = vpop.permute.xlu1 %699 }
 0x106   : > { %775 = vst.msk [vmem:[#allocation3 + $0xa8] sm:$0xff] %vm753_vm4, %v700_v44  ;;  %v706_v47 = vpop.permute.xlu0 %705  ;;  %v7158_v44 = vld [vmem:[#allocation11_spill] sm:$0xff] }
 0x107   : > { %1073 = vrot.lane.b32.xlu1 %v5115_v63, %s4846_s28  ;;  %778 = vst.msk [vmem:[#allocation3 + $0xc0] sm:$0xff] %vm753_vm4, %v706_v47  ;;  %v7159_v47 = vld [vmem:[#allocation12_spill] sm:$0xff] }
 0x108   : > { %1079 = vrot.lane.b32.xlu0 %v5165_v10, %s4846_s28 }
 0x109   : > { %v704_v50 = vpop.permute.xlu1 %703 }
 0x10a   : > { %777 = vst.msk [vmem:[#allocation3 + $0xb8] sm:$0xff] %vm753_vm4, %v704_v50  ;;  %v710_v53 = vpop.permute.xlu0 %709 }
 0x10b   : > { %1077 = vrot.lane.b32.xlu1 %v5175_v13, %s4846_s28  ;;  %780 = vst.msk [vmem:[#allocation3 + $0xd0] sm:$0xff] %vm753_vm4, %v710_v53 }
 0x10c   : > { %1083 = vrot.lane.b32.xlu0 %v5183_v14, %s4846_s28 }
 0x10d   : > { %v708_v56 = vpop.permute.xlu1 %707 }
 0x10e   : > { %779 = vst.msk [vmem:[#allocation3 + $0xc8] sm:$0xff] %vm753_vm4, %v708_v56  ;;  %v714_v63 = vpop.permute.xlu0 %713  ;;  %v7160_v56 = vld [vmem:[#allocation13_spill] sm:$0xff] }
 0x10f   : > { %1081 = vrot.lane.b32.xlu1 %v5191_v17, %s4846_s28  ;;  %782 = vst.msk [vmem:[#allocation3 + $0xe0] sm:$0xff] %vm753_vm4, %v714_v63  ;;  %v7161_v63 = vld [vmem:[#allocation14_spill] sm:$0xff] }
 0x110   : > { %1087 = vrot.lane.b32.xlu0 %v5199_v18, %s4846_s28 }
 0x111   : > { %v712_v10 = vpop.permute.xlu1 %711 }
 0x112   : > { %781 = vst.msk [vmem:[#allocation3 + $0xd8] sm:$0xff] %vm753_vm4, %v712_v10  ;;  %v718_v13 = vpop.permute.xlu0 %717 }
 0x113   : > { %1085 = vrot.lane.b32.xlu1 %v5207_v21, %s4846_s28  ;;  %784 = vst.msk [vmem:[#allocation3 + $0xf0] sm:$0xff] %vm753_vm4, %v718_v13  ;;  %v7151_v21 = vld [vmem:[#allocation4_spill] sm:$0xff] }
 0x114   : > { %1091 = vrot.lane.b32.xlu0 %v5215_v22, %s4846_s28 }
 0x115   : > { %v716_v14 = vpop.permute.xlu1 %715 }
 0x116   : > { %783 = vst.msk [vmem:[#allocation3 + $0xe8] sm:$0xff] %vm753_vm4, %v716_v14  ;;  %v851_v17 = vpop.permute.xlu0 %850  ;;  %v7162_v14 = vld [vmem:[#allocation15_spill] sm:$0xff] }
 0x117   : > { %1089 = vrot.lane.b32.xlu1 %v5223_v28, %s4846_s28  ;;  %947 = vst.msk [vmem:[#allocation3] sm:$0xff] %vm946_vm5, %v851_v17  ;;  %v5570_v28 = vld [vmem:[#allocation2 + $0x181] sm:$0xff]  ;;  %v7163_v17 = vld [vmem:[#allocation16_spill] sm:$0xff] }
 0x118   : > { %1095 = vrot.lane.b32.xlu0 %v5231_v29, %s4846_s28 }
 0x119   : > { %v720_v18 = vpop.permute.xlu1 %719 }
 0x11a   : > { %785 = vst.msk [vmem:[#allocation3 + $0xf8] sm:$0xff] %vm753_vm4, %v720_v18  ;;  %v855_v48 = vpop.permute.xlu0 %854 }
 0x11b   : > { %1093 = vrot.lane.b32.xlu1 %v7151_v21, %s4846_s28  ;;  %949 = vst.msk [vmem:[#allocation3 + $0x10] sm:$0xff] %vm946_vm5, %v855_v48  ;;  %v7164_v48 = vld [vmem:[#allocation17_spill] sm:$0xff] }
 0x11c   : > { %1099 = vrot.lane.b32.xlu0 %v7152_v49, %s4846_s28 }
 0x11d   : > { %v853_v22 = vpop.permute.xlu1 %852 }
 0x11e   : > { %948 = vst.msk [vmem:[#allocation3 + $0x8] sm:$0xff] %vm946_vm5, %v853_v22  ;;  %v859_v29 = vpop.permute.xlu0 %858  ;;  %v7165_v22 = vld [vmem:[#allocation18_spill] sm:$0xff] }
 0x11f   : > { %1097 = vrot.lane.b32.xlu1 %v7153_v45, %s4846_s28  ;;  %951 = vst.msk [vmem:[#allocation3 + $0x20] sm:$0xff] %vm946_vm5, %v859_v29  ;;  %v7166_v29 = vld [vmem:[#allocation19_spill] sm:$0xff] }
 0x120   : > { %1103 = vrot.lane.b32.xlu0 %v5570_v28, %s4846_s28 }
 0x121   : > { %v857_v25 = vpop.permute.xlu1 %856 }
 0x122   : > { %950 = vst.msk [vmem:[#allocation3 + $0x18] sm:$0xff] %vm946_vm5, %v857_v25  ;;  %v863_v26 = vpop.permute.xlu0 %862  ;;  %v7167_v25 = vld [vmem:[#allocation20_spill] sm:$0xff] }
 0x123   : > { %1101 = vrot.lane.b32.xlu1 %v7154_v46, %s4846_s28  ;;  %953 = vst.msk [vmem:[#allocation3 + $0x30] sm:$0xff] %vm946_vm5, %v863_v26 }
 0x124   : > { %1236 = vrot.lane.b32.xlu0 %v7155_v31, %s4847_s29  ;;  %v7169_v31 = vld [vmem:[#allocation22_spill] sm:$0xff] }
 0x125   : > { %v861_v30 = vpop.permute.xlu1 %860 }
 0x126   : > { %952 = vst.msk [vmem:[#allocation3 + $0x28] sm:$0xff] %vm946_vm5, %v861_v30  ;;  %v867_v32 = vpop.permute.xlu0 %866  ;;  %v7168_v30 = vld [vmem:[#allocation21_spill] sm:$0xff] }
 0x127   : > { %1105 = vrot.lane.b32.xlu1 %v5580_v27, %s4846_s28  ;;  %955 = vst.msk [vmem:[#allocation3 + $0x40] sm:$0xff] %vm946_vm5, %v867_v32 }
 0x128   : > { %1240 = vrot.lane.b32.xlu0 %v7156_v40, %s4847_s29  ;;  %v7170_v40 = vld [vmem:[#allocation23_spill] sm:$0xff] }
 0x129   : > { %v865_v39 = vpop.permute.xlu1 %864 }
 0x12a   : > { %954 = vst.msk [vmem:[#allocation3 + $0x38] sm:$0xff] %vm946_vm5, %v865_v39  ;;  %v871_v42 = vpop.permute.xlu0 %870 }
 0x12b   : > { %1238 = vrot.lane.b32.xlu1 %v7157_v41, %s4847_s29  ;;  %957 = vst.msk [vmem:[#allocation3 + $0x50] sm:$0xff] %vm946_vm5, %v871_v42  ;;  %v7171_v41 = vld [vmem:[#allocation24_spill] sm:$0xff] }
 0x12c   : > { %1244 = vrot.lane.b32.xlu0 %v7158_v44, %s4847_s29  ;;  %v7172_v44 = vld [vmem:[#allocation25_spill] sm:$0xff] }
 0x12d   : > { %v869_v43 = vpop.permute.xlu1 %868 }
 0x12e   : > { %956 = vst.msk [vmem:[#allocation3 + $0x48] sm:$0xff] %vm946_vm5, %v869_v43  ;;  %v875_v50 = vpop.permute.xlu0 %874 }
 0x12f   : > { %1242 = vrot.lane.b32.xlu1 %v7159_v47, %s4847_s29  ;;  %959 = vst.msk [vmem:[#allocation3 + $0x60] sm:$0xff] %vm946_vm5, %v875_v50  ;;  %v7173_v47 = vld [vmem:[#allocation26_spill] sm:$0xff] }
 0x130   : > { %1248 = vrot.lane.b32.xlu0 %v7160_v56, %s4847_s29  ;;  %v7174_v56 = vld [vmem:[#allocation27_spill] sm:$0xff] }
 0x131   : > { %v873_v53 = vpop.permute.xlu1 %872 }
 0x132   : > { %958 = vst.msk [vmem:[#allocation3 + $0x58] sm:$0xff] %vm946_vm5, %v873_v53  ;;  %v879_v10 = vpop.permute.xlu0 %878 }
 0x133   : > { %1246 = vrot.lane.b32.xlu1 %v7161_v63, %s4847_s29  ;;  %961 = vst.msk [vmem:[#allocation3 + $0x70] sm:$0xff] %vm946_vm5, %v879_v10  ;;  %v7175_v63 = vld [vmem:[#allocation28_spill] sm:$0xff] }
 0x134   : > { %1252 = vrot.lane.b32.xlu0 %v7162_v14, %s4847_s29  ;;  %v7176_v14 = vld [vmem:[#allocation29_spill] sm:$0xff] }
 0x135   : > { %v877_v13 = vpop.permute.xlu1 %876 }
 0x136   : > { %960 = vst.msk [vmem:[#allocation3 + $0x68] sm:$0xff] %vm946_vm5, %v877_v13  ;;  %v883_v18 = vpop.permute.xlu0 %882 }
 0x137   : > { %1250 = vrot.lane.b32.xlu1 %v7163_v17, %s4847_s29  ;;  %963 = vst.msk [vmem:[#allocation3 + $0x80] sm:$0xff] %vm946_vm5, %v883_v18  ;;  %v7177_v17 = vld [vmem:[#allocation30_spill] sm:$0xff] }
 0x138   : > { %1256 = vrot.lane.b32.xlu0 %v7164_v48, %s4847_s29  ;;  %v7178_v48 = vld [vmem:[#allocation31_spill] sm:$0xff] }
 0x139   : > { %v881_v21 = vpop.permute.xlu1 %880 }
 0x13a   : > { %962 = vst.msk [vmem:[#allocation3 + $0x78] sm:$0xff] %vm946_vm5, %v881_v21  ;;  %v887_v49 = vpop.permute.xlu0 %886 }
 0x13b   : > { %1254 = vrot.lane.b32.xlu1 %v7165_v22, %s4847_s29  ;;  %965 = vst.msk [vmem:[#allocation3 + $0x90] sm:$0xff] %vm946_vm5, %v887_v49  ;;  %v7179_v22 = vld [vmem:[#allocation32_spill] sm:$0xff] }
 0x13c   : > { %1260 = vrot.lane.b32.xlu0 %v7166_v29, %s4847_s29  ;;  %v7180_v29 = vld [vmem:[#allocation33_spill] sm:$0xff] }
 0x13d   : > { %v885_v45 = vpop.permute.xlu1 %884 }
 0x13e   : > { %964 = vst.msk [vmem:[#allocation3 + $0x88] sm:$0xff] %vm946_vm5, %v885_v45  ;;  %v891_v46 = vpop.permute.xlu0 %890 }
 0x13f   : > { %1258 = vrot.lane.b32.xlu1 %v7167_v25, %s4847_s29  ;;  %967 = vst.msk [vmem:[#allocation3 + $0xa0] sm:$0xff] %vm946_vm5, %v891_v46 }
 0x140   : > { %1264 = vrot.lane.b32.xlu0 %v7168_v30, %s4847_s29 }
 0x141   : > { %v889_v26 = vpop.permute.xlu1 %888 }
 0x142   : > { %966 = vst.msk [vmem:[#allocation3 + $0x98] sm:$0xff] %vm946_vm5, %v889_v26  ;;  %v895_v32 = vpop.permute.xlu0 %894  ;;  %v5670_v26 = vld [vmem:[#allocation2 + $0x182] sm:$0xff] }
 0x143   : > { %1262 = vrot.lane.b32.xlu1 %v7169_v31, %s4847_s29  ;;  %969 = vst.msk [vmem:[#allocation3 + $0xb0] sm:$0xff] %vm946_vm5, %v895_v32  ;;  %v5680_v31 = vld [vmem:[#allocation2 + $0x18a] sm:$0xff] }
 0x144   : > { %1268 = vrot.lane.b32.xlu0 %v7170_v40, %s4847_s29 }
 0x145   : > { %v893_v39 = vpop.permute.xlu1 %892 }
 0x146   : > { %968 = vst.msk [vmem:[#allocation3 + $0xa8] sm:$0xff] %vm946_vm5, %v893_v39  ;;  %v899_v42 = vpop.permute.xlu0 %898 }
 0x147   : > { %1266 = vrot.lane.b32.xlu1 %v7171_v41, %s4847_s29  ;;  %971 = vst.msk [vmem:[#allocation3 + $0xc0] sm:$0xff] %vm946_vm5, %v899_v42 }
 0x148   : > { %1272 = vrot.lane.b32.xlu0 %v7172_v44, %s4847_s29 }
 0x149   : > { %v897_v43 = vpop.permute.xlu1 %896 }
 0x14a   : > { %970 = vst.msk [vmem:[#allocation3 + $0xb8] sm:$0xff] %vm946_vm5, %v897_v43  ;;  %v903_v50 = vpop.permute.xlu0 %902  ;;  %v1980_v43 = vld [vmem:[%s7085_s1 + $0x18] sm:$0xff] }
 0x14b   : > { %1270 = vrot.lane.b32.xlu1 %v7173_v47, %s4847_s29  ;;  %973 = vst.msk [vmem:[#allocation3 + $0xd0] sm:$0xff] %vm946_vm5, %v903_v50  ;;  %v1752_v50 = vld [vmem:[#allocation2 + $0x32] sm:$0xff] }
 0x14c   : > { %1276 = vrot.lane.b32.xlu0 %v7174_v56, %s4847_s29  ;;  %v1560_v56 = vld [vmem:[#allocation2 + $0x39] sm:$0xff] }
 0x14d   : > { %v901_v53 = vpop.permute.xlu1 %900 }
 0x14e   : > { %972 = vst.msk [vmem:[#allocation3 + $0xc8] sm:$0xff] %vm946_vm5, %v901_v53  ;;  %v907_v10 = vpop.permute.xlu0 %906  ;;  %v1981_v53 = vld [vmem:[%s7085_s1 + $0x20] sm:$0xf] }
 0x14f   : > { %1274 = vrot.lane.b32.xlu1 %v7175_v63, %s4847_s29  ;;  %975 = vst.msk [vmem:[#allocation3 + $0xe0] sm:$0xff] %vm946_vm5, %v907_v10  ;;  %v1561_v10 = vld [vmem:[#allocation2 + $0x49] sm:$0xff] }
 0x150   : > { %1280 = vrot.lane.b32.xlu0 %v7176_v14, %s4847_s29  ;;  %v1753_v14 = vld [vmem:[#allocation2 + $0x3a] sm:$0xff] }
 0x151   : > { %v905_v13 = vpop.permute.xlu1 %904 }
 0x152   : > { %974 = vst.msk [vmem:[#allocation3 + $0xd8] sm:$0xff] %vm946_vm5, %v905_v13  ;;  %v911_v18 = vpop.permute.xlu0 %910 }
 0x153   : > { %1278 = vrot.lane.b32.xlu1 %v7177_v17, %s4847_s29  ;;  %977 = vst.msk [vmem:[#allocation3 + $0xf0] sm:$0xff] %vm946_vm5, %v911_v18  ;;  %v1754_v17 = vld [vmem:[#allocation2 + $0x4a] sm:$0xff] }
 0x154   : > { %1284 = vrot.lane.b32.xlu0 %v7178_v48, %s4847_s29 }
 0x155   : > { %v909_v21 = vpop.permute.xlu1 %908 }
 0x156   : > { %976 = vst.msk [vmem:[#allocation3 + $0xe8] sm:$0xff] %vm946_vm5, %v909_v21  ;;  %v1044_v49 = vpop.permute.xlu0 %1043  ;;  %v1562_v21 = vld [vmem:[#allocation2 + $0x51] sm:$0xff] }
 0x157   : > { %1282 = vrot.lane.b32.xlu1 %v7179_v22, %s4847_s29  ;;  %1140 = vst.msk [vmem:[#allocation3] sm:$0xff] %vm1139_vm6, %v1044_v49  ;;  %v1563_v22 = vld [vmem:[#allocation2 + $0x61] sm:$0xff] }
 0x158   : > { %1288 = vrot.lane.b32.xlu0 %v5358_v35, %s4847_s29 }
 0x159   : > { %v913_v45 = vpop.permute.xlu1 %912 }
 0x15a   : > { %978 = vst.msk [vmem:[#allocation3 + $0xf8] sm:$0xff] %vm946_vm5, %v913_v45  ;;  %v1048_v25 = vpop.permute.xlu0 %1047  ;;  %v1755_v45 = vld [vmem:[#allocation2 + $0x52] sm:$0xff] }
 0x15b   : > { %1286 = vrot.lane.b32.xlu1 %v7180_v29, %s4847_s29  ;;  %1142 = vst.msk [vmem:[#allocation3 + $0x10] sm:$0xff] %vm1139_vm6, %v1048_v25  ;;  %v1756_v25 = vld [vmem:[#allocation2 + $0x62] sm:$0xff] }
 0x15c   : > { %1292 = vrot.lane.b32.xlu0 %v5368_v34, %s4847_s29 }
 0x15d   : > { %v1046_v46 = vpop.permute.xlu1 %1045 }
 0x15e   : > { %1141 = vst.msk [vmem:[#allocation3 + $0x8] sm:$0xff] %vm1139_vm6, %v1046_v46  ;;  %v1052_v35 = vpop.permute.xlu0 %1051 }
 0x15f   : > { %1290 = vrot.lane.b32.xlu1 %v5372_v38, %s4847_s29  ;;  %1144 = vst.msk [vmem:[#allocation3 + $0x20] sm:$0xff] %vm1139_vm6, %v1052_v35  ;;  %v1564_v35 = vld [vmem:[#allocation2 + $0x69] sm:$0xff] }
 0x160   : > { %1296 = vrot.lane.b32.xlu0 %v5670_v26, %s4847_s29 }
 0x161   : > { %v1050_v30 = vpop.permute.xlu1 %1049 }
 0x162   : > { %1143 = vst.msk [vmem:[#allocation3 + $0x18] sm:$0xff] %vm1139_vm6, %v1050_v30  ;;  %v1056_v34 = vpop.permute.xlu0 %1055 }
 0x163   : > { %1294 = vrot.lane.b32.xlu1 %v5380_v37, %s4847_s29  ;;  %1146 = vst.msk [vmem:[#allocation3 + $0x30] sm:$0xff] %vm1139_vm6, %v1056_v34  ;;  %v1565_v34 = vld [vmem:[#allocation2 + $0x79] sm:$0xff] }
 0x164   : > { %1430 = vrot.lane.b32.xlu0 %v5073_v51, %s4848_s30 }
 0x165   : > { %v1054_v32 = vpop.permute.xlu1 %1053 }
 0x166   : > { %1145 = vst.msk [vmem:[#allocation3 + $0x28] sm:$0xff] %vm1139_vm6, %v1054_v32  ;;  %v1060_v38 = vpop.permute.xlu0 %1059 }
 0x167   : > { %1298 = vrot.lane.b32.xlu1 %v5680_v31, %s4847_s29  ;;  %1148 = vst.msk [vmem:[#allocation3 + $0x40] sm:$0xff] %vm1139_vm6, %v1060_v38  ;;  %v1757_v38 = vld [vmem:[#allocation2 + $0x6a] sm:$0xff] }
 0x168   : > { %1434 = vrot.lane.b32.xlu0 %v5085_v54, %s4848_s30 }
 0x169   : > { %v1058_v39 = vpop.permute.xlu1 %1057 }
 0x16a   : > { %1147 = vst.msk [vmem:[#allocation3 + $0x38] sm:$0xff] %vm1139_vm6, %v1058_v39  ;;  %v1064_v37 = vpop.permute.xlu0 %1063 }
 0x16b   : > { %1432 = vrot.lane.b32.xlu1 %v5075_v52, %s4848_s30  ;;  %1150 = vst.msk [vmem:[#allocation3 + $0x50] sm:$0xff] %vm1139_vm6, %v1064_v37  ;;  %v1758_v37 = vld [vmem:[#allocation2 + $0x7a] sm:$0xff] }
 0x16c   : > { %1438 = vrot.lane.b32.xlu0 %v5095_v57, %s4848_s30 }
 0x16d   : > { %v1062_v51 = vpop.permute.xlu1 %1061 }
 0x16e   : > { %1149 = vst.msk [vmem:[#allocation3 + $0x48] sm:$0xff] %vm1139_vm6, %v1062_v51  ;;  %v1068_v40 = vpop.permute.xlu0 %1067 }
 0x16f   : > { %1436 = vrot.lane.b32.xlu1 %v5087_v55, %s4848_s30  ;;  %1152 = vst.msk [vmem:[#allocation3 + $0x60] sm:$0xff] %vm1139_vm6, %v1068_v40  ;;  %v1566_v40 = vld [vmem:[#allocation2 + $0x81] sm:$0xff] }
 0x170   : > { %1442 = vrot.lane.b32.xlu0 %v5099_v59, %s4848_s30 }
 0x171   : > { %v1066_v54 = vpop.permute.xlu1 %1065 }
 0x172   : > { %1151 = vst.msk [vmem:[#allocation3 + $0x58] sm:$0xff] %vm1139_vm6, %v1066_v54  ;;  %v1072_v52 = vpop.permute.xlu0 %1071 }
 0x173   : > { %1440 = vrot.lane.b32.xlu1 %v5097_v58, %s4848_s30  ;;  %1154 = vst.msk [vmem:[#allocation3 + $0x70] sm:$0xff] %vm1139_vm6, %v1072_v52  ;;  %v1567_v52 = vld [vmem:[#allocation2 + $0x91] sm:$0xff] }
 0x174   : > { %1446 = vrot.lane.b32.xlu0 %v5111_v61, %s4848_s30 }
 0x175   : > { %v1070_v57 = vpop.permute.xlu1 %1069 }
 0x176   : > { %1153 = vst.msk [vmem:[#allocation3 + $0x68] sm:$0xff] %vm1139_vm6, %v1070_v57  ;;  %v1076_v55 = vpop.permute.xlu0 %1075 }
 0x177   : > { %1444 = vrot.lane.b32.xlu1 %v5109_v60, %s4848_s30  ;;  %1156 = vst.msk [vmem:[#allocation3 + $0x80] sm:$0xff] %vm1139_vm6, %v1076_v55  ;;  %v1759_v55 = vld [vmem:[#allocation2 + $0x82] sm:$0xff] }
 0x178   : > { %1450 = vrot.lane.b32.xlu0 %v5123_v0, %s4848_s30 }
 0x179   : > { %v1074_v59 = vpop.permute.xlu1 %1073 }
 0x17a   : > { %1155 = vst.msk [vmem:[#allocation3 + $0x78] sm:$0xff] %vm1139_vm6, %v1074_v59  ;;  %v1080_v58 = vpop.permute.xlu0 %1079 }
 0x17b   : > { %1448 = vrot.lane.b32.xlu1 %v5113_v62, %s4848_s30  ;;  %1158 = vst.msk [vmem:[#allocation3 + $0x90] sm:$0xff] %vm1139_vm6, %v1080_v58  ;;  %v1760_v58 = vld [vmem:[#allocation2 + $0x92] sm:$0xff] }
 0x17c   : > { %1454 = vrot.lane.b32.xlu0 %v5127_v2, %s4848_s30 }
 0x17d   : > { %v1078_v61 = vpop.permute.xlu1 %1077 }
 0x17e   : > { %1157 = vst.msk [vmem:[#allocation3 + $0x88] sm:$0xff] %vm1139_vm6, %v1078_v61  ;;  %v1084_v60 = vpop.permute.xlu0 %1083 }
 0x17f   : > { %1452 = vrot.lane.b32.xlu1 %v5125_v1, %s4848_s30  ;;  %1160 = vst.msk [vmem:[#allocation3 + $0xa0] sm:$0xff] %vm1139_vm6, %v1084_v60  ;;  %v1568_v60 = vld [vmem:[#allocation2 + $0x99] sm:$0xff] }
 0x180   : > { %1458 = vrot.lane.b32.xlu0 %v5139_v4, %s4848_s30 }
 0x181   : > { %v1082_v0 = vpop.permute.xlu1 %1081 }
 0x182   : > { %1159 = vst.msk [vmem:[#allocation3 + $0x98] sm:$0xff] %vm1139_vm6, %v1082_v0  ;;  %v1088_v62 = vpop.permute.xlu0 %1087 }
 0x183   : > { %1456 = vrot.lane.b32.xlu1 %v5137_v3, %s4848_s30  ;;  %1162 = vst.msk [vmem:[#allocation3 + $0xb0] sm:$0xff] %vm1139_vm6, %v1088_v62  ;;  %v1569_v62 = vld [vmem:[#allocation2 + $0xa9] sm:$0xff] }
 0x184   : > { %1462 = vrot.lane.b32.xlu0 %v5149_v6, %s4848_s30 }
 0x185   : > { %v1086_v2 = vpop.permute.xlu1 %1085 }
 0x186   : > { %1161 = vst.msk [vmem:[#allocation3 + $0xa8] sm:$0xff] %vm1139_vm6, %v1086_v2  ;;  %v1092_v1 = vpop.permute.xlu0 %1091 }
 0x187   : > { %1460 = vrot.lane.b32.xlu1 %v5141_v5, %s4848_s30  ;;  %1164 = vst.msk [vmem:[#allocation3 + $0xc0] sm:$0xff] %vm1139_vm6, %v1092_v1  ;;  %v1761_v1 = vld [vmem:[#allocation2 + $0x9a] sm:$0xff] }
 0x188   : > { %1466 = vrot.lane.b32.xlu0 %v5153_v8, %s4848_s30 }
 0x189   : > { %v1090_v4 = vpop.permute.xlu1 %1089 }
 0x18a   : > { %1163 = vst.msk [vmem:[#allocation3 + $0xb8] sm:$0xff] %vm1139_vm6, %v1090_v4  ;;  %v1096_v3 = vpop.permute.xlu0 %1095 }
 0x18b   : > { %1464 = vrot.lane.b32.xlu1 %v5151_v7, %s4848_s30  ;;  %1166 = vst.msk [vmem:[#allocation3 + $0xd0] sm:$0xff] %vm1139_vm6, %v1096_v3  ;;  %v1762_v3 = vld [vmem:[#allocation2 + $0xaa] sm:$0xff] }
 0x18c   : > { %1470 = vrot.lane.b32.xlu0 %v5171_v11, %s4848_s30 }
 0x18d   : > { %v1094_v6 = vpop.permute.xlu1 %1093 }
 0x18e   : > { %1165 = vst.msk [vmem:[#allocation3 + $0xc8] sm:$0xff] %vm1139_vm6, %v1094_v6  ;;  %v1100_v5 = vpop.permute.xlu0 %1099 }
 0x18f   : > { %1468 = vrot.lane.b32.xlu1 %v5163_v9, %s4848_s30  ;;  %1168 = vst.msk [vmem:[#allocation3 + $0xe0] sm:$0xff] %vm1139_vm6, %v1100_v5  ;;  %v1570_v5 = vld [vmem:[#allocation2 + $0xb1] sm:$0xff] }
 0x190   : > { %1474 = vrot.lane.b32.xlu0 %v5187_v15, %s4848_s30 }
 0x191   : > { %v1098_v8 = vpop.permute.xlu1 %1097 }
 0x192   : > { %1167 = vst.msk [vmem:[#allocation3 + $0xd8] sm:$0xff] %vm1139_vm6, %v1098_v8  ;;  %v1104_v7 = vpop.permute.xlu0 %1103 }
 0x193   : > { %1472 = vrot.lane.b32.xlu1 %v5173_v12, %s4848_s30  ;;  %1170 = vst.msk [vmem:[#allocation3 + $0xf0] sm:$0xff] %vm1139_vm6, %v1104_v7  ;;  %v1977_v12 = vld [vmem:[%s7085_s1] sm:$0xff] }
 0x194   : > { %1478 = vrot.lane.b32.xlu0 %v5203_v19, %s4848_s30  ;;  %v1978_v19 = vld [vmem:[%s7085_s1 + $0x8] sm:$0xff] }
 0x195   : > { %v1102_v11 = vpop.permute.xlu1 %1101  ;;  %v4801_v41 = vpack.c.bf16 %v1978_v19, %v1977_v12  ;;  %v1571_v7 = vld [vmem:[#allocation2 + $0xc1] sm:$0xff] }
 0x196   : > { %1169 = vst.msk [vmem:[#allocation3 + $0xe8] sm:$0xff] %vm1139_vm6, %v1102_v11  ;;  %v1237_v9 = vpop.permute.xlu0 %1236  ;;  %v1764_v12 = vld [vmem:[#allocation2 + $0xc2] sm:$0xff] }
 0x197   : > { %1476 = vrot.lane.b32.xlu1 %v5189_v16, %s4848_s30  ;;  %1333 = vst.msk [vmem:[#allocation3] sm:$0xff] %vm1332_vm7, %v1237_v9  ;;  %4802 = vmatprep.subr.bf16.mxu0 %v4801_v41  ;;  %v1763_v9 = vld [vmem:[#allocation2 + $0xb2] sm:$0xff] }
 0x198   : > { %1482 = vrot.lane.b32.xlu0 %v5219_v23, %s4848_s30  ;;  %4804 = vmatpush3.bf16.msra.mxu0 %v4801_v41  ;;  %v1979_v23 = vld [vmem:[%s7085_s1 + $0x10] sm:$0xff] }
 0x199   : > { %v1106_v15 = vpop.permute.xlu1 %1105  ;;  %v4805_v44 = vpack.c.bf16 %v1980_v43, %v1979_v23  ;;  %v1572_v41 = vld [vmem:[#allocation2 + $0xc9] sm:$0xff] }
 0x19a   : > { %1171 = vst.msk [vmem:[#allocation3 + $0xf8] sm:$0xff] %vm1139_vm6, %v1106_v15  ;;  %v1241_v16 = vpop.permute.xlu0 %1240  ;;  %v1765_v43 = vld [vmem:[#allocation2 + $0xca] sm:$0xff] }
 0x19b   : > { %1480 = vrot.lane.b32.xlu1 %v5205_v20, %s4848_s30  ;;  %1335 = vst.msk [vmem:[#allocation3 + $0x10] sm:$0xff] %vm1332_vm7, %v1241_v16  ;;  %v1559_v20 = vld [vmem:[#allocation2 + $0x31] sm:$0xff]  ;;  %4806 = vmatprep.subr.bf16.mxu0 %v4805_v44 }
 0x19c   : > { %1486 = vrot.lane.b32.xlu0 %v5470_v36, %s4848_s30  ;;  %4808 = vmatpush3.bf16.msra.mxu0 %v4805_v44  ;;  %v1766_v44 = vld [vmem:[#allocation2 + $0xda] sm:$0xff] }
 0x19d   : > { %v1239_v42 = vpop.permute.xlu1 %1238  ;;  %4693 = vmatprep.subr.msk.mxu0 %vm2086_vm8, %v1981_v53 }
 0x19e   : > { %1334 = vst.msk [vmem:[#allocation3 + $0x8] sm:$0xff] %vm1332_vm7, %v1239_v42  ;;  %v1245_v47 = vpop.permute.xlu0 %1244  ;;  %v1573_v42 = vld [vmem:[#allocation2 + $0xd9] sm:$0xff] }
 0x19f   : > { %1484 = vrot.lane.b32.xlu1 %v5221_v24, %s4848_s30  ;;  %1337 = vst.msk [vmem:[#allocation3 + $0x20] sm:$0xff] %vm1332_vm7, %v1245_v47 }
 0x1a0   : > { %1623 = vrot.lane.b32.xlu0 %v1559_v20, %s4849_s14  ;;  %4694 = vmatpush3.msk.msra.mxu0 %vm2086_vm8, %v1981_v53  ;;  %v1575_v53 = vld [vmem:[#allocation2 + $0xf1] sm:$0xff] }
 0x1a1   : > { %v1243_v36 = vpop.permute.xlu1 %1242 }
 0x1a2   : > { %1336 = vst.msk [vmem:[#allocation3 + $0x18] sm:$0xff] %vm1332_vm7, %v1243_v36  ;;  %v1249_v24 = vpop.permute.xlu0 %1248  ;;  %v1574_v36 = vld [vmem:[#allocation2 + $0xe1] sm:$0xff] }
 0x1a3   : > { %1488 = vrot.lane.b32.xlu1 %v5480_v33, %s4848_s30  ;;  %1339 = vst.msk [vmem:[#allocation3 + $0x30] sm:$0xff] %vm1332_vm7, %v1249_v24 }
 0x1a4   : > { %1816 = vrot.lane.b32.xlu0 %v1752_v50, %s4850_s17 }
 0x1a5   : > { %v1247_v63 = vpop.permute.xlu1 %1246 }
 0x1a6   : > { %1338 = vst.msk [vmem:[#allocation3 + $0x28] sm:$0xff] %vm1332_vm7, %v1247_v63  ;;  %v1253_v13 = vpop.permute.xlu0 %1252 }
 0x1a7   : > { %1625 = vrot.lane.b32.xlu1 %v1560_v56, %s4849_s14  ;;  %1341 = vst.msk [vmem:[#allocation3 + $0x40] sm:$0xff] %vm1332_vm7, %v1253_v13  ;;  %v1767_v56 = vld [vmem:[#allocation2 + $0xe2] sm:$0xff] }
 0x1a8   : > { %1627 = vrot.lane.b32.xlu0 %v1561_v10, %s4849_s14  ;;  %v1768_v10 = vld [vmem:[#allocation2 + $0xf2] sm:$0xff] }
 0x1a9   : > { %v1251_v33 = vpop.permute.xlu1 %1250 }
 0x1aa   : > { %1340 = vst.msk [vmem:[#allocation3 + $0x38] sm:$0xff] %vm1332_vm7, %v1251_v33  ;;  %v1257_v18 = vpop.permute.xlu0 %1256 }
 0x1ab   : > { %1818 = vrot.lane.b32.xlu1 %v1753_v14, %s4850_s17  ;;  %1343 = vst.msk [vmem:[#allocation3 + $0x50] sm:$0xff] %vm1332_vm7, %v1257_v18  ;;  %v1576_v14 = vld [vmem:[#allocation2 + $0xf9] sm:$0xff] }
 0x1ac   : > { %1820 = vrot.lane.b32.xlu0 %v1754_v17, %s4850_s17  ;;  %v1577_v17 = vld [vmem:[#allocation2 + $0x109] sm:$0xff] }
 0x1ad   : > { %v1255_v48 = vpop.permute.xlu1 %1254 }
 0x1ae   : > { %1342 = vst.msk [vmem:[#allocation3 + $0x48] sm:$0xff] %vm1332_vm7, %v1255_v48  ;;  %v1261_v49 = vpop.permute.xlu0 %1260 }
 0x1af   : > { %1629 = vrot.lane.b32.xlu1 %v1562_v21, %s4849_s14  ;;  %1345 = vst.msk [vmem:[#allocation3 + $0x60] sm:$0xff] %vm1332_vm7, %v1261_v49  ;;  %v1769_v21 = vld [vmem:[#allocation2 + $0xfa] sm:$0xff] }
 0x1b0   : > { %1631 = vrot.lane.b32.xlu0 %v1563_v22, %s4849_s14  ;;  %v1770_v22 = vld [vmem:[#allocation2 + $0x10a] sm:$0xff] }
 0x1b1   : > { %v1259_v29 = vpop.permute.xlu1 %1258 }
 0x1b2   : > { %1344 = vst.msk [vmem:[#allocation3 + $0x58] sm:$0xff] %vm1332_vm7, %v1259_v29  ;;  %v1265_v46 = vpop.permute.xlu0 %1264 }
 0x1b3   : > { %1822 = vrot.lane.b32.xlu1 %v1755_v45, %s4850_s17  ;;  %1347 = vst.msk [vmem:[#allocation3 + $0x70] sm:$0xff] %vm1332_vm7, %v1265_v46  ;;  %v1578_v45 = vld [vmem:[#allocation2 + $0x111] sm:$0xff] }
 0x1b4   : > { %1824 = vrot.lane.b32.xlu0 %v1756_v25, %s4850_s17  ;;  %v1579_v25 = vld [vmem:[#allocation2 + $0x121] sm:$0xff] }
 0x1b5   : > { %v1263_v30 = vpop.permute.xlu1 %1262 }
 0x1b6   : > { %1346 = vst.msk [vmem:[#allocation3 + $0x68] sm:$0xff] %vm1332_vm7, %v1263_v30  ;;  %v1269_v32 = vpop.permute.xlu0 %1268 }
 0x1b7   : > { %1633 = vrot.lane.b32.xlu1 %v1564_v35, %s4849_s14  ;;  %1349 = vst.msk [vmem:[#allocation3 + $0x80] sm:$0xff] %vm1332_vm7, %v1269_v32  ;;  %v1771_v35 = vld [vmem:[#allocation2 + $0x112] sm:$0xff] }
 0x1b8   : > { %1635 = vrot.lane.b32.xlu0 %v1565_v34, %s4849_s14  ;;  %v1772_v34 = vld [vmem:[#allocation2 + $0x122] sm:$0xff] }
 0x1b9   : > { %v1267_v39 = vpop.permute.xlu1 %1266 }
 0x1ba   : > { %1348 = vst.msk [vmem:[#allocation3 + $0x78] sm:$0xff] %vm1332_vm7, %v1267_v39  ;;  %v1273_v51 = vpop.permute.xlu0 %1272 }
 0x1bb   : > { %1826 = vrot.lane.b32.xlu1 %v1757_v38, %s4850_s17  ;;  %1351 = vst.msk [vmem:[#allocation3 + $0x90] sm:$0xff] %vm1332_vm7, %v1273_v51  ;;  %v1580_v38 = vld [vmem:[#allocation2 + $0x129] sm:$0xff] }
 0x1bc   : > { %1828 = vrot.lane.b32.xlu0 %v1758_v37, %s4850_s17  ;;  %v1581_v37 = vld [vmem:[#allocation2 + $0x139] sm:$0xff] }
 0x1bd   : > { %v1271_v54 = vpop.permute.xlu1 %1270 }
 0x1be   : > { %1350 = vst.msk [vmem:[#allocation3 + $0x88] sm:$0xff] %vm1332_vm7, %v1271_v54  ;;  %v1277_v57 = vpop.permute.xlu0 %1276 }
 0x1bf   : > { %1637 = vrot.lane.b32.xlu1 %v1566_v40, %s4849_s14  ;;  %1353 = vst.msk [vmem:[#allocation3 + $0xa0] sm:$0xff] %vm1332_vm7, %v1277_v57  ;;  %v1773_v40 = vld [vmem:[#allocation2 + $0x12a] sm:$0xff] }
 0x1c0   : > { %1639 = vrot.lane.b32.xlu0 %v1567_v52, %s4849_s14  ;;  %v1774_v52 = vld [vmem:[#allocation2 + $0x13a] sm:$0xff] }
 0x1c1   : > { %v1275_v59 = vpop.permute.xlu1 %1274 }
 0x1c2   : > { %1352 = vst.msk [vmem:[#allocation3 + $0x98] sm:$0xff] %vm1332_vm7, %v1275_v59  ;;  %v1281_v61 = vpop.permute.xlu0 %1280 }
 0x1c3   : > { %1830 = vrot.lane.b32.xlu1 %v1759_v55, %s4850_s17  ;;  %1355 = vst.msk [vmem:[#allocation3 + $0xb0] sm:$0xff] %vm1332_vm7, %v1281_v61  ;;  %v1582_v55 = vld [vmem:[#allocation2 + $0x141] sm:$0xff] }
 0x1c4   : > { %1832 = vrot.lane.b32.xlu0 %v1760_v58, %s4850_s17  ;;  %v1583_v58 = vld [vmem:[#allocation2 + $0x151] sm:$0xff] }
 0x1c5   : > { %v1279_v0 = vpop.permute.xlu1 %1278 }
 0x1c6   : > { %1354 = vst.msk [vmem:[#allocation3 + $0xa8] sm:$0xff] %vm1332_vm7, %v1279_v0  ;;  %v1285_v2 = vpop.permute.xlu0 %1284 }
 0x1c7   : > { %1641 = vrot.lane.b32.xlu1 %v1568_v60, %s4849_s14  ;;  %1357 = vst.msk [vmem:[#allocation3 + $0xc0] sm:$0xff] %vm1332_vm7, %v1285_v2  ;;  %v1775_v60 = vld [vmem:[#allocation2 + $0x142] sm:$0xff] }
 0x1c8   : > { %1643 = vrot.lane.b32.xlu0 %v1569_v62, %s4849_s14  ;;  %v1776_v62 = vld [vmem:[#allocation2 + $0x152] sm:$0xff] }
 0x1c9   : > { %v1283_v4 = vpop.permute.xlu1 %1282 }
 0x1ca   : > { %1356 = vst.msk [vmem:[#allocation3 + $0xb8] sm:$0xff] %vm1332_vm7, %v1283_v4  ;;  %v1289_v6 = vpop.permute.xlu0 %1288 }
 0x1cb   : > { %1834 = vrot.lane.b32.xlu1 %v1761_v1, %s4850_s17  ;;  %1359 = vst.msk [vmem:[#allocation3 + $0xd0] sm:$0xff] %vm1332_vm7, %v1289_v6  ;;  %v1584_v1 = vld [vmem:[#allocation2 + $0x159] sm:$0xff] }
 0x1cc   : > { %1836 = vrot.lane.b32.xlu0 %v1762_v3, %s4850_s17  ;;  %v1585_v3 = vld [vmem:[#allocation2 + $0x169] sm:$0xff] }
 0x1cd   : > { %v1287_v8 = vpop.permute.xlu1 %1286 }
 0x1ce   : > { %1358 = vst.msk [vmem:[#allocation3 + $0xc8] sm:$0xff] %vm1332_vm7, %v1287_v8  ;;  %v1293_v11 = vpop.permute.xlu0 %1292 }
 0x1cf   : > { %1645 = vrot.lane.b32.xlu1 %v1570_v5, %s4849_s14  ;;  %1361 = vst.msk [vmem:[#allocation3 + $0xe0] sm:$0xff] %vm1332_vm7, %v1293_v11  ;;  %v1777_v5 = vld [vmem:[#allocation2 + $0x15a] sm:$0xff] }
 0x1d0   : > { %1647 = vrot.lane.b32.xlu0 %v1571_v7, %s4849_s14  ;;  %v1778_v7 = vld [vmem:[#allocation2 + $0x16a] sm:$0xff] }
 0x1d1   : > { %v1291_v15 = vpop.permute.xlu1 %1290 }
 0x1d2   : > { %1360 = vst.msk [vmem:[#allocation3 + $0xd8] sm:$0xff] %vm1332_vm7, %v1291_v15  ;;  %v1297_v19 = vpop.permute.xlu0 %1296 }
 0x1d3   : > { %1838 = vrot.lane.b32.xlu1 %v1763_v9, %s4850_s17  ;;  %1363 = vst.msk [vmem:[#allocation3 + $0xf0] sm:$0xff] %vm1332_vm7, %v1297_v19  ;;  %v1586_v9 = vld [vmem:[#allocation2 + $0x171] sm:$0xff] }
 0x1d4   : > { %1840 = vrot.lane.b32.xlu0 %v1764_v12, %s4850_s17  ;;  %v1779_v19 = vld [vmem:[#allocation2 + $0x172] sm:$0xff] }
 0x1d5   : > { %v1295_v16 = vpop.permute.xlu1 %1294 }
 0x1d6   : > { %1362 = vst.msk [vmem:[#allocation3 + $0xe8] sm:$0xff] %vm1332_vm7, %v1295_v16  ;;  %v1431_v23 = vpop.permute.xlu0 %1430 }
 0x1d7   : > { %1649 = vrot.lane.b32.xlu1 %v1572_v41, %s4849_s14  ;;  %1527 = vst.msk [vmem:[#allocation3] sm:$0xff] %vm1526_vm9, %v1431_v23  ;;  %v1396_v23 = vld [vmem:[#allocation2 + $0x198] sm:$0xff] }
 0x1d8   : > { %1651 = vrot.lane.b32.xlu0 %v1573_v42, %s4849_s14 }
 0x1d9   : > { %v1299_v20 = vpop.permute.xlu1 %1298 }
 0x1da   : > { %1364 = vst.msk [vmem:[#allocation3 + $0xf8] sm:$0xff] %vm1332_vm7, %v1299_v20  ;;  %v1435_v47 = vpop.permute.xlu0 %1434  ;;  %v1589_v20 = vld [vmem:[#allocation2 + $0x199] sm:$0xff] }
 0x1db   : > { %1842 = vrot.lane.b32.xlu1 %v1765_v43, %s4850_s17  ;;  %1529 = vst.msk [vmem:[#allocation3 + $0x10] sm:$0xff] %vm1526_vm9, %v1435_v47 }
 0x1dc   : > { %1844 = vrot.lane.b32.xlu0 %v1766_v44, %s4850_s17  ;;  %v1397_v44 = vld [vmem:[#allocation2 + $0x1a0] sm:$0xff] }
 0x1dd   : > { %v1433_v50 = vpop.permute.xlu1 %1432 }
 0x1de   : > { %1528 = vst.msk [vmem:[#allocation3 + $0x8] sm:$0xff] %vm1526_vm9, %v1433_v50  ;;  %v1439_v24 = vpop.permute.xlu0 %1438  ;;  %v1590_v50 = vld [vmem:[#allocation2 + $0x1a1] sm:$0xff] }
 0x1df   : > { %1653 = vrot.lane.b32.xlu1 %v1574_v36, %s4849_s14  ;;  %1531 = vst.msk [vmem:[#allocation3 + $0x20] sm:$0xff] %vm1526_vm9, %v1439_v24 }
 0x1e0   : > { %1655 = vrot.lane.b32.xlu0 %v1575_v53, %s4849_s14 }
 0x1e1   : > { %v1437_v63 = vpop.permute.xlu1 %1436 }
 0x1e2   : > { %1530 = vst.msk [vmem:[#allocation3 + $0x18] sm:$0xff] %vm1526_vm9, %v1437_v63  ;;  %v1443_v13 = vpop.permute.xlu0 %1442 }
 0x1e3   : > { %1846 = vrot.lane.b32.xlu1 %v1767_v56, %s4850_s17  ;;  %1533 = vst.msk [vmem:[#allocation3 + $0x30] sm:$0xff] %vm1526_vm9, %v1443_v13 }
 0x1e4   : > { %1848 = vrot.lane.b32.xlu0 %v1768_v10, %s4850_s17 }
 0x1e5   : > { %v1441_v33 = vpop.permute.xlu1 %1440 }
 0x1e6   : > { %1532 = vst.msk [vmem:[#allocation3 + $0x28] sm:$0xff] %vm1526_vm9, %v1441_v33  ;;  %v1447_v18 = vpop.permute.xlu0 %1446 }
 0x1e7   : > { %1657 = vrot.lane.b32.xlu1 %v1576_v14, %s4849_s14  ;;  %1535 = vst.msk [vmem:[#allocation3 + $0x40] sm:$0xff] %vm1526_vm9, %v1447_v18 }
 0x1e8   : > { %1659 = vrot.lane.b32.xlu0 %v1577_v17, %s4849_s14 }
 0x1e9   : > { %v1445_v48 = vpop.permute.xlu1 %1444 }
 0x1ea   : > { %1534 = vst.msk [vmem:[#allocation3 + $0x38] sm:$0xff] %vm1526_vm9, %v1445_v48  ;;  %v1451_v49 = vpop.permute.xlu0 %1450 }
 0x1eb   : > { %1850 = vrot.lane.b32.xlu1 %v1769_v21, %s4850_s17  ;;  %1537 = vst.msk [vmem:[#allocation3 + $0x50] sm:$0xff] %vm1526_vm9, %v1451_v49 }
 0x1ec   : > { %1852 = vrot.lane.b32.xlu0 %v1770_v22, %s4850_s17 }
 0x1ed   : > { %v1449_v29 = vpop.permute.xlu1 %1448 }
 0x1ee   : > { %1536 = vst.msk [vmem:[#allocation3 + $0x48] sm:$0xff] %vm1526_vm9, %v1449_v29  ;;  %v1455_v46 = vpop.permute.xlu0 %1454 }
 0x1ef   : > { %1661 = vrot.lane.b32.xlu1 %v1578_v45, %s4849_s14  ;;  %1539 = vst.msk [vmem:[#allocation3 + $0x60] sm:$0xff] %vm1526_vm9, %v1455_v46 }
 0x1f0   : > { %1663 = vrot.lane.b32.xlu0 %v1579_v25, %s4849_s14 }
 0x1f1   : > { %v1453_v30 = vpop.permute.xlu1 %1452 }
 0x1f2   : > { %1538 = vst.msk [vmem:[#allocation3 + $0x58] sm:$0xff] %vm1526_vm9, %v1453_v30  ;;  %v1459_v32 = vpop.permute.xlu0 %1458 }
 0x1f3   : > { %1854 = vrot.lane.b32.xlu1 %v1771_v35, %s4850_s17  ;;  %1541 = vst.msk [vmem:[#allocation3 + $0x70] sm:$0xff] %vm1526_vm9, %v1459_v32 }
 0x1f4   : > { %1856 = vrot.lane.b32.xlu0 %v1772_v34, %s4850_s17 }
 0x1f5   : > { %v1457_v39 = vpop.permute.xlu1 %1456 }
 0x1f6   : > { %1540 = vst.msk [vmem:[#allocation3 + $0x68] sm:$0xff] %vm1526_vm9, %v1457_v39  ;;  %v1463_v51 = vpop.permute.xlu0 %1462 }
 0x1f7   : > { %1665 = vrot.lane.b32.xlu1 %v1580_v38, %s4849_s14  ;;  %1543 = vst.msk [vmem:[#allocation3 + $0x80] sm:$0xff] %vm1526_vm9, %v1463_v51 }
 0x1f8   : > { %1667 = vrot.lane.b32.xlu0 %v1581_v37, %s4849_s14 }
 0x1f9   : > { %v1461_v54 = vpop.permute.xlu1 %1460 }
 0x1fa   : > { %1542 = vst.msk [vmem:[#allocation3 + $0x78] sm:$0xff] %vm1526_vm9, %v1461_v54  ;;  %v1467_v57 = vpop.permute.xlu0 %1466 }
 0x1fb   : > { %1858 = vrot.lane.b32.xlu1 %v1773_v40, %s4850_s17  ;;  %1545 = vst.msk [vmem:[#allocation3 + $0x90] sm:$0xff] %vm1526_vm9, %v1467_v57 }
 0x1fc   : > { %1860 = vrot.lane.b32.xlu0 %v1774_v52, %s4850_s17 }
 0x1fd   : > { %v1465_v59 = vpop.permute.xlu1 %1464 }
 0x1fe   : > { %1544 = vst.msk [vmem:[#allocation3 + $0x88] sm:$0xff] %vm1526_vm9, %v1465_v59  ;;  %v1471_v61 = vpop.permute.xlu0 %1470 }
 0x1ff   : > { %1669 = vrot.lane.b32.xlu1 %v1582_v55, %s4849_s14  ;;  %1547 = vst.msk [vmem:[#allocation3 + $0xa0] sm:$0xff] %vm1526_vm9, %v1471_v61 }
 0x200   : > { %1671 = vrot.lane.b32.xlu0 %v1583_v58, %s4849_s14 }
 0x201   : > { %v1469_v0 = vpop.permute.xlu1 %1468 }
 0x202   : > { %1546 = vst.msk [vmem:[#allocation3 + $0x98] sm:$0xff] %vm1526_vm9, %v1469_v0  ;;  %v1475_v2 = vpop.permute.xlu0 %1474 }
 0x203   : > { %1862 = vrot.lane.b32.xlu1 %v1775_v60, %s4850_s17  ;;  %1549 = vst.msk [vmem:[#allocation3 + $0xb0] sm:$0xff] %vm1526_vm9, %v1475_v2 }
 0x204   : > { %1864 = vrot.lane.b32.xlu0 %v1776_v62, %s4850_s17 }
 0x205   : > { %v1473_v4 = vpop.permute.xlu1 %1472 }
 0x206   : > { %1548 = vst.msk [vmem:[#allocation3 + $0xa8] sm:$0xff] %vm1526_vm9, %v1473_v4  ;;  %v1479_v6 = vpop.permute.xlu0 %1478 }
 0x207   : > { %1673 = vrot.lane.b32.xlu1 %v1584_v1, %s4849_s14  ;;  %1551 = vst.msk [vmem:[#allocation3 + $0xc0] sm:$0xff] %vm1526_vm9, %v1479_v6 }
 0x208   : > { %1675 = vrot.lane.b32.xlu0 %v1585_v3, %s4849_s14 }
 0x209   : > { %v1477_v8 = vpop.permute.xlu1 %1476 }
 0x20a   : > { %1550 = vst.msk [vmem:[#allocation3 + $0xb8] sm:$0xff] %vm1526_vm9, %v1477_v8  ;;  %v1483_v11 = vpop.permute.xlu0 %1482 }
 0x20b   : > { %1866 = vrot.lane.b32.xlu1 %v1777_v5, %s4850_s17  ;;  %1553 = vst.msk [vmem:[#allocation3 + $0xd0] sm:$0xff] %vm1526_vm9, %v1483_v11 }
 0x20c   : > { %1868 = vrot.lane.b32.xlu0 %v1778_v7, %s4850_s17 }
 0x20d   : > { %v1481_v15 = vpop.permute.xlu1 %1480 }
 0x20e   : > { %1552 = vst.msk [vmem:[#allocation3 + $0xc8] sm:$0xff] %vm1526_vm9, %v1481_v15  ;;  %v1487_v12 = vpop.permute.xlu0 %1486 }
 0x20f   : > { %1677 = vrot.lane.b32.xlu1 %v1586_v9, %s4849_s14  ;;  %1555 = vst.msk [vmem:[#allocation3 + $0xe0] sm:$0xff] %vm1526_vm9, %v1487_v12 }
 0x210   : > { %1679 = vrot.lane.b32.xlu0 %v5570_v28, %s4849_s14 }
 0x211   : > { %v1485_v41 = vpop.permute.xlu1 %1484 }
 0x212   : > { %1554 = vst.msk [vmem:[#allocation3 + $0xd8] sm:$0xff] %vm1526_vm9, %v1485_v41  ;;  %v1624_v16 = vpop.permute.xlu0 %1623 }
 0x213   : > { %1870 = vrot.lane.b32.xlu1 %v1779_v19, %s4850_s17  ;;  %1720 = vst.msk [vmem:[#allocation3] sm:$0xff] %vm1719_vm10, %v1624_v16 }
 0x214   : > { %1872 = vrot.lane.b32.xlu0 %v5670_v26, %s4850_s17 }
 0x215   : > { %v1489_v42 = vpop.permute.xlu1 %1488 }
 0x216   : > { %1556 = vst.msk [vmem:[#allocation3 + $0xe8] sm:$0xff] %vm1526_vm9, %v1489_v42  ;;  %v1817_v28 = vpop.permute.xlu0 %1816 }
 0x217   : > { %1681 = vrot.lane.b32.xlu1 %v5580_v27, %s4849_s14  ;;  %1913 = vst.msk [vmem:[#allocation3] sm:$0xff] %vm1912_vm11, %v1817_v28 }
 0x218   : > { %1490 = vrot.lane.b32.xlu0 %v1396_v23, %s4848_s30 }
 0x219   : > { %v1626_v43 = vpop.permute.xlu1 %1625 }
 0x21a   : > { %1721 = vst.msk [vmem:[#allocation3 + $0x8] sm:$0xff] %vm1719_vm10, %v1626_v43  ;;  %v1628_v26 = vpop.permute.xlu0 %1627 }
 0x21b   : > { %1874 = vrot.lane.b32.xlu1 %v5680_v31, %s4850_s17  ;;  %1722 = vst.msk [vmem:[#allocation3 + $0x10] sm:$0xff] %vm1719_vm10, %v1628_v26 }
 0x21c   : > { %1683 = vrot.lane.b32.xlu0 %v1589_v20, %s4849_s14 }
 0x21d   : > { %v1819_v47 = vpop.permute.xlu1 %1818 }
 0x21e   : > { %1914 = vst.msk [vmem:[#allocation3 + $0x8] sm:$0xff] %vm1912_vm11, %v1819_v47  ;;  %v1821_v27 = vpop.permute.xlu0 %1820  ;;  %v1945_v36 = vld [vmem:[#allocation3] sm:$0xff] }
 0x21f   : > { %1492 = vrot.lane.b32.xlu1 %v1397_v44, %s4848_s30  ;;  %1915 = vst.msk [vmem:[#allocation3 + $0x10] sm:$0xff] %vm1912_vm11, %v1821_v27  ;;  %4695 = vmatprep.mubr.msk.f32.mxu0 %vm1989_vm12, %v1945_v36 }
 0x221   : > { %v1630_v31 = vpop.permute.xlu1 %1629 }
 0x222   : > { %1723 = vst.msk [vmem:[#allocation3 + $0x18] sm:$0xff] %vm1719_vm10, %v1630_v31  ;;  %v1632_v53 = vpop.permute.xlu0 %1631 }
 0x223   : > { %1685 = vrot.lane.b32.xlu1 %v1590_v50, %s4849_s14  ;;  %1724 = vst.msk [vmem:[#allocation3 + $0x20] sm:$0xff] %vm1719_vm10, %v1632_v53 }
 0x225   : > { %v1823_v24 = vpop.permute.xlu1 %1822  ;;  %v1946_v56 = vld [vmem:[#allocation3 + $0x8] sm:$0xff] }
 0x226   : > { %1916 = vst.msk [vmem:[#allocation3 + $0x18] sm:$0xff] %vm1912_vm11, %v1823_v24  ;;  %4696 = vmatmul.mubr.msk.f32.vlgmr.msra.gmra.mrb[0].mxu0 %vm1989_vm12, %v1946_v56  ;;  %v1825_v63 = vpop.permute.xlu0 %1824  ;;  %v1947_v10 = vld [vmem:[#allocation3 + $0x10] sm:$0xff] }
 0x227   : > { %1917 = vst.msk [vmem:[#allocation3 + $0x20] sm:$0xff] %vm1912_vm11, %v1825_v63  ;;  %4698 = vmatprep.mubr.msk.f32.mxu0 %vm1989_vm12, %v1947_v10  ;;  %v1782_v63 = vld [vmem:[#allocation2 + $0x19a] sm:$0xff]  ;;  %v1783_v10 = vld [vmem:[#allocation2 + $0x1a2] sm:$0xff] }
 0x228   : > { %1876 = vrot.lane.b32.xlu0 %v1782_v63, %s4850_s17  ;;  %1878 = vrot.lane.b32.xlu1 %v1783_v10, %s4850_s17 }
 0x229   : > { %v1634_v13 = vpop.permute.xlu1 %1633 }
 0x22a   : > { %1725 = vst.msk [vmem:[#allocation3 + $0x28] sm:$0xff] %vm1719_vm10, %v1634_v13  ;;  %v1636_v14 = vpop.permute.xlu0 %1635 }
 0x22b   : > { %1726 = vst.msk [vmem:[#allocation3 + $0x30] sm:$0xff] %vm1719_vm10, %v1636_v14 }
 0x22d   : > { %v1827_v33 = vpop.permute.xlu1 %1826  ;;  %v1948_v17 = vld [vmem:[#allocation3 + $0x18] sm:$0xff] }
 0x22e   : > { %1918 = vst.msk [vmem:[#allocation3 + $0x28] sm:$0xff] %vm1912_vm11, %v1827_v33  ;;  %4699 = vmatmul.mubr.msk.f32.gmra.mrb[2].mxu0 %vm1989_vm12, %v1948_v17  ;;  %v1829_v18 = vpop.permute.xlu0 %1828  ;;  %v1949_v21 = vld [vmem:[#allocation3 + $0x20] sm:$0xff] }
 0x22f   : > { %1919 = vst.msk [vmem:[#allocation3 + $0x30] sm:$0xff] %vm1912_vm11, %v1829_v18  ;;  %4701 = vmatprep.mubr.msk.f32.mxu0 %vm1989_vm12, %v1949_v21  ;;  %v2444_v21 = vld [vmem:[#allocation2 + $0x9] sm:$0xff] }
 0x230   : > { %2509 = vrot.lane.b32.xlu1 %v2444_v21, %s4843_s25 }
 0x231   : > { %v1638_v48 = vpop.permute.xlu1 %1637 }
 0x232   : > { %1727 = vst.msk [vmem:[#allocation3 + $0x38] sm:$0xff] %vm1719_vm10, %v1638_v48  ;;  %v1640_v22 = vpop.permute.xlu0 %1639  ;;  %v2443_v48 = vld [vmem:[#allocation2 + $0x1] sm:$0xff] }
 0x233   : > { %1728 = vst.msk [vmem:[#allocation3 + $0x40] sm:$0xff] %vm1719_vm10, %v1640_v22  ;;  %2507 = vrot.lane.b32.xlu0 %v2443_v48, %s4843_s25 }
 0x235   : > { %v1831_v49 = vpop.permute.xlu1 %1830  ;;  %v1950_v45 = vld [vmem:[#allocation3 + $0x28] sm:$0xff] }
 0x236   : > { %1920 = vst.msk [vmem:[#allocation3 + $0x38] sm:$0xff] %vm1912_vm11, %v1831_v49  ;;  %4702 = vmatmul.mubr.msk.f32.gmra.mrb[4].mxu0 %vm1989_vm12, %v1950_v45  ;;  %v1833_v29 = vpop.permute.xlu0 %1832  ;;  %v1951_v25 = vld [vmem:[#allocation3 + $0x30] sm:$0xff] }
 0x237   : > { %1921 = vst.msk [vmem:[#allocation3 + $0x40] sm:$0xff] %vm1912_vm11, %v1833_v29  ;;  %4704 = vmatprep.mubr.msk.f32.mxu0 %vm1989_vm12, %v1951_v25 }
 0x239   : > { %v1642_v46 = vpop.permute.xlu1 %1641 }
 0x23a   : > { %1729 = vst.msk [vmem:[#allocation3 + $0x48] sm:$0xff] %vm1719_vm10, %v1642_v46  ;;  %v1644_v35 = vpop.permute.xlu0 %1643 }
 0x23b   : > { %1730 = vst.msk [vmem:[#allocation3 + $0x50] sm:$0xff] %vm1719_vm10, %v1644_v35 }
 0x23d   : > { %v1835_v30 = vpop.permute.xlu1 %1834  ;;  %v1952_v34 = vld [vmem:[#allocation3 + $0x38] sm:$0xff] }
 0x23e   : > { %1922 = vst.msk [vmem:[#allocation3 + $0x48] sm:$0xff] %vm1912_vm11, %v1835_v30  ;;  %4705 = vmatmul.mubr.msk.f32.gmra.mrb[6].mxu0 %vm1989_vm12, %v1952_v34  ;;  %v1837_v32 = vpop.permute.xlu0 %1836  ;;  %v1953_v38 = vld [vmem:[#allocation3 + $0x40] sm:$0xff] }
 0x23f   : > { %1923 = vst.msk [vmem:[#allocation3 + $0x50] sm:$0xff] %vm1912_vm11, %v1837_v32  ;;  %4707 = vmatprep.mubr.msk.f32.mxu0 %vm1989_vm12, %v1953_v38 }
 0x241   : > { %v1646_v39 = vpop.permute.xlu1 %1645 }
 0x242   : > { %1731 = vst.msk [vmem:[#allocation3 + $0x58] sm:$0xff] %vm1719_vm10, %v1646_v39  ;;  %v1648_v37 = vpop.permute.xlu0 %1647 }
 0x243   : > { %1732 = vst.msk [vmem:[#allocation3 + $0x60] sm:$0xff] %vm1719_vm10, %v1648_v37 }
 0x245   : > { %v1839_v51 = vpop.permute.xlu1 %1838  ;;  %v1954_v40 = vld [vmem:[#allocation3 + $0x48] sm:$0xff] }
 0x246   : > { %1924 = vst.msk [vmem:[#allocation3 + $0x58] sm:$0xff] %vm1912_vm11, %v1839_v51  ;;  %4708 = vmatmul.mubr.msk.f32.gmra.mrb[8].mxu0 %vm1989_vm12, %v1954_v40  ;;  %v1841_v54 = vpop.permute.xlu0 %1840  ;;  %v1955_v52 = vld [vmem:[#allocation3 + $0x50] sm:$0xff] }
 0x247   : > { %1925 = vst.msk [vmem:[#allocation3 + $0x60] sm:$0xff] %vm1912_vm11, %v1841_v54  ;;  %4710 = vmatprep.mubr.msk.f32.mxu0 %vm1989_vm12, %v1955_v52  ;;  %v2380_v52 = vld [vmem:[#allocation2 + $0x8] sm:$0xff] }
 0x248   : > { %2412 = vst.msk [vmem:[#allocation3 + $0x8] sm:$0xff] %vm225_vm0, %v2380_v52 }
 0x249   : > { %v1650_v57 = vpop.permute.xlu1 %1649 }
 0x24a   : > { %1733 = vst.msk [vmem:[#allocation3 + $0x68] sm:$0xff] %vm1719_vm10, %v1650_v57  ;;  %v1652_v55 = vpop.permute.xlu0 %1651  ;;  %v2379_v57 = vld [vmem:[#allocation2] sm:$0xff] }
 0x24b   : > { %1734 = vst.msk [vmem:[#allocation3 + $0x70] sm:$0xff] %vm1719_vm10, %v1652_v55 }
 0x24c   : > { %2411 = vst.msk [vmem:[#allocation3] sm:$0xff] %vm225_vm0, %v2379_v57 }
 0x24d   : > { %v1843_v59 = vpop.permute.xlu1 %1842  ;;  %v1956_v58 = vld [vmem:[#allocation3 + $0x58] sm:$0xff] }
 0x24e   : > { %1926 = vst.msk [vmem:[#allocation3 + $0x68] sm:$0xff] %vm1912_vm11, %v1843_v59  ;;  %4711 = vmatmul.mubr.msk.f32.gmra.mrb[10].mxu0 %vm1989_vm12, %v1956_v58  ;;  %v1845_v61 = vpop.permute.xlu0 %1844  ;;  %v1957_v60 = vld [vmem:[#allocation3 + $0x60] sm:$0xff]  ;;  %v6025_v58 = vld [vmem:[%s7086_s2] ss:$0 sm:$0xff] }
 0x24f   : > { %1927 = vst.msk [vmem:[#allocation3 + $0x70] sm:$0xff] %vm1912_vm11, %v1845_v61  ;;  %4713 = vmatprep.mubr.msk.f32.mxu0 %vm1989_vm12, %v1957_v60 }
 0x251   : > { %v1654_v0 = vpop.permute.xlu1 %1653 }
 0x252   : > { %1735 = vst.msk [vmem:[#allocation3 + $0x78] sm:$0xff] %vm1719_vm10, %v1654_v0  ;;  %v1656_v62 = vpop.permute.xlu0 %1655 }
 0x253   : > { %1736 = vst.msk [vmem:[#allocation3 + $0x80] sm:$0xff] %vm1719_vm10, %v1656_v62 }
 0x255   : > { %v1847_v2 = vpop.permute.xlu1 %1846  ;;  %v1958_v1 = vld [vmem:[#allocation3 + $0x68] sm:$0xff] }
 0x256   : > { %1928 = vst.msk [vmem:[#allocation3 + $0x78] sm:$0xff] %vm1912_vm11, %v1847_v2  ;;  %4714 = vmatmul.mubr.msk.f32.gmra.mrb[12].mxu0 %vm1989_vm12, %v1958_v1  ;;  %v1849_v4 = vpop.permute.xlu0 %1848  ;;  %v1959_v3 = vld [vmem:[#allocation3 + $0x70] sm:$0xff] }
 0x257   : > { %1929 = vst.msk [vmem:[#allocation3 + $0x80] sm:$0xff] %vm1912_vm11, %v1849_v4  ;;  %4716 = vmatprep.mubr.msk.f32.mxu0 %vm1989_vm12, %v1959_v3 }
 0x259   : > { %v1658_v6 = vpop.permute.xlu1 %1657 }
 0x25a   : > { %1737 = vst.msk [vmem:[#allocation3 + $0x88] sm:$0xff] %vm1719_vm10, %v1658_v6  ;;  %v1660_v5 = vpop.permute.xlu0 %1659 }
 0x25b   : > { %1738 = vst.msk [vmem:[#allocation3 + $0x90] sm:$0xff] %vm1719_vm10, %v1660_v5 }
 0x25d   : > { %v1851_v8 = vpop.permute.xlu1 %1850  ;;  %v1960_v7 = vld [vmem:[#allocation3 + $0x78] sm:$0xff] }
 0x25e   : > { %1930 = vst.msk [vmem:[#allocation3 + $0x88] sm:$0xff] %vm1912_vm11, %v1851_v8  ;;  %4717 = vmatmul.mubr.msk.f32.gmra.mrb[14].mxu0 %vm1989_vm12, %v1960_v7  ;;  %v1853_v11 = vpop.permute.xlu0 %1852  ;;  %v1961_v9 = vld [vmem:[#allocation3 + $0x80] sm:$0xff] }
 0x25f   : > { %1931 = vst.msk [vmem:[#allocation3 + $0x90] sm:$0xff] %vm1912_vm11, %v1853_v11  ;;  %4719 = vmatprep.mubr.msk.f32.mxu0 %vm1989_vm12, %v1961_v9 }
 0x261   : > { %v1662_v15 = vpop.permute.xlu1 %1661 }
 0x262   : > { %1739 = vst.msk [vmem:[#allocation3 + $0x98] sm:$0xff] %vm1719_vm10, %v1662_v15  ;;  %v1664_v12 = vpop.permute.xlu0 %1663 }
 0x263   : > { %1740 = vst.msk [vmem:[#allocation3 + $0xa0] sm:$0xff] %vm1719_vm10, %v1664_v12 }
 0x265   : > { %v1855_v19 = vpop.permute.xlu1 %1854  ;;  %v1962_v41 = vld [vmem:[#allocation3 + $0x88] sm:$0xff] }
 0x266   : > { %1932 = vst.msk [vmem:[#allocation3 + $0x98] sm:$0xff] %vm1912_vm11, %v1855_v19  ;;  %4720 = vmatmul.mubr.msk.f32.gmra.mrb[16].mxu0 %vm1989_vm12, %v1962_v41  ;;  %v1857_v16 = vpop.permute.xlu0 %1856  ;;  %v1963_v42 = vld [vmem:[#allocation3 + $0x90] sm:$0xff] }
 0x267   : > { %1933 = vst.msk [vmem:[#allocation3 + $0xa0] sm:$0xff] %vm1912_vm11, %v1857_v16  ;;  %4722 = vmatprep.mubr.msk.f32.mxu0 %vm1989_vm12, %v1963_v42 }
 0x269   : > { %v1666_v23 = vpop.permute.xlu1 %1665 }
 0x26a   : > { %1741 = vst.msk [vmem:[#allocation3 + $0xa8] sm:$0xff] %vm1719_vm10, %v1666_v23  ;;  %v1668_v28 = vpop.permute.xlu0 %1667 }
 0x26b   : > { %1742 = vst.msk [vmem:[#allocation3 + $0xb0] sm:$0xff] %vm1719_vm10, %v1668_v28 }
 0x26d   : > { %v1859_v43 = vpop.permute.xlu1 %1858  ;;  %v1964_v20 = vld [vmem:[#allocation3 + $0x98] sm:$0xff] }
 0x26e   : > { %1934 = vst.msk [vmem:[#allocation3 + $0xa8] sm:$0xff] %vm1912_vm11, %v1859_v43  ;;  %4723 = vmatmul.mubr.msk.f32.gmra.mrb[18].mxu0 %vm1989_vm12, %v1964_v20  ;;  %v1861_v26 = vpop.permute.xlu0 %1860  ;;  %v1965_v44 = vld [vmem:[#allocation3 + $0xa0] sm:$0xff] }
 0x26f   : > { %1935 = vst.msk [vmem:[#allocation3 + $0xb0] sm:$0xff] %vm1912_vm11, %v1861_v26  ;;  %4725 = vmatprep.mubr.msk.f32.mxu0 %vm1989_vm12, %v1965_v44 }
 0x271   : > { %v1670_v47 = vpop.permute.xlu1 %1669 }
 0x272   : > { %1743 = vst.msk [vmem:[#allocation3 + $0xb8] sm:$0xff] %vm1719_vm10, %v1670_v47  ;;  %v1672_v27 = vpop.permute.xlu0 %1671 }
 0x273   : > { %1744 = vst.msk [vmem:[#allocation3 + $0xc0] sm:$0xff] %vm1719_vm10, %v1672_v27 }
 0x275   : > { %v1863_v36 = vpop.permute.xlu1 %1862  ;;  %v1966_v50 = vld [vmem:[#allocation3 + $0xa8] sm:$0xff] }
 0x276   : > { %1936 = vst.msk [vmem:[#allocation3 + $0xb8] sm:$0xff] %vm1912_vm11, %v1863_v36  ;;  %4726 = vmatmul.mubr.msk.f32.gmra.mrb[20].mxu0 %vm1989_vm12, %v1966_v50  ;;  %v1865_v31 = vpop.permute.xlu0 %1864  ;;  %v1967_v53 = vld [vmem:[#allocation3 + $0xb0] sm:$0xff] }
 0x277   : > { %1937 = vst.msk [vmem:[#allocation3 + $0xc0] sm:$0xff] %vm1912_vm11, %v1865_v31  ;;  %4728 = vmatprep.mubr.msk.f32.mxu0 %vm1989_vm12, %v1967_v53 }
 0x279   : > { %v1674_v24 = vpop.permute.xlu1 %1673 }
 0x27a   : > { %1745 = vst.msk [vmem:[#allocation3 + $0xc8] sm:$0xff] %vm1719_vm10, %v1674_v24  ;;  %v1676_v56 = vpop.permute.xlu0 %1675 }
 0x27b   : > { %1746 = vst.msk [vmem:[#allocation3 + $0xd0] sm:$0xff] %vm1719_vm10, %v1676_v56 }
 0x27d   : > { %v1867_v13 = vpop.permute.xlu1 %1866  ;;  %v1968_v14 = vld [vmem:[#allocation3 + $0xb8] sm:$0xff] }
 0x27e   : > { %1938 = vst.msk [vmem:[#allocation3 + $0xc8] sm:$0xff] %vm1912_vm11, %v1867_v13  ;;  %4729 = vmatmul.mubr.msk.f32.gmra.mrb[22].mxu0 %vm1989_vm12, %v1968_v14  ;;  %v1869_v33 = vpop.permute.xlu0 %1868  ;;  %v1969_v17 = vld [vmem:[#allocation3 + $0xc0] sm:$0xff] }
 0x27f   : > { %1939 = vst.msk [vmem:[#allocation3 + $0xd0] sm:$0xff] %vm1912_vm11, %v1869_v33  ;;  %4731 = vmatprep.mubr.msk.f32.mxu0 %vm1989_vm12, %v1969_v17 }
 0x281   : > { %v1678_v18 = vpop.permute.xlu1 %1677 }
 0x282   : > { %1747 = vst.msk [vmem:[#allocation3 + $0xd8] sm:$0xff] %vm1719_vm10, %v1678_v18  ;;  %v1680_v22 = vpop.permute.xlu0 %1679 }
 0x283   : > { %1748 = vst.msk [vmem:[#allocation3 + $0xe0] sm:$0xff] %vm1719_vm10, %v1680_v22 }
 0x285   : > { %v1871_v49 = vpop.permute.xlu1 %1870  ;;  %v1970_v45 = vld [vmem:[#allocation3 + $0xc8] sm:$0xff] }
 0x286   : > { %1940 = vst.msk [vmem:[#allocation3 + $0xd8] sm:$0xff] %vm1912_vm11, %v1871_v49  ;;  %4732 = vmatmul.mubr.msk.f32.gmra.mrb[24].mxu0 %vm1989_vm12, %v1970_v45  ;;  %v1873_v29 = vpop.permute.xlu0 %1872  ;;  %v1971_v25 = vld [vmem:[#allocation3 + $0xd0] sm:$0xff] }
 0x287   : > { %1941 = vst.msk [vmem:[#allocation3 + $0xe0] sm:$0xff] %vm1912_vm11, %v1873_v29  ;;  %4734 = vmatprep.mubr.msk.f32.mxu0 %vm1989_vm12, %v1971_v25 }
 0x289   : > { %v1682_v46 = vpop.permute.xlu1 %1681 }
 0x28a   : > { %1749 = vst.msk [vmem:[#allocation3 + $0xe8] sm:$0xff] %vm1719_vm10, %v1682_v46  ;;  %v1491_v38 = vpop.permute.xlu0 %1490 }
 0x28b   : > { %1557 = vst.msk [vmem:[#allocation3 + $0xf0] sm:$0xff] %vm1526_vm9, %v1491_v38 }
 0x28d   : > { %v1875_v35 = vpop.permute.xlu1 %1874  ;;  %v1972_v30 = vld [vmem:[#allocation3 + $0xd8] sm:$0xff] }
 0x28e   : > { %1942 = vst.msk [vmem:[#allocation3 + $0xe8] sm:$0xff] %vm1912_vm11, %v1875_v35  ;;  %4735 = vmatmul.mubr.msk.f32.gmra.mrb[26].mxu0 %vm1989_vm12, %v1972_v30  ;;  %v1973_v34 = vld [vmem:[#allocation3 + $0xe0] sm:$0xff]  ;;  %v1684_v37 = vpop.permute.xlu0 %1683 }
 0x28f   : > { %4737 = vmatprep.mubr.msk.f32.mxu0 %vm1989_vm12, %v1973_v34  ;;  %1750 = vst.msk [vmem:[#allocation3 + $0xf0] sm:$0xff] %vm1719_vm10, %v1684_v37 }
 0x291   : > { %v1493_v39 = vpop.permute.xlu1 %1492 }
 0x292   : > { %1558 = vst.msk [vmem:[#allocation3 + $0xf8] sm:$0xff] %vm1526_vm9, %v1493_v39 }
 0x295   : > { %v1974_v32 = vld [vmem:[#allocation3 + $0xe8] sm:$0xff]  ;;  %v1686_v51 = vpop.permute.xlu1 %1685 }
 0x296   : > { %4738 = vmatmul.mubr.msk.f32.gmra.mrb[28].mxu0 %vm1989_vm12, %v1974_v32  ;;  %1751 = vst.msk [vmem:[#allocation3 + $0xf8] sm:$0xff] %vm1719_vm10, %v1686_v51 }
 0x29a   : > { %v1877_v40 = vpop.permute.xlu0 %1876  ;;  %v1879_v54 = vpop.permute.xlu1 %1878 }
 0x29b   : > { %1943 = vst.msk [vmem:[#allocation3 + $0xf0] sm:$0xff] %vm1912_vm11, %v1877_v40  ;;  %1944 = vst.msk [vmem:[#allocation3 + $0xf8] sm:$0xff] %vm1912_vm11, %v1879_v54 }
 0x2a2   : > { %v2510_v55 = vpop.permute.xlu1 %2509  ;;  %v1975_v61 = vld [vmem:[#allocation3 + $0xf0] sm:$0xff]  ;;  %v1976_v60 = vld [vmem:[#allocation3 + $0xf8] sm:$0xff] }
 0x2a3   : > { %2604 = vst.msk [vmem:[#allocation3 + $0x8] sm:$0xff] %vm560_vm3, %v2510_v55  ;;  %4740 = vmatprep.mubr.msk.f32.mxu0 %vm1989_vm12, %v1975_v61 }
 0x2a4   : > { %4741 = vmatmul.mubr.msk.f32.gmra.mrb[30].mxu0 %vm1989_vm12, %v1976_v60 }
 0x2a5   : > { %v2508_v59 = vpop.permute.xlu0 %2507 }
 0x2a6   : > { %2603 = vst.msk [vmem:[#allocation3] sm:$0xff] %vm560_vm3, %v2508_v59 }
 0x2f9   : > { %v4697_v0 = vpop.f32.mrb[0].mxu0 }
 0x2fa   : > { %v2162_v62 = vadd.f32 %v4697_v0, %v6025_v58  ;;  %v2156_v2 = vpop.f32.mrb[1].mxu0 }
 0x2fb   : > { %v2157_v1 = vadd.f32 %v6025_v58, %v2156_v2 }
 0x2fc   : > { %v2316_v4 = vmax.f32 %v2162_v62, 0.0 }
 0x2fd   : > { %v2315_v3 = vmax.f32 %v2157_v1, 0.0 }
 0x2fe   : > { %2348 = vst.msk [vmem:[#allocation2 + $0x21] sm:$0xff] %vm225_vm0, %v2316_v4 }
 0x2ff   : > { %2347 = vst.msk [vmem:[#allocation2 + $0x19] sm:$0xff] %vm225_vm0, %v2315_v3 }
 0x301   : > { %v4700_v6 = vpop.f32.mrb[2].mxu0 }
 0x302   : > { %v2172_v5 = vadd.f32 %v4700_v6, %v6025_v58  ;;  %v2166_v8 = vpop.f32.mrb[3].mxu0 }
 0x303   : > { %v2167_v7 = vadd.f32 %v6025_v58, %v2166_v8 }
 0x304   : > { %v2318_v11 = vmax.f32 %v2172_v5, 0.0 }
 0x305   : > { %v2317_v9 = vmax.f32 %v2167_v7, 0.0  ;;  %v6035_v15 = vld [vmem:[#allocation2 + $0x21] sm:$0xff] }
 0x306   : > { %2350 = vst.msk [vmem:[#allocation2 + $0x39] sm:$0xff] %vm225_vm0, %v2318_v11  ;;  %2513 = vrot.lane.b32.xlu1 %v6035_v15, %s4843_s25  ;;  %v6040_v12 = vld [vmem:[#allocation2 + $0x19] sm:$0xff] }
 0x307   : > { %v6042_v19 = vld [vmem:[#allocation2 + $0x20] sm:$0xff]  ;;  %v6044_v41 = vld [vmem:[#allocation2 + $0x18] sm:$0xff]  ;;  %2349 = vst.msk [vmem:[#allocation2 + $0x31] sm:$0xff] %vm225_vm0, %v2317_v9  ;;  %2511 = vrot.lane.b32.xlu0 %v6040_v12, %s4843_s25 }
 0x308   : > { %2414 = vst.msk [vmem:[#allocation3 + $0x18] sm:$0xff] %vm225_vm0, %v6042_v19  ;;  %2413 = vst.msk [vmem:[#allocation3 + $0x10] sm:$0xff] %vm225_vm0, %v6044_v41 }
 0x309   : > { %v4703_v16 = vpop.f32.mrb[4].mxu0 }
 0x30a   : > { %v2182_v42 = vadd.f32 %v4703_v16, %v6025_v58  ;;  %v2176_v23 = vpop.f32.mrb[5].mxu0 }
 0x30b   : > { %v2177_v28 = vadd.f32 %v6025_v58, %v2176_v23 }
 0x30c   : > { %v2320_v43 = vmax.f32 %v2182_v42, 0.0 }
 0x30d   : > { %v2319_v20 = vmax.f32 %v2177_v28, 0.0  ;;  %v6055_v26 = vld [vmem:[#allocation2 + $0x39] sm:$0xff] }
 0x30e   : > { %2352 = vst.msk [vmem:[#allocation2 + $0x51] sm:$0xff] %vm225_vm0, %v2320_v43  ;;  %2517 = vrot.lane.b32.xlu1 %v6055_v26, %s4843_s25  ;;  %v6060_v44 = vld [vmem:[#allocation2 + $0x31] sm:$0xff] }
 0x30f   : > { %v6062_v47 = vld [vmem:[#allocation2 + $0x38] sm:$0xff]  ;;  %v6064_v27 = vld [vmem:[#allocation2 + $0x30] sm:$0xff]  ;;  %2351 = vst.msk [vmem:[#allocation2 + $0x49] sm:$0xff] %vm225_vm0, %v2319_v20  ;;  %2515 = vrot.lane.b32.xlu0 %v6060_v44, %s4843_s25 }
 0x310   : > { %2416 = vst.msk [vmem:[#allocation3 + $0x28] sm:$0xff] %vm225_vm0, %v6062_v47  ;;  %2415 = vst.msk [vmem:[#allocation3 + $0x20] sm:$0xff] %vm225_vm0, %v6064_v27 }
 0x311   : > { %v4706_v36 = vpop.f32.mrb[6].mxu0 }
 0x312   : > { %v2192_v50 = vadd.f32 %v4706_v36, %v6025_v58  ;;  %v2186_v31 = vpop.f32.mrb[7].mxu0 }
 0x313   : > { %v2187_v53 = vadd.f32 %v6025_v58, %v2186_v31 }
 0x314   : > { %v2322_v24 = vmax.f32 %v2192_v50, 0.0 }
 0x315   : > { %v2321_v56 = vmax.f32 %v2187_v53, 0.0  ;;  %v6075_v63 = vld [vmem:[#allocation2 + $0x51] sm:$0xff] }
 0x316   : > { %2354 = vst.msk [vmem:[#allocation2 + $0x69] sm:$0xff] %vm225_vm0, %v2322_v24  ;;  %2521 = vrot.lane.b32.xlu1 %v6075_v63, %s4843_s25  ;;  %v6080_v10 = vld [vmem:[#allocation2 + $0x49] sm:$0xff] }
 0x317   : > { %v6082_v13 = vld [vmem:[#allocation2 + $0x50] sm:$0xff]  ;;  %2353 = vst.msk [vmem:[#allocation2 + $0x61] sm:$0xff] %vm225_vm0, %v2321_v56  ;;  %2519 = vrot.lane.b32.xlu0 %v6080_v10, %s4843_s25  ;;  %v6089_v14 = vld [vmem:[#allocation2 + $0x48] sm:$0xff] }
 0x318   : > { %2418 = vst.msk [vmem:[#allocation3 + $0x38] sm:$0xff] %vm225_vm0, %v6082_v13  ;;  %2417 = vst.msk [vmem:[#allocation3 + $0x30] sm:$0xff] %vm225_vm0, %v6089_v14 }
 0x319   : > { %v4709_v33 = vpop.f32.mrb[8].mxu0 }
 0x31a   : > { %v2202_v17 = vadd.f32 %v4709_v33, %v6025_v58  ;;  %v2196_v18 = vpop.f32.mrb[9].mxu0 }
 0x31b   : > { %v2197_v21 = vadd.f32 %v6025_v58, %v2196_v18 }
 0x31c   : > { %v2324_v48 = vmax.f32 %v2202_v17, 0.0 }
 0x31d   : > { %v2323_v22 = vmax.f32 %v2197_v21, 0.0  ;;  %v6095_v49 = vld [vmem:[#allocation2 + $0x69] sm:$0xff] }
 0x31e   : > { %2356 = vst.msk [vmem:[#allocation2 + $0x81] sm:$0xff] %vm225_vm0, %v2324_v48  ;;  %2525 = vrot.lane.b32.xlu1 %v6095_v49, %s4843_s25  ;;  %v6100_v45 = vld [vmem:[#allocation2 + $0x61] sm:$0xff] }
 0x31f   : > { %v6102_v29 = vld [vmem:[#allocation2 + $0x68] sm:$0xff]  ;;  %2355 = vst.msk [vmem:[#allocation2 + $0x79] sm:$0xff] %vm225_vm0, %v2323_v22  ;;  %2523 = vrot.lane.b32.xlu0 %v6100_v45, %s4843_s25  ;;  %v6109_v25 = vld [vmem:[#allocation2 + $0x60] sm:$0xff] }
 0x320   : > { %2420 = vst.msk [vmem:[#allocation3 + $0x48] sm:$0xff] %vm225_vm0, %v6102_v29  ;;  %2419 = vst.msk [vmem:[#allocation3 + $0x40] sm:$0xff] %vm225_vm0, %v6109_v25 }
 0x321   : > { %v4712_v46 = vpop.f32.mrb[10].mxu0 }
 0x322   : > { %v2212_v35 = vadd.f32 %v4712_v46, %v6025_v58  ;;  %v2206_v30 = vpop.f32.mrb[11].mxu0 }
 0x323   : > { %v2207_v34 = vadd.f32 %v6025_v58, %v2206_v30 }
 0x324   : > { %v2326_v32 = vmax.f32 %v2212_v35, 0.0 }
 0x325   : > { %v2325_v38 = vmax.f32 %v2207_v34, 0.0  ;;  %v6115_v39 = vld [vmem:[#allocation2 + $0x81] sm:$0xff] }
 0x326   : > { %2358 = vst.msk [vmem:[#allocation2 + $0x99] sm:$0xff] %vm225_vm0, %v2326_v32  ;;  %2529 = vrot.lane.b32.xlu1 %v6115_v39, %s4843_s25  ;;  %v6120_v37 = vld [vmem:[#allocation2 + $0x79] sm:$0xff] }
 0x327   : > { %v6122_v51 = vld [vmem:[#allocation2 + $0x80] sm:$0xff]  ;;  %2357 = vst.msk [vmem:[#allocation2 + $0x91] sm:$0xff] %vm225_vm0, %v2325_v38  ;;  %2527 = vrot.lane.b32.xlu0 %v6120_v37, %s4843_s25  ;;  %v6129_v40 = vld [vmem:[#allocation2 + $0x78] sm:$0xff] }
 0x328   : > { %2422 = vst.msk [vmem:[#allocation3 + $0x58] sm:$0xff] %vm225_vm0, %v6122_v51  ;;  %2421 = vst.msk [vmem:[#allocation3 + $0x50] sm:$0xff] %vm225_vm0, %v6129_v40 }
 0x329   : > { %v4715_v54 = vpop.f32.mrb[12].mxu0 }
 0x32a   : > { %v2222_v52 = vadd.f32 %v4715_v54, %v6025_v58  ;;  %v2216_v57 = vpop.f32.mrb[13].mxu0 }
 0x32b   : > { %v2217_v55 = vadd.f32 %v6025_v58, %v2216_v57 }
 0x32c   : > { %v2328_v59 = vmax.f32 %v2222_v52, 0.0 }
 0x32d   : > { %v2327_v61 = vmax.f32 %v2217_v55, 0.0  ;;  %v2456_v60 = vld [vmem:[#allocation2 + $0x99] sm:$0xff] }
 0x32e   : > { %2360 = vst.msk [vmem:[#allocation2 + $0xb1] sm:$0xff] %vm225_vm0, %v2328_v59  ;;  %2533 = vrot.lane.b32.xlu1 %v2456_v60, %s4843_s25  ;;  %v6137_v0 = vld [vmem:[#allocation2 + $0x91] sm:$0xff] }
 0x32f   : > { %v6139_v62 = vld [vmem:[#allocation2 + $0x98] sm:$0xff]  ;;  %2359 = vst.msk [vmem:[#allocation2 + $0xa9] sm:$0xff] %vm225_vm0, %v2327_v61  ;;  %2531 = vrot.lane.b32.xlu0 %v6137_v0, %s4843_s25  ;;  %v6146_v2 = vld [vmem:[#allocation2 + $0x90] sm:$0xff] }
 0x330   : > { %2424 = vst.msk [vmem:[#allocation3 + $0x68] sm:$0xff] %vm225_vm0, %v6139_v62  ;;  %2423 = vst.msk [vmem:[#allocation3 + $0x60] sm:$0xff] %vm225_vm0, %v6146_v2 }
 0x331   : > { %v4718_v1 = vpop.f32.mrb[14].mxu0 }
 0x332   : > { %v2232_v4 = vadd.f32 %v4718_v1, %v6025_v58  ;;  %v2226_v3 = vpop.f32.mrb[15].mxu0 }
 0x333   : > { %v2227_v6 = vadd.f32 %v6025_v58, %v2226_v3 }
 0x334   : > { %v2330_v5 = vmax.f32 %v2232_v4, 0.0 }
 0x335   : > { %v2329_v8 = vmax.f32 %v2227_v6, 0.0  ;;  %v2458_v7 = vld [vmem:[#allocation2 + $0xb1] sm:$0xff] }
 0x336   : > { %2362 = vst.msk [vmem:[#allocation2 + $0xc9] sm:$0xff] %vm225_vm0, %v2330_v5  ;;  %2537 = vrot.lane.b32.xlu1 %v2458_v7, %s4843_s25  ;;  %v2457_v11 = vld [vmem:[#allocation2 + $0xa9] sm:$0xff] }
 0x337   : > { %v6154_v9 = vld [vmem:[#allocation2 + $0xb0] sm:$0xff]  ;;  %2361 = vst.msk [vmem:[#allocation2 + $0xc1] sm:$0xff] %vm225_vm0, %v2329_v8  ;;  %2535 = vrot.lane.b32.xlu0 %v2457_v11, %s4843_s25  ;;  %v6160_v16 = vld [vmem:[#allocation2 + $0xa8] sm:$0xff] }
 0x338   : > { %2426 = vst.msk [vmem:[#allocation3 + $0x78] sm:$0xff] %vm225_vm0, %v6154_v9  ;;  %2425 = vst.msk [vmem:[#allocation3 + $0x70] sm:$0xff] %vm225_vm0, %v6160_v16 }
 0x339   : > { %v4721_v42 = vpop.f32.mrb[16].mxu0 }
 0x33a   : > { %v2242_v23 = vadd.f32 %v4721_v42, %v6025_v58  ;;  %v2236_v28 = vpop.f32.mrb[17].mxu0 }
 0x33b   : > { %v2237_v43 = vadd.f32 %v6025_v58, %v2236_v28 }
 0x33c   : > { %v2332_v20 = vmax.f32 %v2242_v23, 0.0 }
 0x33d   : > { %v2331_v36 = vmax.f32 %v2237_v43, 0.0  ;;  %v2460_v50 = vld [vmem:[#allocation2 + $0xc9] sm:$0xff] }
 0x33e   : > { %2364 = vst.msk [vmem:[#allocation2 + $0xe1] sm:$0xff] %vm225_vm0, %v2332_v20  ;;  %2541 = vrot.lane.b32.xlu1 %v2460_v50, %s4843_s25  ;;  %v2459_v31 = vld [vmem:[#allocation2 + $0xc1] sm:$0xff] }
 0x33f   : > { %v6168_v53 = vld [vmem:[#allocation2 + $0xc8] sm:$0xff]  ;;  %2363 = vst.msk [vmem:[#allocation2 + $0xd9] sm:$0xff] %vm225_vm0, %v2331_v36  ;;  %2539 = vrot.lane.b32.xlu0 %v2459_v31, %s4843_s25  ;;  %v6174_v24 = vld [vmem:[#allocation2 + $0xc0] sm:$0xff] }
 0x340   : > { %2428 = vst.msk [vmem:[#allocation3 + $0x88] sm:$0xff] %vm225_vm0, %v6168_v53  ;;  %2427 = vst.msk [vmem:[#allocation3 + $0x80] sm:$0xff] %vm225_vm0, %v6174_v24 }
 0x341   : > { %v4724_v56 = vpop.f32.mrb[18].mxu0 }
 0x342   : > { %v2252_v33 = vadd.f32 %v4724_v56, %v6025_v58  ;;  %v2246_v17 = vpop.f32.mrb[19].mxu0 }
 0x343   : > { %v2247_v18 = vadd.f32 %v6025_v58, %v2246_v17 }
 0x344   : > { %v2334_v21 = vmax.f32 %v2252_v33, 0.0 }
 0x345   : > { %v2333_v48 = vmax.f32 %v2247_v18, 0.0  ;;  %v2462_v22 = vld [vmem:[#allocation2 + $0xe1] sm:$0xff] }
 0x346   : > { %2366 = vst.msk [vmem:[#allocation2 + $0xf9] sm:$0xff] %vm225_vm0, %v2334_v21  ;;  %2545 = vrot.lane.b32.xlu1 %v2462_v22, %s4843_s25  ;;  %v2461_v46 = vld [vmem:[#allocation2 + $0xd9] sm:$0xff] }
 0x347   : > { %v6182_v35 = vld [vmem:[#allocation2 + $0xe0] sm:$0xff]  ;;  %2365 = vst.msk [vmem:[#allocation2 + $0xf1] sm:$0xff] %vm225_vm0, %v2333_v48  ;;  %2543 = vrot.lane.b32.xlu0 %v2461_v46, %s4843_s25  ;;  %v6188_v30 = vld [vmem:[#allocation2 + $0xd8] sm:$0xff] }
 0x348   : > { %2430 = vst.msk [vmem:[#allocation3 + $0x98] sm:$0xff] %vm225_vm0, %v6182_v35  ;;  %2429 = vst.msk [vmem:[#allocation3 + $0x90] sm:$0xff] %vm225_vm0, %v6188_v30 }
 0x349   : > { %v4727_v34 = vpop.f32.mrb[20].mxu0 }
 0x34a   : > { %v2262_v32 = vadd.f32 %v4727_v34, %v6025_v58  ;;  %v2256_v38 = vpop.f32.mrb[21].mxu0 }
 0x34b   : > { %v2257_v54 = vadd.f32 %v6025_v58, %v2256_v38 }
 0x34c   : > { %v2336_v52 = vmax.f32 %v2262_v32, 0.0 }
 0x34d   : > { %v2335_v57 = vmax.f32 %v2257_v54, 0.0  ;;  %v2464_v55 = vld [vmem:[#allocation2 + $0xf9] sm:$0xff] }
 0x34e   : > { %2368 = vst.msk [vmem:[#allocation2 + $0x111] sm:$0xff] %vm225_vm0, %v2336_v52  ;;  %2549 = vrot.lane.b32.xlu1 %v2464_v55, %s4843_s25  ;;  %v2463_v59 = vld [vmem:[#allocation2 + $0xf1] sm:$0xff] }
 0x34f   : > { %v6196_v61 = vld [vmem:[#allocation2 + $0xf8] sm:$0xff]  ;;  %2367 = vst.msk [vmem:[#allocation2 + $0x109] sm:$0xff] %vm225_vm0, %v2335_v57  ;;  %2547 = vrot.lane.b32.xlu0 %v2463_v59, %s4843_s25  ;;  %v6202_v60 = vld [vmem:[#allocation2 + $0xf0] sm:$0xff] }
 0x350   : > { %2432 = vst.msk [vmem:[#allocation3 + $0xa8] sm:$0xff] %vm225_vm0, %v6196_v61  ;;  %2431 = vst.msk [vmem:[#allocation3 + $0xa0] sm:$0xff] %vm225_vm0, %v6202_v60 }
 0x351   : > { %v4730_v1 = vpop.f32.mrb[22].mxu0 }
 0x352   : > { %v2272_v4 = vadd.f32 %v4730_v1, %v6025_v58  ;;  %v2266_v3 = vpop.f32.mrb[23].mxu0 }
 0x353   : > { %v2267_v6 = vadd.f32 %v6025_v58, %v2266_v3 }
 0x354   : > { %v2338_v5 = vmax.f32 %v2272_v4, 0.0 }
 0x355   : > { %v2337_v8 = vmax.f32 %v2267_v6, 0.0  ;;  %v2466_v7 = vld [vmem:[#allocation2 + $0x111] sm:$0xff] }
 0x356   : > { %2370 = vst.msk [vmem:[#allocation2 + $0x129] sm:$0xff] %vm225_vm0, %v2338_v5  ;;  %2553 = vrot.lane.b32.xlu1 %v2466_v7, %s4843_s25  ;;  %v2465_v11 = vld [vmem:[#allocation2 + $0x109] sm:$0xff] }
 0x357   : > { %v6210_v42 = vld [vmem:[#allocation2 + $0x110] sm:$0xff]  ;;  %2369 = vst.msk [vmem:[#allocation2 + $0x121] sm:$0xff] %vm225_vm0, %v2337_v8  ;;  %2551 = vrot.lane.b32.xlu0 %v2465_v11, %s4843_s25  ;;  %v6216_v23 = vld [vmem:[#allocation2 + $0x108] sm:$0xff] }
 0x358   : > { %2434 = vst.msk [vmem:[#allocation3 + $0xb8] sm:$0xff] %vm225_vm0, %v6210_v42  ;;  %2433 = vst.msk [vmem:[#allocation3 + $0xb0] sm:$0xff] %vm225_vm0, %v6216_v23 }
 0x359   : > { %v4733_v28 = vpop.f32.mrb[24].mxu0 }
 0x35a   : > { %v2282_v43 = vadd.f32 %v4733_v28, %v6025_v58  ;;  %v2276_v20 = vpop.f32.mrb[25].mxu0 }
 0x35b   : > { %v2277_v36 = vadd.f32 %v6025_v58, %v2276_v20 }
 0x35c   : > { %v2340_v50 = vmax.f32 %v2282_v43, 0.0 }
 0x35d   : > { %v2339_v31 = vmax.f32 %v2277_v36, 0.0  ;;  %v2468_v56 = vld [vmem:[#allocation2 + $0x129] sm:$0xff] }
 0x35e   : > { %2372 = vst.msk [vmem:[#allocation2 + $0x141] sm:$0xff] %vm225_vm0, %v2340_v50  ;;  %2557 = vrot.lane.b32.xlu1 %v2468_v56, %s4843_s25  ;;  %v2467_v33 = vld [vmem:[#allocation2 + $0x121] sm:$0xff]  ;;  %v2636_v36 = vld [vmem:[#allocation2 + $0xa] sm:$0xff] }
 0x35f   : > { %v6224_v17 = vld [vmem:[#allocation2 + $0x128] sm:$0xff]  ;;  %2371 = vst.msk [vmem:[#allocation2 + $0x139] sm:$0xff] %vm225_vm0, %v2339_v31  ;;  %2555 = vrot.lane.b32.xlu0 %v2467_v33, %s4843_s25  ;;  %v6230_v18 = vld [vmem:[#allocation2 + $0x120] sm:$0xff] }
 0x360   : > { %2436 = vst.msk [vmem:[#allocation3 + $0xc8] sm:$0xff] %vm225_vm0, %v6224_v17  ;;  %2435 = vst.msk [vmem:[#allocation3 + $0xc0] sm:$0xff] %vm225_vm0, %v6230_v18  ;;  %v2635_v56 = vld [vmem:[#allocation2 + $0x2] sm:$0xff] }
 0x361   : > { %v4736_v21 = vpop.f32.mrb[26].mxu0 }
 0x362   : > { %v2292_v48 = vadd.f32 %v4736_v21, %v6025_v58  ;;  %v2286_v22 = vpop.f32.mrb[27].mxu0  ;;  %v6258_v21 = vld [vmem:[#allocation2 + $0x22] sm:$0xff] }
 0x363   : > { %v2287_v46 = vadd.f32 %v6025_v58, %v2286_v22 }
 0x364   : > { %v2342_v34 = vmax.f32 %v2292_v48, 0.0  ;;  %v6262_v48 = vld [vmem:[#allocation2 + $0x1a] sm:$0xff] }
 0x365   : > { %v2341_v32 = vmax.f32 %v2287_v46, 0.0  ;;  %v2470_v38 = vld [vmem:[#allocation2 + $0x141] sm:$0xff] }
 0x366   : > { %2374 = vst.msk [vmem:[#allocation2 + $0x159] sm:$0xff] %vm225_vm0, %v2342_v34  ;;  %2561 = vrot.lane.b32.xlu1 %v2470_v38, %s4843_s25  ;;  %v2469_v54 = vld [vmem:[#allocation2 + $0x139] sm:$0xff] }
 0x367   : > { %v2406_v52 = vld [vmem:[#allocation2 + $0x140] sm:$0xff]  ;;  %2373 = vst.msk [vmem:[#allocation2 + $0x151] sm:$0xff] %vm225_vm0, %v2341_v32  ;;  %2559 = vrot.lane.b32.xlu0 %v2469_v54, %s4843_s25  ;;  %v2405_v57 = vld [vmem:[#allocation2 + $0x138] sm:$0xff]  ;;  %v6280_v54 = vld [vmem:[#allocation2 + $0x4a] sm:$0xff] }
 0x368   : > { %2438 = vst.msk [vmem:[#allocation3 + $0xd8] sm:$0xff] %vm225_vm0, %v2406_v52  ;;  %2437 = vst.msk [vmem:[#allocation3 + $0xd0] sm:$0xff] %vm225_vm0, %v2405_v57  ;;  %v6267_v34 = vld [vmem:[#allocation2 + $0x3a] sm:$0xff]  ;;  %v6272_v32 = vld [vmem:[#allocation2 + $0x32] sm:$0xff] }
 0x369   : > { %v4739_v55 = vpop.f32.mrb[28].mxu0  ;;  %v6276_v38 = vld [vmem:[#allocation2 + $0x52] sm:$0xff] }
 0x36a   : > { %v2302_v59 = vadd.f32 %v4739_v55, %v6025_v58  ;;  %v2296_v1 = vpop.f32.mrb[29].mxu0  ;;  %v6285_v55 = vld [vmem:[#allocation2 + $0x6a] sm:$0xff] }
 0x36b   : > { %v2297_v4 = vadd.f32 %v6025_v58, %v2296_v1  ;;  %v6294_v1 = vld [vmem:[#allocation2 + $0x82] sm:$0xff] }
 0x36c   : > { %v2344_v3 = vmax.f32 %v2302_v59, 0.0  ;;  %v6290_v59 = vld [vmem:[#allocation2 + $0x62] sm:$0xff] }
 0x36d   : > { %v2343_v6 = vmax.f32 %v2297_v4, 0.0  ;;  %v2472_v5 = vld [vmem:[#allocation2 + $0x159] sm:$0xff] }
 0x36e   : > { %2376 = vst.msk [vmem:[#allocation2 + $0x171] sm:$0xff] %vm225_vm0, %v2344_v3  ;;  %2565 = vrot.lane.b32.xlu1 %v2472_v5, %s4843_s25  ;;  %v2471_v8 = vld [vmem:[#allocation2 + $0x151] sm:$0xff]  ;;  %v6298_v4 = vld [vmem:[#allocation2 + $0x7a] sm:$0xff] }
 0x36f   : > { %v2408_v7 = vld [vmem:[#allocation2 + $0x158] sm:$0xff]  ;;  %2375 = vst.msk [vmem:[#allocation2 + $0x169] sm:$0xff] %vm225_vm0, %v2343_v6  ;;  %2563 = vrot.lane.b32.xlu0 %v2471_v8, %s4843_s25  ;;  %v2407_v11 = vld [vmem:[#allocation2 + $0x150] sm:$0xff] }
 0x370   : > { %2440 = vst.msk [vmem:[#allocation3 + $0xe8] sm:$0xff] %vm225_vm0, %v2408_v7  ;;  %2439 = vst.msk [vmem:[#allocation3 + $0xe0] sm:$0xff] %vm225_vm0, %v2407_v11  ;;  %v6303_v5 = vld [vmem:[#allocation2 + $0x9a] sm:$0xff]  ;;  %v6308_v8 = vld [vmem:[#allocation2 + $0x92] sm:$0xff] }
 0x371   : > { %v6312_v7 = vld [vmem:[#allocation2 + $0xb2] sm:$0xff]  ;;  %v6316_v11 = vld [vmem:[#allocation2 + $0xaa] sm:$0xff] }
 0x375   : > { %v2474_v28 = vld [vmem:[#allocation2 + $0x171] sm:$0xff] }
 0x376   : > { %2569 = vrot.lane.b32.xlu1 %v2474_v28, %s4843_s25  ;;  %v2473_v43 = vld [vmem:[#allocation2 + $0x169] sm:$0xff] }
 0x377   : > { %v2410_v20 = vld [vmem:[#allocation2 + $0x170] sm:$0xff]  ;;  %2567 = vrot.lane.b32.xlu0 %v2473_v43, %s4843_s25  ;;  %v2409_v50 = vld [vmem:[#allocation2 + $0x168] sm:$0xff] }
 0x378   : > { %2442 = vst.msk [vmem:[#allocation3 + $0xf8] sm:$0xff] %vm225_vm0, %v2410_v20  ;;  %v2514_v31 = vpop.permute.xlu1 %2513  ;;  %2441 = vst.msk [vmem:[#allocation3 + $0xf0] sm:$0xff] %vm225_vm0, %v2409_v50  ;;  %v6321_v20 = vld [vmem:[#allocation2 + $0xca] sm:$0xff]  ;;  %v6330_v50 = vld [vmem:[#allocation2 + $0xe2] sm:$0xff] }
 0x379   : > { %2606 = vst.msk [vmem:[#allocation3 + $0x18] sm:$0xff] %vm560_vm3, %v2514_v31  ;;  %v2512_v33 = vpop.permute.xlu0 %2511  ;;  %v6334_v31 = vld [vmem:[#allocation2 + $0xda] sm:$0xff] }
 0x37a   : > { %2605 = vst.msk [vmem:[#allocation3 + $0x10] sm:$0xff] %vm560_vm3, %v2512_v33  ;;  %2701 = vrot.lane.b32.xlu1 %v2636_v36, %s4844_s26  ;;  %v6326_v36 = vld [vmem:[#allocation2 + $0xc2] sm:$0xff] }
 0x37b   : > { %2699 = vrot.lane.b32.xlu0 %v2635_v56, %s4844_s26 }
 0x37e   : > { %2705 = vrot.lane.b32.xlu1 %v6258_v21, %s4844_s26 }
 0x37f   : > { %2703 = vrot.lane.b32.xlu0 %v6262_v48, %s4844_s26 }
 0x380   : > { %v2518_v22 = vpop.permute.xlu1 %2517 }
 0x381   : > { %2608 = vst.msk [vmem:[#allocation3 + $0x28] sm:$0xff] %vm560_vm3, %v2518_v22  ;;  %v2516_v46 = vpop.permute.xlu0 %2515  ;;  %v2656_v22 = vld [vmem:[#allocation2 + $0xfa] sm:$0xff] }
 0x382   : > { %2607 = vst.msk [vmem:[#allocation3 + $0x20] sm:$0xff] %vm560_vm3, %v2516_v46  ;;  %2709 = vrot.lane.b32.xlu1 %v6267_v34, %s4844_s26  ;;  %v6341_v46 = vld [vmem:[#allocation2 + $0xf2] sm:$0xff] }
 0x383   : > { %2707 = vrot.lane.b32.xlu0 %v6272_v32, %s4844_s26 }
 0x386   : > { %2713 = vrot.lane.b32.xlu1 %v6276_v38, %s4844_s26 }
 0x387   : > { %2711 = vrot.lane.b32.xlu0 %v6280_v54, %s4844_s26 }
 0x388   : > { %v2522_v52 = vpop.permute.xlu1 %2521 }
 0x389   : > { %2610 = vst.msk [vmem:[#allocation3 + $0x38] sm:$0xff] %vm560_vm3, %v2522_v52  ;;  %v2520_v57 = vpop.permute.xlu0 %2519  ;;  %v2658_v52 = vld [vmem:[#allocation2 + $0x112] sm:$0xff] }
 0x38a   : > { %2609 = vst.msk [vmem:[#allocation3 + $0x30] sm:$0xff] %vm560_vm3, %v2520_v57  ;;  %2717 = vrot.lane.b32.xlu1 %v6285_v55, %s4844_s26  ;;  %v2657_v57 = vld [vmem:[#allocation2 + $0x10a] sm:$0xff] }
 0x38b   : > { %2715 = vrot.lane.b32.xlu0 %v6290_v59, %s4844_s26 }
 0x38e   : > { %2721 = vrot.lane.b32.xlu1 %v6294_v1, %s4844_s26 }
 0x38f   : > { %2719 = vrot.lane.b32.xlu0 %v6298_v4, %s4844_s26 }
 0x390   : > { %v2526_v3 = vpop.permute.xlu1 %2525 }
 0x391   : > { %2612 = vst.msk [vmem:[#allocation3 + $0x48] sm:$0xff] %vm560_vm3, %v2526_v3  ;;  %v2524_v6 = vpop.permute.xlu0 %2523 }
 0x392   : > { %2611 = vst.msk [vmem:[#allocation3 + $0x40] sm:$0xff] %vm560_vm3, %v2524_v6  ;;  %2725 = vrot.lane.b32.xlu1 %v6303_v5, %s4844_s26 }
 0x393   : > { %2723 = vrot.lane.b32.xlu0 %v6308_v8, %s4844_s26 }
 0x396   : > { %2729 = vrot.lane.b32.xlu1 %v6312_v7, %s4844_s26 }
 0x397   : > { %2727 = vrot.lane.b32.xlu0 %v6316_v11, %s4844_s26 }
 0x398   : > { %v2530_v28 = vpop.permute.xlu1 %2529 }
 0x399   : > { %2614 = vst.msk [vmem:[#allocation3 + $0x58] sm:$0xff] %vm560_vm3, %v2530_v28  ;;  %v2528_v43 = vpop.permute.xlu0 %2527  ;;  %v2660_v28 = vld [vmem:[#allocation2 + $0x12a] sm:$0xff] }
 0x39a   : > { %2613 = vst.msk [vmem:[#allocation3 + $0x50] sm:$0xff] %vm560_vm3, %v2528_v43  ;;  %2733 = vrot.lane.b32.xlu1 %v6321_v20, %s4844_s26  ;;  %v2659_v43 = vld [vmem:[#allocation2 + $0x122] sm:$0xff] }
 0x39b   : > { %2731 = vrot.lane.b32.xlu0 %v6326_v36, %s4844_s26 }
 0x39e   : > { %2737 = vrot.lane.b32.xlu1 %v6330_v50, %s4844_s26 }
 0x39f   : > { %2735 = vrot.lane.b32.xlu0 %v6334_v31, %s4844_s26 }
 0x3a0   : > { %v2534_v56 = vpop.permute.xlu1 %2533 }
 0x3a1   : > { %2616 = vst.msk [vmem:[#allocation3 + $0x68] sm:$0xff] %vm560_vm3, %v2534_v56  ;;  %v2532_v33 = vpop.permute.xlu0 %2531  ;;  %v2662_v56 = vld [vmem:[#allocation2 + $0x142] sm:$0xff] }
 0x3a2   : > { %2615 = vst.msk [vmem:[#allocation3 + $0x60] sm:$0xff] %vm560_vm3, %v2532_v33  ;;  %2741 = vrot.lane.b32.xlu1 %v2656_v22, %s4844_s26  ;;  %v2661_v33 = vld [vmem:[#allocation2 + $0x13a] sm:$0xff] }
 0x3a3   : > { %2739 = vrot.lane.b32.xlu0 %v6341_v46, %s4844_s26 }
 0x3a6   : > { %2745 = vrot.lane.b32.xlu1 %v2658_v52, %s4844_s26 }
 0x3a7   : > { %2743 = vrot.lane.b32.xlu0 %v2657_v57, %s4844_s26  ;;  %v2664_v57 = vld [vmem:[#allocation2 + $0x15a] sm:$0xff] }
 0x3a8   : > { %v2538_v3 = vpop.permute.xlu1 %2537 }
 0x3a9   : > { %2618 = vst.msk [vmem:[#allocation3 + $0x78] sm:$0xff] %vm560_vm3, %v2538_v3  ;;  %v2536_v6 = vpop.permute.xlu0 %2535  ;;  %v2663_v3 = vld [vmem:[#allocation2 + $0x152] sm:$0xff] }
 0x3aa   : > { %2617 = vst.msk [vmem:[#allocation3 + $0x70] sm:$0xff] %vm560_vm3, %v2536_v6  ;;  %2749 = vrot.lane.b32.xlu1 %v2660_v28, %s4844_s26  ;;  %v2666_v6 = vld [vmem:[#allocation2 + $0x172] sm:$0xff]  ;;  %v2665_v28 = vld [vmem:[#allocation2 + $0x16a] sm:$0xff] }
 0x3ab   : > { %2747 = vrot.lane.b32.xlu0 %v2659_v43, %s4844_s26 }
 0x3ae   : > { %2753 = vrot.lane.b32.xlu1 %v2662_v56, %s4844_s26 }
 0x3af   : > { %2751 = vrot.lane.b32.xlu0 %v2661_v33, %s4844_s26 }
 0x3b0   : > { %v2542_v22 = vpop.permute.xlu1 %2541 }
 0x3b1   : > { %2620 = vst.msk [vmem:[#allocation3 + $0x88] sm:$0xff] %vm560_vm3, %v2542_v22  ;;  %v2540_v52 = vpop.permute.xlu0 %2539 }
 0x3b2   : > { %2619 = vst.msk [vmem:[#allocation3 + $0x80] sm:$0xff] %vm560_vm3, %v2540_v52  ;;  %2757 = vrot.lane.b32.xlu1 %v2664_v57, %s4844_s26 }
 0x3b3   : > { %2755 = vrot.lane.b32.xlu0 %v2663_v3, %s4844_s26 }
 0x3b6   : > { %2761 = vrot.lane.b32.xlu1 %v2666_v6, %s4844_s26 }
 0x3b7   : > { %2759 = vrot.lane.b32.xlu0 %v2665_v28, %s4844_s26 }
 0x3b8   : > { %v2546_v43 = vpop.permute.xlu1 %2545 }
 0x3b9   : > { %2622 = vst.msk [vmem:[#allocation3 + $0x98] sm:$0xff] %vm560_vm3, %v2546_v43  ;;  %v2544_v56 = vpop.permute.xlu0 %2543 }
 0x3ba   : > { %2621 = vst.msk [vmem:[#allocation3 + $0x90] sm:$0xff] %vm560_vm3, %v2544_v56  ;;  %2893 = vrot.lane.b32.xlu1 %v6042_v19, %s4845_s27  ;;  %v4011_v56 = vld [vmem:[%s7087_s3] sm:$0xff] }
 0x3bb   : > { %2891 = vrot.lane.b32.xlu0 %v6044_v41, %s4845_s27 }
 0x3be   : > { %2897 = vrot.lane.b32.xlu1 %v6062_v47, %s4845_s27 }
 0x3bf   : > { %2895 = vrot.lane.b32.xlu0 %v6064_v27, %s4845_s27 }
 0x3c0   : > { %v2550_v33 = vpop.permute.xlu1 %2549 }
 0x3c1   : > { %2624 = vst.msk [vmem:[#allocation3 + $0xa8] sm:$0xff] %vm560_vm3, %v2550_v33  ;;  %v2548_v22 = vpop.permute.xlu0 %2547  ;;  %v4014_v33 = vld [vmem:[%s7087_s3 + $0x18] sm:$0xff] }
 0x3c2   : > { %2623 = vst.msk [vmem:[#allocation3 + $0xa0] sm:$0xff] %vm560_vm3, %v2548_v22  ;;  %2901 = vrot.lane.b32.xlu1 %v6082_v13, %s4845_s27 }
 0x3c3   : > { %2899 = vrot.lane.b32.xlu0 %v6089_v14, %s4845_s27 }
 0x3c6   : > { %2905 = vrot.lane.b32.xlu1 %v6102_v29, %s4845_s27 }
 0x3c7   : > { %2903 = vrot.lane.b32.xlu0 %v6109_v25, %s4845_s27 }
 0x3c8   : > { %v2554_v19 = vpop.permute.xlu1 %2553 }
 0x3c9   : > { %2626 = vst.msk [vmem:[#allocation3 + $0xb8] sm:$0xff] %vm560_vm3, %v2554_v19  ;;  %v2552_v41 = vpop.permute.xlu0 %2551  ;;  %v4015_v19 = vld [vmem:[%s7087_s3 + $0x20] sm:$0xf] }
 0x3ca   : > { %2625 = vst.msk [vmem:[#allocation3 + $0xb0] sm:$0xff] %vm560_vm3, %v2552_v41  ;;  %2909 = vrot.lane.b32.xlu1 %v6122_v51, %s4845_s27 }
 0x3cb   : > { %2907 = vrot.lane.b32.xlu0 %v6129_v40, %s4845_s27 }
 0x3ce   : > { %2913 = vrot.lane.b32.xlu1 %v6139_v62, %s4845_s27 }
 0x3cf   : > { %2911 = vrot.lane.b32.xlu0 %v6146_v2, %s4845_s27 }
 0x3d0   : > { %v2558_v52 = vpop.permute.xlu1 %2557 }
 0x3d1   : > { %2628 = vst.msk [vmem:[#allocation3 + $0xc8] sm:$0xff] %vm560_vm3, %v2558_v52  ;;  %v2556_v57 = vpop.permute.xlu0 %2555 }
 0x3d2   : > { %2627 = vst.msk [vmem:[#allocation3 + $0xc0] sm:$0xff] %vm560_vm3, %v2556_v57  ;;  %2917 = vrot.lane.b32.xlu1 %v6154_v9, %s4845_s27 }
 0x3d3   : > { %2915 = vrot.lane.b32.xlu0 %v6160_v16, %s4845_s27 }
 0x3d6   : > { %2921 = vrot.lane.b32.xlu1 %v6168_v53, %s4845_s27 }
 0x3d7   : > { %2919 = vrot.lane.b32.xlu0 %v6174_v24, %s4845_s27 }
 0x3d8   : > { %v2562_v3 = vpop.permute.xlu1 %2561 }
 0x3d9   : > { %2630 = vst.msk [vmem:[#allocation3 + $0xd8] sm:$0xff] %vm560_vm3, %v2562_v3  ;;  %v2560_v6 = vpop.permute.xlu0 %2559 }
 0x3da   : > { %2629 = vst.msk [vmem:[#allocation3 + $0xd0] sm:$0xff] %vm560_vm3, %v2560_v6  ;;  %3083 = vrot.lane.b32.xlu1 %v6040_v12, %s4846_s28  ;;  %v4012_v12 = vld [vmem:[%s7087_s3 + $0x8] sm:$0xff] }
 0x3db   : > { %2923 = vrot.lane.b32.xlu0 %v6188_v30, %s4845_s27 }
 0x3de   : > { %3275 = vrot.lane.b32.xlu1 %v6262_v48, %s4847_s29  ;;  %v4809_v48 = vpack.c.bf16 %v4012_v12, %v4011_v56  ;;  %v4742_v56 = vpop.f32.mrb[30].mxu0 }
 0x3df   : > { %3085 = vrot.lane.b32.xlu0 %v6035_v15, %s4846_s28  ;;  %v4013_v15 = vld [vmem:[%s7087_s3 + $0x10] sm:$0xff]  ;;  %v2306_v12 = vpop.f32.mrb[31].mxu0 }
 0x3e0   : > { %v2566_v28 = vpop.permute.xlu1 %2565  ;;  %4810 = vmatprep.subr.bf16.mxu1 %v4809_v48  ;;  %v4813_v22 = vpack.c.bf16 %v4014_v33, %v4013_v15 }
 0x3e1   : > { %2632 = vst.msk [vmem:[#allocation3 + $0xe8] sm:$0xff] %vm560_vm3, %v2566_v28  ;;  %v2564_v43 = vpop.permute.xlu0 %2563  ;;  %4812 = vmatpush3.bf16.msra.mxu1 %v4809_v48 }
 0x3e2   : > { %2631 = vst.msk [vmem:[#allocation3 + $0xe0] sm:$0xff] %vm560_vm3, %v2564_v43  ;;  %3467 = vrot.lane.b32.xlu1 %v6064_v27, %s4848_s30  ;;  %4814 = vmatprep.subr.bf16.mxu1 %v4813_v22 }
 0x3e3   : > { %3277 = vrot.lane.b32.xlu0 %v6258_v21, %s4847_s29 }
 0x3e5   : > { %4816 = vmatpush3.bf16.msra.mxu1 %v4813_v22 }
 0x3e6   : > { %3659 = vrot.lane.b32.xlu1 %v6060_v44, %s4849_s14  ;;  %4751 = vmatprep.subr.msk.mxu1 %vm2086_vm8, %v4015_v19 }
 0x3e7   : > { %3469 = vrot.lane.b32.xlu0 %v6062_v47, %s4848_s30 }
 0x3e8   : > { %v2570_v27 = vpop.permute.xlu1 %2569 }
 0x3e9   : > { %2634 = vst.msk [vmem:[#allocation3 + $0xf8] sm:$0xff] %vm560_vm3, %v2570_v27  ;;  %v2568_v21 = vpop.permute.xlu0 %2567  ;;  %4752 = vmatpush3.msk.msra.mxu1 %vm2086_vm8, %v4015_v19 }
 0x3ea   : > { %2633 = vst.msk [vmem:[#allocation3 + $0xf0] sm:$0xff] %vm560_vm3, %v2568_v21  ;;  %3661 = vrot.lane.b32.xlu1 %v6055_v26, %s4849_s14 }
 0x3eb   : > { %3087 = vrot.lane.b32.xlu0 %v6060_v44, %s4846_s28 }
 0x3ec   : > { %v2702_v47 = vpop.permute.xlu1 %2701 }
 0x3ed   : > { %2796 = vst.msk [vmem:[#allocation3 + $0x8] sm:$0xff] %vm753_vm4, %v2702_v47  ;;  %v2700_v41 = vpop.permute.xlu0 %2699 }
 0x3ee   : > { %2795 = vst.msk [vmem:[#allocation3] sm:$0xff] %vm753_vm4, %v2700_v41  ;;  %3089 = vrot.lane.b32.xlu1 %v6055_v26, %s4846_s28 }
 0x3ef   : > { %3851 = vrot.lane.b32.xlu0 %v6272_v32, %s4850_s17 }
 0x3f0   : > { %v2706_v52 = vpop.permute.xlu1 %2705 }
 0x3f1   : > { %2798 = vst.msk [vmem:[#allocation3 + $0x18] sm:$0xff] %vm753_vm4, %v2706_v52  ;;  %v2704_v44 = vpop.permute.xlu0 %2703 }
 0x3f2   : > { %2797 = vst.msk [vmem:[#allocation3 + $0x10] sm:$0xff] %vm753_vm4, %v2704_v44  ;;  %3853 = vrot.lane.b32.xlu1 %v6267_v34, %s4850_s17 }
 0x3f3   : > { %3279 = vrot.lane.b32.xlu0 %v6272_v32, %s4847_s29 }
 0x3f4   : > { %v2710_v57 = vpop.permute.xlu1 %2709 }
 0x3f5   : > { %2800 = vst.msk [vmem:[#allocation3 + $0x28] sm:$0xff] %vm753_vm4, %v2710_v57  ;;  %v2708_v3 = vpop.permute.xlu0 %2707 }
 0x3f6   : > { %2799 = vst.msk [vmem:[#allocation3 + $0x20] sm:$0xff] %vm753_vm4, %v2708_v3  ;;  %3471 = vrot.lane.b32.xlu1 %v6089_v14, %s4848_s30 }
 0x3f7   : > { %3281 = vrot.lane.b32.xlu0 %v6267_v34, %s4847_s29 }
 0x3f8   : > { %v2714_v26 = vpop.permute.xlu1 %2713 }
 0x3f9   : > { %2802 = vst.msk [vmem:[#allocation3 + $0x38] sm:$0xff] %vm753_vm4, %v2714_v26  ;;  %v2712_v6 = vpop.permute.xlu0 %2711 }
 0x3fa   : > { %2801 = vst.msk [vmem:[#allocation3 + $0x30] sm:$0xff] %vm753_vm4, %v2712_v6  ;;  %3663 = vrot.lane.b32.xlu1 %v6080_v10, %s4849_s14 }
 0x3fb   : > { %3473 = vrot.lane.b32.xlu0 %v6082_v13, %s4848_s30 }
 0x3fc   : > { %v2718_v32 = vpop.permute.xlu1 %2717 }
 0x3fd   : > { %2804 = vst.msk [vmem:[#allocation3 + $0x48] sm:$0xff] %vm753_vm4, %v2718_v32  ;;  %v2716_v28 = vpop.permute.xlu0 %2715 }
 0x3fe   : > { %2803 = vst.msk [vmem:[#allocation3 + $0x40] sm:$0xff] %vm753_vm4, %v2716_v28  ;;  %3665 = vrot.lane.b32.xlu1 %v6075_v63, %s4849_s14 }
 0x3ff   : > { %3091 = vrot.lane.b32.xlu0 %v6080_v10, %s4846_s28  ;;  %v2312_v10 = vadd.f32 %v4742_v56, %v6025_v58 }
 0x400   : > { %v2722_v14 = vpop.permute.xlu1 %2721 }
 0x401   : > { %2806 = vst.msk [vmem:[#allocation3 + $0x58] sm:$0xff] %vm753_vm4, %v2722_v14  ;;  %v2720_v34 = vpop.permute.xlu0 %2719  ;;  %v2346_v15 = vmax.f32 %v2312_v10, 0.0 }
 0x402   : > { %2805 = vst.msk [vmem:[#allocation3 + $0x50] sm:$0xff] %vm753_vm4, %v2720_v34  ;;  %3093 = vrot.lane.b32.xlu1 %v6075_v63, %s4846_s28  ;;  %v2307_v63 = vadd.f32 %v6025_v58, %v2306_v12 }
 0x403   : > { %3855 = vrot.lane.b32.xlu0 %v6280_v54, %s4850_s17  ;;  %2378 = vst.msk [vmem:[#allocation2 + $0x189] sm:$0xff] %vm225_vm0, %v2346_v15 }
 0x404   : > { %v2726_v13 = vpop.permute.xlu1 %2725  ;;  %v2345_v22 = vmax.f32 %v2307_v63, 0.0 }
 0x405   : > { %2808 = vst.msk [vmem:[#allocation3 + $0x68] sm:$0xff] %vm753_vm4, %v2726_v13  ;;  %v2724_v43 = vpop.permute.xlu0 %2723 }
 0x406   : > { %2807 = vst.msk [vmem:[#allocation3 + $0x60] sm:$0xff] %vm753_vm4, %v2724_v43  ;;  %3857 = vrot.lane.b32.xlu1 %v6276_v38, %s4850_s17  ;;  %v3605_v43 = vld [vmem:[#allocation2 + $0xa9] sm:$0xff] }
 0x407   : > { %3283 = vrot.lane.b32.xlu0 %v6280_v54, %s4847_s29  ;;  %2377 = vst.msk [vmem:[#allocation2 + $0x181] sm:$0xff] %vm225_vm0, %v2345_v22  ;;  %v3607_v22 = vld [vmem:[#allocation2 + $0xc1] sm:$0xff] }
 0x408   : > { %v2730_v48 = vpop.permute.xlu1 %2729 }
 0x409   : > { %2810 = vst.msk [vmem:[#allocation3 + $0x78] sm:$0xff] %vm753_vm4, %v2730_v48  ;;  %v2728_v33 = vpop.permute.xlu0 %2727 }
 0x40a   : > { %2809 = vst.msk [vmem:[#allocation3 + $0x70] sm:$0xff] %vm753_vm4, %v2728_v33  ;;  %3475 = vrot.lane.b32.xlu1 %v6109_v25, %s4848_s30 }
 0x40b   : > { %3285 = vrot.lane.b32.xlu0 %v6276_v38, %s4847_s29 }
 0x40c   : > { %v2734_v54 = vpop.permute.xlu1 %2733 }
 0x40d   : > { %2812 = vst.msk [vmem:[#allocation3 + $0x88] sm:$0xff] %vm753_vm4, %v2734_v54  ;;  %v2732_v58 = vpop.permute.xlu0 %2731 }
 0x40e   : > { %2811 = vst.msk [vmem:[#allocation3 + $0x80] sm:$0xff] %vm753_vm4, %v2732_v58  ;;  %3667 = vrot.lane.b32.xlu1 %v6100_v45, %s4849_s14 }
 0x40f   : > { %3477 = vrot.lane.b32.xlu0 %v6102_v29, %s4848_s30 }
 0x410   : > { %v2738_v25 = vpop.permute.xlu1 %2737 }
 0x411   : > { %2814 = vst.msk [vmem:[#allocation3 + $0x98] sm:$0xff] %vm753_vm4, %v2738_v25  ;;  %v2736_v27 = vpop.permute.xlu0 %2735 }
 0x412   : > { %2813 = vst.msk [vmem:[#allocation3 + $0x90] sm:$0xff] %vm753_vm4, %v2736_v27  ;;  %3669 = vrot.lane.b32.xlu1 %v6095_v49, %s4849_s14 }
 0x413   : > { %3095 = vrot.lane.b32.xlu0 %v6100_v45, %s4846_s28 }
 0x414   : > { %v2742_v38 = vpop.permute.xlu1 %2741 }
 0x415   : > { %2816 = vst.msk [vmem:[#allocation3 + $0xa8] sm:$0xff] %vm753_vm4, %v2742_v38  ;;  %v2740_v21 = vpop.permute.xlu0 %2739 }
 0x416   : > { %2815 = vst.msk [vmem:[#allocation3 + $0xa0] sm:$0xff] %vm753_vm4, %v2740_v21  ;;  %3097 = vrot.lane.b32.xlu1 %v6095_v49, %s4846_s28 }
 0x417   : > { %3859 = vrot.lane.b32.xlu0 %v6290_v59, %s4850_s17 }
 0x418   : > { %v2746_v29 = vpop.permute.xlu1 %2745 }
 0x419   : > { %2818 = vst.msk [vmem:[#allocation3 + $0xb8] sm:$0xff] %vm753_vm4, %v2746_v29  ;;  %v2744_v19 = vpop.permute.xlu0 %2743 }
 0x41a   : > { %2817 = vst.msk [vmem:[#allocation3 + $0xb0] sm:$0xff] %vm753_vm4, %v2744_v19  ;;  %3861 = vrot.lane.b32.xlu1 %v6285_v55, %s4850_s17 }
 0x41b   : > { %3287 = vrot.lane.b32.xlu0 %v6290_v59, %s4847_s29 }
 0x41c   : > { %v2750_v45 = vpop.permute.xlu1 %2749 }
 0x41d   : > { %2820 = vst.msk [vmem:[#allocation3 + $0xc8] sm:$0xff] %vm753_vm4, %v2750_v45  ;;  %v2748_v47 = vpop.permute.xlu0 %2747 }
 0x41e   : > { %2819 = vst.msk [vmem:[#allocation3 + $0xc0] sm:$0xff] %vm753_vm4, %v2748_v47  ;;  %3479 = vrot.lane.b32.xlu1 %v6129_v40, %s4848_s30 }
 0x41f   : > { %3289 = vrot.lane.b32.xlu0 %v6285_v55, %s4847_s29 }
 0x420   : > { %v2754_v49 = vpop.permute.xlu1 %2753 }
 0x421   : > { %2822 = vst.msk [vmem:[#allocation3 + $0xd8] sm:$0xff] %vm753_vm4, %v2754_v49  ;;  %v2752_v41 = vpop.permute.xlu0 %2751 }
 0x422   : > { %2821 = vst.msk [vmem:[#allocation3 + $0xd0] sm:$0xff] %vm753_vm4, %v2752_v41  ;;  %3671 = vrot.lane.b32.xlu1 %v6120_v37, %s4849_s14  ;;  %v3610_v41 = vld [vmem:[#allocation2 + $0xe1] sm:$0xff] }
 0x423   : > { %3481 = vrot.lane.b32.xlu0 %v6122_v51, %s4848_s30 }
 0x424   : > { %v2758_v59 = vpop.permute.xlu1 %2757 }
 0x425   : > { %2824 = vst.msk [vmem:[#allocation3 + $0xe8] sm:$0xff] %vm753_vm4, %v2758_v59  ;;  %v2756_v52 = vpop.permute.xlu0 %2755 }
 0x426   : > { %2823 = vst.msk [vmem:[#allocation3 + $0xe0] sm:$0xff] %vm753_vm4, %v2756_v52  ;;  %3673 = vrot.lane.b32.xlu1 %v6115_v39, %s4849_s14 }
 0x427   : > { %3099 = vrot.lane.b32.xlu0 %v6120_v37, %s4846_s28 }
 0x428   : > { %v2762_v40 = vpop.permute.xlu1 %2761 }
 0x429   : > { %2826 = vst.msk [vmem:[#allocation3 + $0xf8] sm:$0xff] %vm753_vm4, %v2762_v40  ;;  %v2760_v55 = vpop.permute.xlu0 %2759 }
 0x42a   : > { %2825 = vst.msk [vmem:[#allocation3 + $0xf0] sm:$0xff] %vm753_vm4, %v2760_v55  ;;  %3101 = vrot.lane.b32.xlu1 %v6115_v39, %s4846_s28 }
 0x42b   : > { %3863 = vrot.lane.b32.xlu0 %v6298_v4, %s4850_s17 }
 0x42c   : > { %v2894_v51 = vpop.permute.xlu1 %2893 }
 0x42d   : > { %2988 = vst.msk [vmem:[#allocation3 + $0x8] sm:$0xff] %vm946_vm5, %v2894_v51  ;;  %v2892_v44 = vpop.permute.xlu0 %2891 }
 0x42e   : > { %2987 = vst.msk [vmem:[#allocation3] sm:$0xff] %vm946_vm5, %v2892_v44  ;;  %3865 = vrot.lane.b32.xlu1 %v6294_v1, %s4850_s17 }
 0x42f   : > { %3291 = vrot.lane.b32.xlu0 %v6298_v4, %s4847_s29 }
 0x430   : > { %v2898_v37 = vpop.permute.xlu1 %2897 }
 0x431   : > { %2990 = vst.msk [vmem:[#allocation3 + $0x18] sm:$0xff] %vm946_vm5, %v2898_v37  ;;  %v2896_v57 = vpop.permute.xlu0 %2895 }
 0x432   : > { %2989 = vst.msk [vmem:[#allocation3 + $0x10] sm:$0xff] %vm946_vm5, %v2896_v57  ;;  %3483 = vrot.lane.b32.xlu1 %v6146_v2, %s4848_s30  ;;  %v3604_v2 = vld [vmem:[#allocation2 + $0x99] sm:$0xff] }
 0x433   : > { %3293 = vrot.lane.b32.xlu0 %v6294_v1, %s4847_s29  ;;  %v3029_v1 = vld [vmem:[#allocation2 + $0x91] sm:$0xff] }
 0x434   : > { %v2902_v39 = vpop.permute.xlu1 %2901 }
 0x435   : > { %2992 = vst.msk [vmem:[#allocation3 + $0x28] sm:$0xff] %vm946_vm5, %v2902_v39  ;;  %v2900_v3 = vpop.permute.xlu0 %2899  ;;  %v3611_v39 = vld [vmem:[#allocation2 + $0xf1] sm:$0xff] }
 0x436   : > { %2991 = vst.msk [vmem:[#allocation3 + $0x20] sm:$0xff] %vm946_vm5, %v2900_v3  ;;  %3675 = vrot.lane.b32.xlu1 %v6137_v0, %s4849_s14 }
 0x437   : > { %3485 = vrot.lane.b32.xlu0 %v6139_v62, %s4848_s30 }
 0x438   : > { %v2906_v4 = vpop.permute.xlu1 %2905 }
 0x439   : > { %2994 = vst.msk [vmem:[#allocation3 + $0x38] sm:$0xff] %vm946_vm5, %v2906_v4  ;;  %v2904_v26 = vpop.permute.xlu0 %2903 }
 0x43a   : > { %2993 = vst.msk [vmem:[#allocation3 + $0x30] sm:$0xff] %vm946_vm5, %v2904_v26  ;;  %3677 = vrot.lane.b32.xlu1 %v3604_v2, %s4849_s14 }
 0x43b   : > { %3103 = vrot.lane.b32.xlu0 %v3029_v1, %s4846_s28 }
 0x43c   : > { %v2910_v6 = vpop.permute.xlu1 %2909 }
 0x43d   : > { %2996 = vst.msk [vmem:[#allocation3 + $0x48] sm:$0xff] %vm946_vm5, %v2910_v6  ;;  %v2908_v32 = vpop.permute.xlu0 %2907 }
 0x43e   : > { %2995 = vst.msk [vmem:[#allocation3 + $0x40] sm:$0xff] %vm946_vm5, %v2908_v32  ;;  %3105 = vrot.lane.b32.xlu1 %v3604_v2, %s4846_s28  ;;  %v3612_v2 = vld [vmem:[#allocation2 + $0xf9] sm:$0xff] }
 0x43f   : > { %3867 = vrot.lane.b32.xlu0 %v6308_v8, %s4850_s17  ;;  %v3229_v32 = vld [vmem:[#allocation2 + $0xf2] sm:$0xff] }
 0x440   : > { %v2914_v0 = vpop.permute.xlu1 %2913 }
 0x441   : > { %2998 = vst.msk [vmem:[#allocation3 + $0x58] sm:$0xff] %vm946_vm5, %v2914_v0  ;;  %v2912_v62 = vpop.permute.xlu0 %2911 }
 0x442   : > { %2997 = vst.msk [vmem:[#allocation3 + $0x50] sm:$0xff] %vm946_vm5, %v2912_v62  ;;  %3869 = vrot.lane.b32.xlu1 %v6303_v5, %s4850_s17  ;;  %v3230_v62 = vld [vmem:[#allocation2 + $0xfa] sm:$0xff] }
 0x443   : > { %3295 = vrot.lane.b32.xlu0 %v6308_v8, %s4847_s29 }
 0x444   : > { %v2918_v28 = vpop.permute.xlu1 %2917 }
 0x445   : > { %3000 = vst.msk [vmem:[#allocation3 + $0x68] sm:$0xff] %vm946_vm5, %v2918_v28  ;;  %v2916_v14 = vpop.permute.xlu0 %2915 }
 0x446   : > { %2999 = vst.msk [vmem:[#allocation3 + $0x60] sm:$0xff] %vm946_vm5, %v2916_v14  ;;  %3487 = vrot.lane.b32.xlu1 %v6160_v16, %s4848_s30  ;;  %v3606_v16 = vld [vmem:[#allocation2 + $0xb1] sm:$0xff] }
 0x447   : > { %3297 = vrot.lane.b32.xlu0 %v6303_v5, %s4847_s29 }
 0x448   : > { %v2922_v34 = vpop.permute.xlu1 %2921 }
 0x449   : > { %3002 = vst.msk [vmem:[#allocation3 + $0x78] sm:$0xff] %vm946_vm5, %v2922_v34  ;;  %v2920_v13 = vpop.permute.xlu0 %2919 }
 0x44a   : > { %3001 = vst.msk [vmem:[#allocation3 + $0x70] sm:$0xff] %vm946_vm5, %v2920_v13  ;;  %3679 = vrot.lane.b32.xlu1 %v3605_v43, %s4849_s14 }
 0x44b   : > { %3489 = vrot.lane.b32.xlu0 %v6154_v9, %s4848_s30 }
 0x44c   : > { %v3084_v8 = vpop.permute.xlu1 %3083 }
 0x44d   : > { %3179 = vst.msk [vmem:[#allocation3] sm:$0xff] %vm1139_vm6, %v3084_v8  ;;  %v2924_v56 = vpop.permute.xlu0 %2923 }
 0x44e   : > { %3003 = vst.msk [vmem:[#allocation3 + $0x80] sm:$0xff] %vm946_vm5, %v2924_v56  ;;  %3681 = vrot.lane.b32.xlu1 %v3606_v16, %s4849_s14 }
 0x44f   : > { %3107 = vrot.lane.b32.xlu0 %v3605_v43, %s4846_s28  ;;  %v3613_v43 = vld [vmem:[#allocation2 + $0x109] sm:$0xff] }
 0x450   : > { %v3276_v5 = vpop.permute.xlu1 %3275 }
 0x451   : > { %3371 = vst.msk [vmem:[#allocation3] sm:$0xff] %vm1332_vm7, %v3276_v5  ;;  %v3086_v10 = vpop.permute.xlu0 %3085 }
 0x452   : > { %3180 = vst.msk [vmem:[#allocation3 + $0x8] sm:$0xff] %vm1139_vm6, %v3086_v10  ;;  %3109 = vrot.lane.b32.xlu1 %v3606_v16, %s4846_s28 }
 0x453   : > { %3871 = vrot.lane.b32.xlu0 %v6316_v11, %s4850_s17 }
 0x454   : > { %v3468_v9 = vpop.permute.xlu1 %3467 }
 0x455   : > { %3563 = vst.msk [vmem:[#allocation3] sm:$0xff] %vm1526_vm9, %v3468_v9  ;;  %v3278_v12 = vpop.permute.xlu0 %3277  ;;  %v3805_v9 = vld [vmem:[#allocation2 + $0x10a] sm:$0xff] }
 0x456   : > { %3372 = vst.msk [vmem:[#allocation3 + $0x8] sm:$0xff] %vm1332_vm7, %v3278_v12  ;;  %3873 = vrot.lane.b32.xlu1 %v6312_v7, %s4850_s17  ;;  %v3614_v12 = vld [vmem:[#allocation2 + $0x111] sm:$0xff] }
 0x457   : > { %3299 = vrot.lane.b32.xlu0 %v6316_v11, %s4847_s29 }
 0x458   : > { %v3660_v63 = vpop.permute.xlu1 %3659 }
 0x459   : > { %3755 = vst.msk [vmem:[#allocation3] sm:$0xff] %vm1719_vm10, %v3660_v63  ;;  %v3470_v48 = vpop.permute.xlu0 %3469 }
 0x45a   : > { %3564 = vst.msk [vmem:[#allocation3 + $0x8] sm:$0xff] %vm1526_vm9, %v3470_v48  ;;  %3491 = vrot.lane.b32.xlu1 %v6174_v24, %s4848_s30  ;;  %v3608_v24 = vld [vmem:[#allocation2 + $0xc9] sm:$0xff] }
 0x45b   : > { %3301 = vrot.lane.b32.xlu0 %v6312_v7, %s4847_s29 }
 0x45c   : > { %v3662_v15 = vpop.permute.xlu1 %3661 }
 0x45d   : > { %3756 = vst.msk [vmem:[#allocation3 + $0x8] sm:$0xff] %vm1719_vm10, %v3662_v15  ;;  %v3088_v33 = vpop.permute.xlu0 %3087 }
 0x45e   : > { %3181 = vst.msk [vmem:[#allocation3 + $0x10] sm:$0xff] %vm1139_vm6, %v3088_v33  ;;  %3683 = vrot.lane.b32.xlu1 %v3607_v22, %s4849_s14  ;;  %v3232_v33 = vld [vmem:[#allocation2 + $0x112] sm:$0xff] }
 0x45f   : > { %3493 = vrot.lane.b32.xlu0 %v6168_v53, %s4848_s30 }
 0x460   : > { %v3090_v11 = vpop.permute.xlu1 %3089 }
 0x461   : > { %3182 = vst.msk [vmem:[#allocation3 + $0x18] sm:$0xff] %vm1139_vm6, %v3090_v11  ;;  %v3852_v54 = vpop.permute.xlu0 %3851 }
 0x462   : > { %3947 = vst.msk [vmem:[#allocation3] sm:$0xff] %vm1912_vm11, %v3852_v54  ;;  %3685 = vrot.lane.b32.xlu1 %v3608_v24, %s4849_s14 }
 0x463   : > { %3111 = vrot.lane.b32.xlu0 %v3607_v22, %s4846_s28 }
 0x464   : > { %v3854_v7 = vpop.permute.xlu1 %3853 }
 0x465   : > { %3948 = vst.msk [vmem:[#allocation3 + $0x8] sm:$0xff] %vm1912_vm11, %v3854_v7  ;;  %v3280_v58 = vpop.permute.xlu0 %3279  ;;  %v3615_v7 = vld [vmem:[#allocation2 + $0x121] sm:$0xff] }
 0x466   : > { %3373 = vst.msk [vmem:[#allocation3 + $0x10] sm:$0xff] %vm1332_vm7, %v3280_v58  ;;  %3113 = vrot.lane.b32.xlu1 %v3608_v24, %s4846_s28 }
 0x467   : > { %3875 = vrot.lane.b32.xlu0 %v6326_v36, %s4850_s17 }
 0x468   : > { %v3472_v53 = vpop.permute.xlu1 %3471 }
 0x469   : > { %3565 = vst.msk [vmem:[#allocation3 + $0x10] sm:$0xff] %vm1526_vm9, %v3472_v53  ;;  %v3282_v25 = vpop.permute.xlu0 %3281  ;;  %v3979_v27 = vld [vmem:[#allocation3] sm:$0xff] }
 0x46a   : > { %3374 = vst.msk [vmem:[#allocation3 + $0x18] sm:$0xff] %vm1332_vm7, %v3282_v25  ;;  %3877 = vrot.lane.b32.xlu1 %v6321_v20, %s4850_s17  ;;  %4753 = vmatprep.mubr.msk.f32.mxu1 %vm1989_vm12, %v3979_v27  ;;  %v2850_v27 = vld [vmem:[#allocation2 + $0x128] sm:$0xff] }
 0x46b   : > { %3303 = vrot.lane.b32.xlu0 %v6326_v36, %s4847_s29  ;;  %v3609_v36 = vld [vmem:[#allocation2 + $0xd9] sm:$0xff] }
 0x46c   : > { %v3664_v38 = vpop.permute.xlu1 %3663  ;;  %v3980_v21 = vld [vmem:[#allocation3 + $0x8] sm:$0xff] }
 0x46d   : > { %3757 = vst.msk [vmem:[#allocation3 + $0x10] sm:$0xff] %vm1719_vm10, %v3664_v38  ;;  %4754 = vmatmul.mubr.msk.f32.vlgmr.msra.gmra.mrb[0].mxu1 %vm1989_vm12, %v3980_v21  ;;  %v3474_v29 = vpop.permute.xlu0 %3473 }
 0x46e   : > { %3566 = vst.msk [vmem:[#allocation3 + $0x18] sm:$0xff] %vm1526_vm9, %v3474_v29  ;;  %3495 = vrot.lane.b32.xlu1 %v6188_v30, %s4848_s30  ;;  %v3807_v29 = vld [vmem:[#allocation2 + $0x122] sm:$0xff] }
 0x46f   : > { %3305 = vrot.lane.b32.xlu0 %v6321_v20, %s4847_s29 }
 0x470   : > { %v3666_v19 = vpop.permute.xlu1 %3665 }
 0x471   : > { %3758 = vst.msk [vmem:[#allocation3 + $0x18] sm:$0xff] %vm1719_vm10, %v3666_v19  ;;  %v3092_v45 = vpop.permute.xlu0 %3091 }
 0x472   : > { %3183 = vst.msk [vmem:[#allocation3 + $0x20] sm:$0xff] %vm1139_vm6, %v3092_v45  ;;  %3687 = vrot.lane.b32.xlu1 %v3609_v36, %s4849_s14 }
 0x473   : > { %3497 = vrot.lane.b32.xlu0 %v6182_v35, %s4848_s30 }
 0x474   : > { %v3094_v47 = vpop.permute.xlu1 %3093 }
 0x475   : > { %3184 = vst.msk [vmem:[#allocation3 + $0x28] sm:$0xff] %vm1139_vm6, %v3094_v47  ;;  %v3856_v49 = vpop.permute.xlu0 %3855 }
 0x476   : > { %3949 = vst.msk [vmem:[#allocation3 + $0x10] sm:$0xff] %vm1912_vm11, %v3856_v49  ;;  %3115 = vrot.lane.b32.xlu1 %v3609_v36, %s4846_s28  ;;  %v3234_v49 = vld [vmem:[#allocation2 + $0x12a] sm:$0xff] }
 0x477   : > { %2925 = vrot.lane.b32.xlu0 %v6182_v35, %s4845_s27 }
 0x478   : > { %v3858_v30 = vpop.permute.xlu1 %3857 }
 0x479   : > { %3950 = vst.msk [vmem:[#allocation3 + $0x18] sm:$0xff] %vm1912_vm11, %v3858_v30  ;;  %v3284_v20 = vpop.permute.xlu0 %3283 }
 0x47a   : > { %3375 = vst.msk [vmem:[#allocation3 + $0x20] sm:$0xff] %vm1332_vm7, %v3284_v20  ;;  %3879 = vrot.lane.b32.xlu1 %v6334_v31, %s4850_s17 }
 0x47b   : > { %3689 = vrot.lane.b32.xlu0 %v3610_v41, %s4849_s14 }
 0x47c   : > { %v3476_v59 = vpop.permute.xlu1 %3475 }
 0x47d   : > { %3567 = vst.msk [vmem:[#allocation3 + $0x20] sm:$0xff] %vm1526_vm9, %v3476_v59  ;;  %v3286_v52 = vpop.permute.xlu0 %3285  ;;  %v3981_v40 = vld [vmem:[#allocation3 + $0x10] sm:$0xff] }
 0x47e   : > { %3376 = vst.msk [vmem:[#allocation3 + $0x28] sm:$0xff] %vm1332_vm7, %v3286_v52  ;;  %3307 = vrot.lane.b32.xlu1 %v6334_v31, %s4847_s29  ;;  %4756 = vmatprep.mubr.msk.f32.mxu1 %vm1989_vm12, %v3981_v40 }
 0x47f   : > { %3117 = vrot.lane.b32.xlu0 %v3610_v41, %s4846_s28  ;;  %v2851_v41 = vld [vmem:[#allocation2 + $0x138] sm:$0xff] }
 0x480   : > { %v3668_v35 = vpop.permute.xlu1 %3667  ;;  %v3982_v55 = vld [vmem:[#allocation3 + $0x18] sm:$0xff] }
 0x481   : > { %3759 = vst.msk [vmem:[#allocation3 + $0x20] sm:$0xff] %vm1719_vm10, %v3668_v35  ;;  %4757 = vmatmul.mubr.msk.f32.gmra.mrb[2].mxu1 %vm1989_vm12, %v3982_v55  ;;  %v3478_v51 = vpop.permute.xlu0 %3477  ;;  %v3617_v55 = vld [vmem:[#allocation2 + $0x139] sm:$0xff] }
 0x482   : > { %3568 = vst.msk [vmem:[#allocation3 + $0x28] sm:$0xff] %vm1526_vm9, %v3478_v51  ;;  %3309 = vrot.lane.b32.xlu1 %v6330_v50, %s4847_s29  ;;  %v3426_v51 = vld [vmem:[#allocation2 + $0x140] sm:$0xff] }
 0x483   : > { %3881 = vrot.lane.b32.xlu0 %v6330_v50, %s4850_s17 }
 0x484   : > { %v3670_v31 = vpop.permute.xlu1 %3669 }
 0x485   : > { %3760 = vst.msk [vmem:[#allocation3 + $0x28] sm:$0xff] %vm1719_vm10, %v3670_v31  ;;  %v3096_v44 = vpop.permute.xlu0 %3095 }
 0x486   : > { %3185 = vst.msk [vmem:[#allocation3 + $0x30] sm:$0xff] %vm1139_vm6, %v3096_v44  ;;  %2927 = vrot.lane.b32.xlu1 %v6202_v60, %s4845_s27 }
 0x487   : > { %3499 = vrot.lane.b32.xlu0 %v6202_v60, %s4848_s30 }
 0x488   : > { %v3098_v37 = vpop.permute.xlu1 %3097 }
 0x489   : > { %3186 = vst.msk [vmem:[#allocation3 + $0x38] sm:$0xff] %vm1139_vm6, %v3098_v37  ;;  %v3860_v57 = vpop.permute.xlu0 %3859 }
 0x48a   : > { %3951 = vst.msk [vmem:[#allocation3 + $0x20] sm:$0xff] %vm1912_vm11, %v3860_v57  ;;  %3691 = vrot.lane.b32.xlu1 %v3611_v39, %s4849_s14 }
 0x48b   : > { %3501 = vrot.lane.b32.xlu0 %v6196_v61, %s4848_s30 }
 0x48c   : > { %v3862_v50 = vpop.permute.xlu1 %3861 }
 0x48d   : > { %3952 = vst.msk [vmem:[#allocation3 + $0x28] sm:$0xff] %vm1912_vm11, %v3862_v50  ;;  %v3288_v3 = vpop.permute.xlu0 %3287  ;;  %v3618_v50 = vld [vmem:[#allocation2 + $0x141] sm:$0xff] }
 0x48e   : > { %3377 = vst.msk [vmem:[#allocation3 + $0x30] sm:$0xff] %vm1332_vm7, %v3288_v3  ;;  %3119 = vrot.lane.b32.xlu1 %v3611_v39, %s4846_s28  ;;  %v3809_v39 = vld [vmem:[#allocation2 + $0x13a] sm:$0xff] }
 0x48f   : > { %2929 = vrot.lane.b32.xlu0 %v6196_v61, %s4845_s27 }
 0x490   : > { %v3480_v60 = vpop.permute.xlu1 %3479 }
 0x491   : > { %3569 = vst.msk [vmem:[#allocation3 + $0x30] sm:$0xff] %vm1526_vm9, %v3480_v60  ;;  %v3290_v4 = vpop.permute.xlu0 %3289  ;;  %v3983_v26 = vld [vmem:[#allocation3 + $0x20] sm:$0xff] }
 0x492   : > { %3378 = vst.msk [vmem:[#allocation3 + $0x38] sm:$0xff] %vm1332_vm7, %v3290_v4  ;;  %3883 = vrot.lane.b32.xlu1 %v6341_v46, %s4850_s17  ;;  %4759 = vmatprep.mubr.msk.f32.mxu1 %vm1989_vm12, %v3983_v26 }
 0x493   : > { %3693 = vrot.lane.b32.xlu0 %v3612_v2, %s4849_s14 }
 0x494   : > { %v3672_v1 = vpop.permute.xlu1 %3671  ;;  %v3984_v6 = vld [vmem:[#allocation3 + $0x28] sm:$0xff] }
 0x495   : > { %3761 = vst.msk [vmem:[#allocation3 + $0x30] sm:$0xff] %vm1719_vm10, %v3672_v1  ;;  %v3482_v61 = vpop.permute.xlu0 %3481  ;;  %4760 = vmatmul.mubr.msk.f32.gmra.mrb[4].mxu1 %vm1989_vm12, %v3984_v6 }
 0x496   : > { %3570 = vst.msk [vmem:[#allocation3 + $0x38] sm:$0xff] %vm1526_vm9, %v3482_v61  ;;  %3311 = vrot.lane.b32.xlu1 %v3229_v32, %s4847_s29 }
 0x497   : > { %3121 = vrot.lane.b32.xlu0 %v3612_v2, %s4846_s28  ;;  %v3236_v2 = vld [vmem:[#allocation2 + $0x142] sm:$0xff] }
 0x498   : > { %v3674_v46 = vpop.permute.xlu1 %3673 }
 0x499   : > { %3762 = vst.msk [vmem:[#allocation3 + $0x38] sm:$0xff] %vm1719_vm10, %v3674_v46  ;;  %v3100_v0 = vpop.permute.xlu0 %3099  ;;  %v2853_v46 = vld [vmem:[#allocation2 + $0x150] sm:$0xff] }
 0x49a   : > { %3187 = vst.msk [vmem:[#allocation3 + $0x40] sm:$0xff] %vm1139_vm6, %v3100_v0  ;;  %3313 = vrot.lane.b32.xlu1 %v3230_v62, %s4847_s29 }
 0x49b   : > { %3885 = vrot.lane.b32.xlu0 %v3230_v62, %s4850_s17 }
 0x49c   : > { %v3102_v28 = vpop.permute.xlu1 %3101 }
 0x49d   : > { %3188 = vst.msk [vmem:[#allocation3 + $0x48] sm:$0xff] %vm1139_vm6, %v3102_v28  ;;  %v3864_v14 = vpop.permute.xlu0 %3863  ;;  %v3619_v28 = vld [vmem:[#allocation2 + $0x151] sm:$0xff] }
 0x49e   : > { %3953 = vst.msk [vmem:[#allocation3 + $0x30] sm:$0xff] %vm1912_vm11, %v3864_v14  ;;  %2931 = vrot.lane.b32.xlu1 %v6216_v23, %s4845_s27  ;;  %v3428_v14 = vld [vmem:[#allocation2 + $0x158] sm:$0xff] }
 0x49f   : > { %3503 = vrot.lane.b32.xlu0 %v6216_v23, %s4848_s30 }
 0x4a0   : > { %v3866_v34 = vpop.permute.xlu1 %3865 }
 0x4a1   : > { %3954 = vst.msk [vmem:[#allocation3 + $0x38] sm:$0xff] %vm1912_vm11, %v3866_v34  ;;  %v3292_v13 = vpop.permute.xlu0 %3291 }
 0x4a2   : > { %3379 = vst.msk [vmem:[#allocation3 + $0x40] sm:$0xff] %vm1332_vm7, %v3292_v13  ;;  %3695 = vrot.lane.b32.xlu1 %v3613_v43, %s4849_s14 }
 0x4a3   : > { %3505 = vrot.lane.b32.xlu0 %v6210_v42, %s4848_s30 }
 0x4a4   : > { %v3484_v8 = vpop.permute.xlu1 %3483 }
 0x4a5   : > { %3571 = vst.msk [vmem:[#allocation3 + $0x40] sm:$0xff] %vm1526_vm9, %v3484_v8  ;;  %v3294_v56 = vpop.permute.xlu0 %3293  ;;  %v3985_v16 = vld [vmem:[#allocation3 + $0x30] sm:$0xff] }
 0x4a6   : > { %3380 = vst.msk [vmem:[#allocation3 + $0x48] sm:$0xff] %vm1332_vm7, %v3294_v56  ;;  %3123 = vrot.lane.b32.xlu1 %v3613_v43, %s4846_s28  ;;  %4762 = vmatprep.mubr.msk.f32.mxu1 %vm1989_vm12, %v3985_v16  ;;  %v3811_v56 = vld [vmem:[#allocation2 + $0x152] sm:$0xff] }
 0x4a7   : > { %2933 = vrot.lane.b32.xlu0 %v6210_v42, %s4845_s27  ;;  %v3620_v16 = vld [vmem:[#allocation2 + $0x159] sm:$0xff] }
 0x4a8   : > { %v3676_v23 = vpop.permute.xlu1 %3675  ;;  %v3986_v5 = vld [vmem:[#allocation3 + $0x38] sm:$0xff] }
 0x4a9   : > { %3763 = vst.msk [vmem:[#allocation3 + $0x40] sm:$0xff] %vm1719_vm10, %v3676_v23  ;;  %v3486_v10 = vpop.permute.xlu0 %3485  ;;  %4763 = vmatmul.mubr.msk.f32.gmra.mrb[6].mxu1 %vm1989_vm12, %v3986_v5 }
 0x4aa   : > { %3572 = vst.msk [vmem:[#allocation3 + $0x48] sm:$0xff] %vm1526_vm9, %v3486_v10  ;;  %3887 = vrot.lane.b32.xlu1 %v3805_v9, %s4850_s17 }
 0x4ab   : > { %3697 = vrot.lane.b32.xlu0 %v3614_v12, %s4849_s14 }
 0x4ac   : > { %v3678_v63 = vpop.permute.xlu1 %3677 }
 0x4ad   : > { %3764 = vst.msk [vmem:[#allocation3 + $0x48] sm:$0xff] %vm1719_vm10, %v3678_v63  ;;  %v3104_v48 = vpop.permute.xlu0 %3103  ;;  %v3238_v63 = vld [vmem:[#allocation2 + $0x15a] sm:$0xff] }
 0x4ae   : > { %3189 = vst.msk [vmem:[#allocation3 + $0x50] sm:$0xff] %vm1139_vm6, %v3104_v48  ;;  %3315 = vrot.lane.b32.xlu1 %v3805_v9, %s4847_s29 }
 0x4af   : > { %3125 = vrot.lane.b32.xlu0 %v3614_v12, %s4846_s28 }
 0x4b0   : > { %v3106_v42 = vpop.permute.xlu1 %3105 }
 0x4b1   : > { %3190 = vst.msk [vmem:[#allocation3 + $0x58] sm:$0xff] %vm1139_vm6, %v3106_v42  ;;  %v3868_v15 = vpop.permute.xlu0 %3867 }
 0x4b2   : > { %3955 = vst.msk [vmem:[#allocation3 + $0x40] sm:$0xff] %vm1912_vm11, %v3868_v15  ;;  %3317 = vrot.lane.b32.xlu1 %v3232_v33, %s4847_s29  ;;  %v2855_v15 = vld [vmem:[#allocation2 + $0x168] sm:$0xff] }
 0x4b3   : > { %3889 = vrot.lane.b32.xlu0 %v3232_v33, %s4850_s17 }
 0x4b4   : > { %v3870_v22 = vpop.permute.xlu1 %3869 }
 0x4b5   : > { %3956 = vst.msk [vmem:[#allocation3 + $0x48] sm:$0xff] %vm1912_vm11, %v3870_v22  ;;  %v3296_v11 = vpop.permute.xlu0 %3295 }
 0x4b6   : > { %3381 = vst.msk [vmem:[#allocation3 + $0x50] sm:$0xff] %vm1332_vm7, %v3296_v11  ;;  %2935 = vrot.lane.b32.xlu1 %v6230_v18, %s4845_s27 }
 0x4b7   : > { %3507 = vrot.lane.b32.xlu0 %v6230_v18, %s4848_s30 }
 0x4b8   : > { %v3488_v54 = vpop.permute.xlu1 %3487 }
 0x4b9   : > { %3573 = vst.msk [vmem:[#allocation3 + $0x50] sm:$0xff] %vm1526_vm9, %v3488_v54  ;;  %v3298_v24 = vpop.permute.xlu0 %3297  ;;  %v3987_v58 = vld [vmem:[#allocation3 + $0x40] sm:$0xff] }
 0x4ba   : > { %3382 = vst.msk [vmem:[#allocation3 + $0x58] sm:$0xff] %vm1332_vm7, %v3298_v24  ;;  %3699 = vrot.lane.b32.xlu1 %v3615_v7, %s4849_s14  ;;  %4765 = vmatprep.mubr.msk.f32.mxu1 %vm1989_vm12, %v3987_v58  ;;  %v3621_v54 = vld [vmem:[#allocation2 + $0x169] sm:$0xff] }
 0x4bb   : > { %3509 = vrot.lane.b32.xlu0 %v6224_v17, %s4848_s30  ;;  %v3616_v17 = vld [vmem:[#allocation2 + $0x129] sm:$0xff] }
 0x4bc   : > { %v3680_v53 = vpop.permute.xlu1 %3679  ;;  %v3988_v25 = vld [vmem:[#allocation3 + $0x48] sm:$0xff]  ;;  %v3430_v24 = vld [vmem:[#allocation2 + $0x170] sm:$0xff] }
 0x4bd   : > { %3765 = vst.msk [vmem:[#allocation3 + $0x50] sm:$0xff] %vm1719_vm10, %v3680_v53  ;;  %v3490_v18 = vpop.permute.xlu0 %3489  ;;  %4766 = vmatmul.mubr.msk.f32.gmra.mrb[8].mxu1 %vm1989_vm12, %v3988_v25 }
 0x4be   : > { %3574 = vst.msk [vmem:[#allocation3 + $0x58] sm:$0xff] %vm1526_vm9, %v3490_v18  ;;  %3127 = vrot.lane.b32.xlu1 %v3615_v7, %s4846_s28  ;;  %v3813_v18 = vld [vmem:[#allocation2 + $0x16a] sm:$0xff] }
 0x4bf   : > { %2937 = vrot.lane.b32.xlu0 %v2850_v27, %s4845_s27  ;;  %v3622_v27 = vld [vmem:[#allocation2 + $0x171] sm:$0xff] }
 0x4c0   : > { %v3682_v38 = vpop.permute.xlu1 %3681 }
 0x4c1   : > { %3766 = vst.msk [vmem:[#allocation3 + $0x58] sm:$0xff] %vm1719_vm10, %v3682_v38  ;;  %v3108_v21 = vpop.permute.xlu0 %3107 }
 0x4c2   : > { %3191 = vst.msk [vmem:[#allocation3 + $0x60] sm:$0xff] %vm1139_vm6, %v3108_v21  ;;  %3891 = vrot.lane.b32.xlu1 %v3807_v29, %s4850_s17 }
 0x4c3   : > { %3701 = vrot.lane.b32.xlu0 %v3616_v17, %s4849_s14 }
 0x4c4   : > { %v3110_v19 = vpop.permute.xlu1 %3109 }
 0x4c5   : > { %3192 = vst.msk [vmem:[#allocation3 + $0x68] sm:$0xff] %vm1139_vm6, %v3110_v19  ;;  %v3872_v45 = vpop.permute.xlu0 %3871 }
 0x4c6   : > { %3957 = vst.msk [vmem:[#allocation3 + $0x50] sm:$0xff] %vm1912_vm11, %v3872_v45  ;;  %3319 = vrot.lane.b32.xlu1 %v3807_v29, %s4847_s29  ;;  %v3240_v45 = vld [vmem:[#allocation2 + $0x172] sm:$0xff] }
 0x4c7   : > { %3129 = vrot.lane.b32.xlu0 %v3616_v17, %s4846_s28 }
 0x4c8   : > { %v3874_v36 = vpop.permute.xlu1 %3873 }
 0x4c9   : > { %3958 = vst.msk [vmem:[#allocation3 + $0x58] sm:$0xff] %vm1912_vm11, %v3874_v36  ;;  %v3300_v47 = vpop.permute.xlu0 %3299 }
 0x4ca   : > { %3383 = vst.msk [vmem:[#allocation3 + $0x60] sm:$0xff] %vm1332_vm7, %v3300_v47  ;;  %3321 = vrot.lane.b32.xlu1 %v3234_v49, %s4847_s29 }
 0x4cb   : > { %3893 = vrot.lane.b32.xlu0 %v3234_v49, %s4850_s17  ;;  %v2857_v49 = vld [vmem:[#allocation2 + $0x180] sm:$0xff] }
 0x4cc   : > { %v3492_v30 = vpop.permute.xlu1 %3491 }
 0x4cd   : > { %3575 = vst.msk [vmem:[#allocation3 + $0x60] sm:$0xff] %vm1526_vm9, %v3492_v30  ;;  %v3302_v20 = vpop.permute.xlu0 %3301  ;;  %v3989_v59 = vld [vmem:[#allocation3 + $0x50] sm:$0xff] }
 0x4ce   : > { %3384 = vst.msk [vmem:[#allocation3 + $0x68] sm:$0xff] %vm1332_vm7, %v3302_v20  ;;  %2939 = vrot.lane.b32.xlu1 %v2851_v41, %s4845_s27  ;;  %4768 = vmatprep.mubr.msk.f32.mxu1 %vm1989_vm12, %v3989_v59  ;;  %v3623_v59 = vld [vmem:[#allocation2 + $0x181] sm:$0xff] }
 0x4cf   : > { %3511 = vrot.lane.b32.xlu0 %v2851_v41, %s4848_s30 }
 0x4d0   : > { %v3684_v52 = vpop.permute.xlu1 %3683  ;;  %v3990_v40 = vld [vmem:[#allocation3 + $0x58] sm:$0xff] }
 0x4d1   : > { %3767 = vst.msk [vmem:[#allocation3 + $0x60] sm:$0xff] %vm1719_vm10, %v3684_v52  ;;  %v3494_v35 = vpop.permute.xlu0 %3493  ;;  %4769 = vmatmul.mubr.msk.f32.gmra.mrb[10].mxu1 %vm1989_vm12, %v3990_v40  ;;  %v3432_v52 = vld [vmem:[#allocation2 + $0x188] sm:$0xff] }
 0x4d2   : > { %3576 = vst.msk [vmem:[#allocation3 + $0x68] sm:$0xff] %vm1526_vm9, %v3494_v35  ;;  %3703 = vrot.lane.b32.xlu1 %v3617_v55, %s4849_s14 }
 0x4d3   : > { %3513 = vrot.lane.b32.xlu0 %v3426_v51, %s4848_s30 }
 0x4d4   : > { %v3686_v31 = vpop.permute.xlu1 %3685 }
 0x4d5   : > { %3768 = vst.msk [vmem:[#allocation3 + $0x68] sm:$0xff] %vm1719_vm10, %v3686_v31  ;;  %v3112_v44 = vpop.permute.xlu0 %3111  ;;  %v3815_v31 = vld [vmem:[#allocation2 + $0x182] sm:$0xff] }
 0x4d6   : > { %3193 = vst.msk [vmem:[#allocation3 + $0x70] sm:$0xff] %vm1139_vm6, %v3112_v44  ;;  %3131 = vrot.lane.b32.xlu1 %v3617_v55, %s4846_s28  ;;  %v3624_v44 = vld [vmem:[#allocation2 + $0x189] sm:$0xff] }
 0x4d7   : > { %2941 = vrot.lane.b32.xlu0 %v3426_v51, %s4845_s27 }
 0x4d8   : > { %v3114_v37 = vpop.permute.xlu1 %3113 }
 0x4d9   : > { %3194 = vst.msk [vmem:[#allocation3 + $0x78] sm:$0xff] %vm1139_vm6, %v3114_v37  ;;  %v3876_v57 = vpop.permute.xlu0 %3875 }
 0x4da   : > { %3959 = vst.msk [vmem:[#allocation3 + $0x60] sm:$0xff] %vm1912_vm11, %v3876_v57  ;;  %3895 = vrot.lane.b32.xlu1 %v3809_v39, %s4850_s17 }
 0x4db   : > { %3705 = vrot.lane.b32.xlu0 %v3618_v50, %s4849_s14 }
 0x4dc   : > { %v3878_v3 = vpop.permute.xlu1 %3877 }
 0x4dd   : > { %3960 = vst.msk [vmem:[#allocation3 + $0x68] sm:$0xff] %vm1912_vm11, %v3878_v3  ;;  %v3304_v60 = vpop.permute.xlu0 %3303 }
 0x4de   : > { %3385 = vst.msk [vmem:[#allocation3 + $0x70] sm:$0xff] %vm1332_vm7, %v3304_v60  ;;  %3323 = vrot.lane.b32.xlu1 %v3809_v39, %s4847_s29  ;;  %v3242_v60 = vld [vmem:[#allocation2 + $0x18a] sm:$0xff] }
 0x4df   : > { %3133 = vrot.lane.b32.xlu0 %v3618_v50, %s4846_s28 }
 0x4e0   : > { %v3496_v4 = vpop.permute.xlu1 %3495 }
 0x4e1   : > { %3577 = vst.msk [vmem:[#allocation3 + $0x70] sm:$0xff] %vm1526_vm9, %v3496_v4  ;;  %v3306_v26 = vpop.permute.xlu0 %3305  ;;  %v3991_v1 = vld [vmem:[#allocation3 + $0x60] sm:$0xff]  ;;  %v3434_v4 = vld [vmem:[#allocation2 + $0x1a0] sm:$0xff] }
 0x4e2   : > { %3386 = vst.msk [vmem:[#allocation3 + $0x78] sm:$0xff] %vm1332_vm7, %v3306_v26  ;;  %3325 = vrot.lane.b32.xlu1 %v3236_v2, %s4847_s29  ;;  %4771 = vmatprep.mubr.msk.f32.mxu1 %vm1989_vm12, %v3991_v1 }
 0x4e3   : > { %3897 = vrot.lane.b32.xlu0 %v3236_v2, %s4850_s17  ;;  %v3433_v2 = vld [vmem:[#allocation2 + $0x198] sm:$0xff] }
 0x4e4   : > { %v3688_v6 = vpop.permute.xlu1 %3687  ;;  %v3992_v61 = vld [vmem:[#allocation3 + $0x68] sm:$0xff] }
 0x4e5   : > { %3769 = vst.msk [vmem:[#allocation3 + $0x70] sm:$0xff] %vm1719_vm10, %v3688_v6  ;;  %v3498_v32 = vpop.permute.xlu0 %3497  ;;  %4772 = vmatmul.mubr.msk.f32.gmra.mrb[12].mxu1 %vm1989_vm12, %v3992_v61  ;;  %v3626_v61 = vld [vmem:[#allocation2 + $0x1a1] sm:$0xff] }
 0x4e6   : > { %3578 = vst.msk [vmem:[#allocation3 + $0x78] sm:$0xff] %vm1526_vm9, %v3498_v32  ;;  %2943 = vrot.lane.b32.xlu1 %v2853_v46, %s4845_s27 }
 0x4e7   : > { %3515 = vrot.lane.b32.xlu0 %v2853_v46, %s4848_s30  ;;  %v3625_v46 = vld [vmem:[#allocation2 + $0x199] sm:$0xff] }
 0x4e8   : > { %v3116_v0 = vpop.permute.xlu1 %3115 }
 0x4e9   : > { %3195 = vst.msk [vmem:[#allocation3 + $0x80] sm:$0xff] %vm1139_vm6, %v3116_v0  ;;  %v2926_v62 = vpop.permute.xlu0 %2925 }
 0x4ea   : > { %3004 = vst.msk [vmem:[#allocation3 + $0x88] sm:$0xff] %vm946_vm5, %v2926_v62  ;;  %3707 = vrot.lane.b32.xlu1 %v3619_v28, %s4849_s14  ;;  %v3818_v62 = vld [vmem:[#allocation2 + $0x1a2] sm:$0xff] }
 0x4eb   : > { %3517 = vrot.lane.b32.xlu0 %v3428_v14, %s4848_s30 }
 0x4ec   : > { %v3880_v34 = vpop.permute.xlu1 %3879 }
 0x4ed   : > { %3961 = vst.msk [vmem:[#allocation3 + $0x70] sm:$0xff] %vm1912_vm11, %v3880_v34  ;;  %v3690_v13 = vpop.permute.xlu0 %3689 }
 0x4ee   : > { %3770 = vst.msk [vmem:[#allocation3 + $0x78] sm:$0xff] %vm1719_vm10, %v3690_v13  ;;  %3135 = vrot.lane.b32.xlu1 %v3619_v28, %s4846_s28 }
 0x4ef   : > { %2945 = vrot.lane.b32.xlu0 %v3428_v14, %s4845_s27  ;;  %v3817_v14 = vld [vmem:[#allocation2 + $0x19a] sm:$0xff] }
 0x4f0   : > { %v3308_v43 = vpop.permute.xlu1 %3307 }
 0x4f1   : > { %3387 = vst.msk [vmem:[#allocation3 + $0x80] sm:$0xff] %vm1332_vm7, %v3308_v43  ;;  %v3118_v8 = vpop.permute.xlu0 %3117 }
 0x4f2   : > { %3196 = vst.msk [vmem:[#allocation3 + $0x88] sm:$0xff] %vm1139_vm6, %v3118_v8  ;;  %3899 = vrot.lane.b32.xlu1 %v3811_v56, %s4850_s17 }
 0x4f3   : > { %3709 = vrot.lane.b32.xlu0 %v3620_v16, %s4849_s14 }
 0x4f4   : > { %v3310_v23 = vpop.permute.xlu1 %3309  ;;  %v3993_v5 = vld [vmem:[#allocation3 + $0x70] sm:$0xff] }
 0x4f5   : > { %3388 = vst.msk [vmem:[#allocation3 + $0x88] sm:$0xff] %vm1332_vm7, %v3310_v23  ;;  %v3882_v10 = vpop.permute.xlu0 %3881  ;;  %4774 = vmatprep.mubr.msk.f32.mxu1 %vm1989_vm12, %v3993_v5  ;;  %v6879_v23 = vld [vmem:[%s7088_s4] ss:$0 sm:$0xff] }
 0x4f6   : > { %3962 = vst.msk [vmem:[#allocation3 + $0x78] sm:$0xff] %vm1912_vm11, %v3882_v10  ;;  %3327 = vrot.lane.b32.xlu1 %v3811_v56, %s4847_s29 }
 0x4f7   : > { %3137 = vrot.lane.b32.xlu0 %v3620_v16, %s4846_s28 }
 0x4f8   : > { %v2928_v9 = vpop.permute.xlu1 %2927 }
 0x4f9   : > { %3005 = vst.msk [vmem:[#allocation3 + $0x90] sm:$0xff] %vm946_vm5, %v2928_v9  ;;  %v3500_v12 = vpop.permute.xlu0 %3499  ;;  %v4348_v9 = vld [vmem:[%s4947_s24 + $0x8] sm:$0xff] }
 0x4fa   : > { %3579 = vst.msk [vmem:[#allocation3 + $0x80] sm:$0xff] %vm1526_vm9, %v3500_v12  ;;  %3329 = vrot.lane.b32.xlu1 %v3238_v63, %s4847_s29 }
 0x4fb   : > { %3901 = vrot.lane.b32.xlu0 %v3238_v63, %s4850_s17 }
 0x4fc   : > { %v3692_v48 = vpop.permute.xlu1 %3691 }
 0x4fd   : > { %3771 = vst.msk [vmem:[#allocation3 + $0x80] sm:$0xff] %vm1719_vm10, %v3692_v48  ;;  %v3502_v42 = vpop.permute.xlu0 %3501  ;;  %v3994_v33 = vld [vmem:[#allocation3 + $0x78] sm:$0xff]  ;;  %v4347_v48 = vld [vmem:[%s4947_s24] sm:$0xff] }
 0x4fe   : > { %3580 = vst.msk [vmem:[#allocation3 + $0x88] sm:$0xff] %vm1526_vm9, %v3502_v42  ;;  %2947 = vrot.lane.b32.xlu1 %v2855_v15, %s4845_s27  ;;  %4775 = vmatmul.mubr.msk.f32.gmra.mrb[14].mxu1 %vm1989_vm12, %v3994_v33 }
 0x4ff   : > { %3519 = vrot.lane.b32.xlu0 %v2855_v15, %s4848_s30 }
 0x500   : > { %v3120_v22 = vpop.permute.xlu1 %3119 }
 0x501   : > { %3197 = vst.msk [vmem:[#allocation3 + $0x90] sm:$0xff] %vm1139_vm6, %v3120_v22  ;;  %v2930_v11 = vpop.permute.xlu0 %2929 }
 0x502   : > { %3006 = vst.msk [vmem:[#allocation3 + $0x98] sm:$0xff] %vm946_vm5, %v2930_v11  ;;  %3711 = vrot.lane.b32.xlu1 %v3621_v54, %s4849_s14 }
 0x503   : > { %3521 = vrot.lane.b32.xlu0 %v3430_v24, %s4848_s30 }
 0x504   : > { %v3884_v7 = vpop.permute.xlu1 %3883 }
 0x505   : > { %3963 = vst.msk [vmem:[#allocation3 + $0x80] sm:$0xff] %vm1912_vm11, %v3884_v7  ;;  %v3694_v58 = vpop.permute.xlu0 %3693 }
 0x506   : > { %3772 = vst.msk [vmem:[#allocation3 + $0x88] sm:$0xff] %vm1719_vm10, %v3694_v58  ;;  %3139 = vrot.lane.b32.xlu1 %v3621_v54, %s4846_s28 }
 0x507   : > { %2949 = vrot.lane.b32.xlu0 %v3430_v24, %s4845_s27 }
 0x508   : > { %v3312_v53 = vpop.permute.xlu1 %3311 }
 0x509   : > { %3389 = vst.msk [vmem:[#allocation3 + $0x90] sm:$0xff] %vm1332_vm7, %v3312_v53  ;;  %v3122_v25 = vpop.permute.xlu0 %3121 }
 0x50a   : > { %3198 = vst.msk [vmem:[#allocation3 + $0x98] sm:$0xff] %vm1139_vm6, %v3122_v25  ;;  %3903 = vrot.lane.b32.xlu1 %v3813_v18, %s4850_s17 }
 0x50b   : > { %3713 = vrot.lane.b32.xlu0 %v3622_v27, %s4849_s14 }
 0x50c   : > { %v3314_v38 = vpop.permute.xlu1 %3313  ;;  %v3995_v21 = vld [vmem:[#allocation3 + $0x80] sm:$0xff] }
 0x50d   : > { %3390 = vst.msk [vmem:[#allocation3 + $0x98] sm:$0xff] %vm1332_vm7, %v3314_v38  ;;  %v3886_v29 = vpop.permute.xlu0 %3885  ;;  %4777 = vmatprep.mubr.msk.f32.mxu1 %vm1989_vm12, %v3995_v21 }
 0x50e   : > { %3964 = vst.msk [vmem:[#allocation3 + $0x88] sm:$0xff] %vm1912_vm11, %v3886_v29  ;;  %3331 = vrot.lane.b32.xlu1 %v3813_v18, %s4847_s29 }
 0x50f   : > { %3141 = vrot.lane.b32.xlu0 %v3622_v27, %s4846_s28 }
 0x510   : > { %v2932_v17 = vpop.permute.xlu1 %2931 }
 0x511   : > { %3007 = vst.msk [vmem:[#allocation3 + $0xa0] sm:$0xff] %vm946_vm5, %v2932_v17  ;;  %v3504_v19 = vpop.permute.xlu0 %3503 }
 0x512   : > { %3581 = vst.msk [vmem:[#allocation3 + $0x90] sm:$0xff] %vm1526_vm9, %v3504_v19  ;;  %3333 = vrot.lane.b32.xlu1 %v3240_v45, %s4847_s29  ;;  %v4350_v19 = vld [vmem:[%s4947_s24 + $0x18] sm:$0xff] }
 0x513   : > { %3905 = vrot.lane.b32.xlu0 %v3240_v45, %s4850_s17 }
 0x514   : > { %v3696_v36 = vpop.permute.xlu1 %3695 }
 0x515   : > { %3773 = vst.msk [vmem:[#allocation3 + $0x90] sm:$0xff] %vm1719_vm10, %v3696_v36  ;;  %v3506_v47 = vpop.permute.xlu0 %3505  ;;  %v3996_v30 = vld [vmem:[#allocation3 + $0x88] sm:$0xff] }
 0x516   : > { %3582 = vst.msk [vmem:[#allocation3 + $0x98] sm:$0xff] %vm1526_vm9, %v3506_v47  ;;  %2951 = vrot.lane.b32.xlu1 %v2857_v49, %s4845_s27  ;;  %4778 = vmatmul.mubr.msk.f32.gmra.mrb[16].mxu1 %vm1989_vm12, %v3996_v30 }
 0x517   : > { %3523 = vrot.lane.b32.xlu0 %v2857_v49, %s4848_s30  ;;  %v4349_v49 = vld [vmem:[%s4947_s24 + $0x10] sm:$0xff] }
 0x518   : > { %v3124_v20 = vpop.permute.xlu1 %3123 }
 0x519   : > { %3199 = vst.msk [vmem:[#allocation3 + $0xa0] sm:$0xff] %vm1139_vm6, %v3124_v20  ;;  %v2934_v41 = vpop.permute.xlu0 %2933 }
 0x51a   : > { %3008 = vst.msk [vmem:[#allocation3 + $0xa8] sm:$0xff] %vm946_vm5, %v2934_v41  ;;  %3715 = vrot.lane.b32.xlu1 %v3623_v59, %s4849_s14 }
 0x51b   : > { %3525 = vrot.lane.b32.xlu0 %v3432_v52, %s4848_s30 }
 0x51c   : > { %v3888_v40 = vpop.permute.xlu1 %3887 }
 0x51d   : > { %3965 = vst.msk [vmem:[#allocation3 + $0x90] sm:$0xff] %vm1912_vm11, %v3888_v40  ;;  %v3698_v35 = vpop.permute.xlu0 %3697 }
 0x51e   : > { %3774 = vst.msk [vmem:[#allocation3 + $0x98] sm:$0xff] %vm1719_vm10, %v3698_v35  ;;  %3143 = vrot.lane.b32.xlu1 %v3623_v59, %s4846_s28 }
 0x51f   : > { %2953 = vrot.lane.b32.xlu0 %v3432_v52, %s4845_s27 }
 0x520   : > { %v3316_v55 = vpop.permute.xlu1 %3315 }
 0x521   : > { %3391 = vst.msk [vmem:[#allocation3 + $0xa0] sm:$0xff] %vm1332_vm7, %v3316_v55  ;;  %v3126_v51 = vpop.permute.xlu0 %3125 }
 0x522   : > { %3200 = vst.msk [vmem:[#allocation3 + $0xa8] sm:$0xff] %vm1139_vm6, %v3126_v51  ;;  %3907 = vrot.lane.b32.xlu1 %v3815_v31, %s4850_s17 }
 0x523   : > { %3717 = vrot.lane.b32.xlu0 %v3624_v44, %s4849_s14 }
 0x524   : > { %v3318_v37 = vpop.permute.xlu1 %3317  ;;  %v3997_v57 = vld [vmem:[#allocation3 + $0x90] sm:$0xff] }
 0x525   : > { %3392 = vst.msk [vmem:[#allocation3 + $0xa8] sm:$0xff] %vm1332_vm7, %v3318_v37  ;;  %v3890_v39 = vpop.permute.xlu0 %3889  ;;  %4780 = vmatprep.mubr.msk.f32.mxu1 %vm1989_vm12, %v3997_v57 }
 0x526   : > { %3966 = vst.msk [vmem:[#allocation3 + $0x98] sm:$0xff] %vm1912_vm11, %v3890_v39  ;;  %3335 = vrot.lane.b32.xlu1 %v3815_v31, %s4847_s29 }
 0x527   : > { %3145 = vrot.lane.b32.xlu0 %v3624_v44, %s4846_s28 }
 0x528   : > { %v2936_v50 = vpop.permute.xlu1 %2935 }
 0x529   : > { %3009 = vst.msk [vmem:[#allocation3 + $0xb0] sm:$0xff] %vm946_vm5, %v2936_v50  ;;  %v3508_v3 = vpop.permute.xlu0 %3507 }
 0x52a   : > { %3583 = vst.msk [vmem:[#allocation3 + $0xa0] sm:$0xff] %vm1526_vm9, %v3508_v3  ;;  %3337 = vrot.lane.b32.xlu1 %v3242_v60, %s4847_s29 }
 0x52b   : > { %3909 = vrot.lane.b32.xlu0 %v3242_v60, %s4850_s17 }
 0x52c   : > { %v3700_v26 = vpop.permute.xlu1 %3699 }
 0x52d   : > { %3775 = vst.msk [vmem:[#allocation3 + $0xa0] sm:$0xff] %vm1719_vm10, %v3700_v26  ;;  %v3510_v1 = vpop.permute.xlu0 %3509  ;;  %v3998_v6 = vld [vmem:[#allocation3 + $0x98] sm:$0xff] }
 0x52e   : > { %3584 = vst.msk [vmem:[#allocation3 + $0xa8] sm:$0xff] %vm1526_vm9, %v3510_v1  ;;  %4781 = vmatmul.mubr.msk.f32.gmra.mrb[18].mxu1 %vm1989_vm12, %v3998_v6  ;;  %3529 = vrot.lane.b32.xlu1 %v3434_v4, %s4848_s30  ;;  %v4352_v4 = vld [vmem:[%s4947_s24 + $0x28] sm:$0xff]  ;;  %v4351_v6 = vld [vmem:[%s4947_s24 + $0x20] sm:$0xff] }
 0x52f   : > { %3527 = vrot.lane.b32.xlu0 %v3433_v2, %s4848_s30 }
 0x530   : > { %v3128_v32 = vpop.permute.xlu1 %3127 }
 0x531   : > { %3201 = vst.msk [vmem:[#allocation3 + $0xb0] sm:$0xff] %vm1139_vm6, %v3128_v32  ;;  %v2938_v0 = vpop.permute.xlu0 %2937 }
 0x532   : > { %3010 = vst.msk [vmem:[#allocation3 + $0xb8] sm:$0xff] %vm946_vm5, %v2938_v0  ;;  %3721 = vrot.lane.b32.xlu1 %v3626_v61, %s4849_s14 }
 0x533   : > { %3719 = vrot.lane.b32.xlu0 %v3625_v46, %s4849_s14 }
 0x534   : > { %v3892_v28 = vpop.permute.xlu1 %3891 }
 0x535   : > { %3967 = vst.msk [vmem:[#allocation3 + $0xa0] sm:$0xff] %vm1912_vm11, %v3892_v28  ;;  %v3702_v34 = vpop.permute.xlu0 %3701 }
 0x536   : > { %3776 = vst.msk [vmem:[#allocation3 + $0xa8] sm:$0xff] %vm1719_vm10, %v3702_v34  ;;  %3913 = vrot.lane.b32.xlu1 %v3818_v62, %s4850_s17 }
 0x537   : > { %3911 = vrot.lane.b32.xlu0 %v3817_v14, %s4850_s17 }
 0x538   : > { %v3320_v13 = vpop.permute.xlu1 %3319 }
 0x539   : > { %3393 = vst.msk [vmem:[#allocation3 + $0xb0] sm:$0xff] %vm1332_vm7, %v3320_v13  ;;  %v3130_v43 = vpop.permute.xlu0 %3129 }
 0x53a   : > { %3202 = vst.msk [vmem:[#allocation3 + $0xb8] sm:$0xff] %vm1139_vm6, %v3130_v43 }
 0x53c   : > { %v3322_v8 = vpop.permute.xlu1 %3321  ;;  %v3999_v56 = vld [vmem:[#allocation3 + $0xa0] sm:$0xff] }
 0x53d   : > { %3394 = vst.msk [vmem:[#allocation3 + $0xb8] sm:$0xff] %vm1332_vm7, %v3322_v8  ;;  %v3894_v16 = vpop.permute.xlu0 %3893  ;;  %4783 = vmatprep.mubr.msk.f32.mxu1 %vm1989_vm12, %v3999_v56 }
 0x53e   : > { %3968 = vst.msk [vmem:[#allocation3 + $0xa8] sm:$0xff] %vm1912_vm11, %v3894_v16 }
 0x540   : > { %v2940_v5 = vpop.permute.xlu1 %2939  ;;  %v4755_v10 = vpop.f32.mrb[0].mxu1 }
 0x541   : > { %3011 = vst.msk [vmem:[#allocation3 + $0xc0] sm:$0xff] %vm946_vm5, %v2940_v5  ;;  %v4194_v12 = vadd.f32 %v4755_v10, %v6879_v23  ;;  %v4188_v63 = vpop.f32.mrb[1].mxu1  ;;  %v3512_v42 = vpop.permute.xlu0 %3511 }
 0x542   : > { %v4189_v15 = vadd.f32 %v6879_v23, %v4188_v63  ;;  %3585 = vst.msk [vmem:[#allocation3 + $0xb0] sm:$0xff] %vm1526_vm9, %v3512_v42  ;;  %v4354_v63 = vld [vmem:[%s4947_s24 + $0x38] sm:$0xff] }
 0x543   : > { %v4380_v33 = vadd.f32 %v4348_v9, %v4194_v12 }
 0x544   : > { %v4379_v22 = vadd.f32 %v4347_v48, %v4189_v15  ;;  %v3704_v11 = vpop.permute.xlu1 %3703 }
 0x545   : > { %v4412_v54 = vmax.f32 %v4380_v33, 0.0  ;;  %3777 = vst.msk [vmem:[#allocation3 + $0xb0] sm:$0xff] %vm1719_vm10, %v3704_v11  ;;  %v3514_v24 = vpop.permute.xlu0 %3513  ;;  %v4000_v7 = vld [vmem:[#allocation3 + $0xa8] sm:$0xff]  ;;  %v4353_v33 = vld [vmem:[%s4947_s24 + $0x30] sm:$0xff] }
 0x546   : > { %v4411_v58 = vmax.f32 %v4379_v22, 0.0  ;;  %3586 = vst.msk [vmem:[#allocation3 + $0xb8] sm:$0xff] %vm1526_vm9, %v3514_v24  ;;  %4784 = vmatmul.mubr.msk.f32.gmra.mrb[20].mxu1 %vm1989_vm12, %v4000_v7 }
 0x547   : > { %4444 = vst.msk [vmem:[%s6892_s13 + $0x8] sm:$0xff] %vm225_vm0, %v4412_v54 }
 0x548   : > { %4443 = vst.msk [vmem:[%s6892_s13] sm:$0xff] %vm225_vm0, %v4411_v58  ;;  %v3132_v53 = vpop.permute.xlu1 %3131 }
 0x549   : > { %3203 = vst.msk [vmem:[#allocation3 + $0xc0] sm:$0xff] %vm1139_vm6, %v3132_v53  ;;  %v2942_v25 = vpop.permute.xlu0 %2941 }
 0x54a   : > { %3012 = vst.msk [vmem:[#allocation3 + $0xc8] sm:$0xff] %vm946_vm5, %v2942_v25 }
 0x54c   : > { %v3896_v18 = vpop.permute.xlu1 %3895 }
 0x54d   : > { %3969 = vst.msk [vmem:[#allocation3 + $0xb0] sm:$0xff] %vm1912_vm11, %v3896_v18  ;;  %v3706_v27 = vpop.permute.xlu0 %3705 }
 0x54e   : > { %3778 = vst.msk [vmem:[#allocation3 + $0xb8] sm:$0xff] %vm1719_vm10, %v3706_v27 }
 0x550   : > { %v3324_v38 = vpop.permute.xlu1 %3323 }
 0x551   : > { %3395 = vst.msk [vmem:[#allocation3 + $0xc0] sm:$0xff] %vm1332_vm7, %v3324_v38  ;;  %v3134_v21 = vpop.permute.xlu0 %3133 }
 0x552   : > { %3204 = vst.msk [vmem:[#allocation3 + $0xc8] sm:$0xff] %vm1139_vm6, %v3134_v21 }
 0x554   : > { %v3326_v29 = vpop.permute.xlu1 %3325  ;;  %v4758_v17 = vpop.f32.mrb[2].mxu1  ;;  %v4001_v45 = vld [vmem:[#allocation3 + $0xb0] sm:$0xff] }
 0x555   : > { %3396 = vst.msk [vmem:[#allocation3 + $0xc8] sm:$0xff] %vm1332_vm7, %v3326_v29  ;;  %v4204_v36 = vadd.f32 %v4758_v17, %v6879_v23  ;;  %v4198_v47 = vpop.f32.mrb[3].mxu1  ;;  %v3898_v30 = vpop.permute.xlu0 %3897  ;;  %4786 = vmatprep.mubr.msk.f32.mxu1 %vm1989_vm12, %v4001_v45 }
 0x556   : > { %v4199_v20 = vadd.f32 %v6879_v23, %v4198_v47  ;;  %3970 = vst.msk [vmem:[#allocation3 + $0xb8] sm:$0xff] %vm1912_vm11, %v3898_v30  ;;  %v4356_v47 = vld [vmem:[%s4947_s24 + $0x48] sm:$0xff] }
 0x557   : > { %v4382_v41 = vadd.f32 %v4350_v19, %v4204_v36 }
 0x558   : > { %v4381_v59 = vadd.f32 %v4349_v49, %v4199_v20  ;;  %v2944_v52 = vpop.permute.xlu1 %2943 }
 0x559   : > { %v4414_v40 = vmax.f32 %v4382_v41, 0.0  ;;  %3013 = vst.msk [vmem:[#allocation3 + $0xd0] sm:$0xff] %vm946_vm5, %v2944_v52  ;;  %v3516_v35 = vpop.permute.xlu0 %3515  ;;  %v4355_v41 = vld [vmem:[%s4947_s24 + $0x40] sm:$0xff] }
 0x55a   : > { %v4413_v55 = vmax.f32 %v4381_v59, 0.0  ;;  %3587 = vst.msk [vmem:[#allocation3 + $0xc0] sm:$0xff] %vm1526_vm9, %v3516_v35 }
 0x55b   : > { %4446 = vst.msk [vmem:[%s6892_s13 + $0x18] sm:$0xff] %vm225_vm0, %v4414_v40 }
 0x55c   : > { %4445 = vst.msk [vmem:[%s6892_s13 + $0x10] sm:$0xff] %vm225_vm0, %v4413_v55  ;;  %v3708_v51 = vpop.permute.xlu1 %3707 }
 0x55d   : > { %3779 = vst.msk [vmem:[#allocation3 + $0xc0] sm:$0xff] %vm1719_vm10, %v3708_v51  ;;  %v3518_v31 = vpop.permute.xlu0 %3517  ;;  %v4002_v44 = vld [vmem:[#allocation3 + $0xb8] sm:$0xff] }
 0x55e   : > { %3588 = vst.msk [vmem:[#allocation3 + $0xc8] sm:$0xff] %vm1526_vm9, %v3518_v31  ;;  %4787 = vmatmul.mubr.msk.f32.gmra.mrb[22].mxu1 %vm1989_vm12, %v4002_v44 }
 0x560   : > { %v3136_v37 = vpop.permute.xlu1 %3135 }
 0x561   : > { %3205 = vst.msk [vmem:[#allocation3 + $0xd0] sm:$0xff] %vm1139_vm6, %v3136_v37  ;;  %v2946_v57 = vpop.permute.xlu0 %2945 }
 0x562   : > { %3014 = vst.msk [vmem:[#allocation3 + $0xd8] sm:$0xff] %vm946_vm5, %v2946_v57 }
 0x564   : > { %v3900_v39 = vpop.permute.xlu1 %3899 }
 0x565   : > { %3971 = vst.msk [vmem:[#allocation3 + $0xc0] sm:$0xff] %vm1912_vm11, %v3900_v39  ;;  %v3710_v50 = vpop.permute.xlu0 %3709 }
 0x566   : > { %3780 = vst.msk [vmem:[#allocation3 + $0xc8] sm:$0xff] %vm1719_vm10, %v3710_v50 }
 0x568   : > { %v3328_v3 = vpop.permute.xlu1 %3327  ;;  %v4761_v60 = vpop.f32.mrb[4].mxu1 }
 0x569   : > { %3397 = vst.msk [vmem:[#allocation3 + $0xd0] sm:$0xff] %vm1332_vm7, %v3328_v3  ;;  %v4214_v26 = vadd.f32 %v4761_v60, %v6879_v23  ;;  %v3138_v2 = vpop.permute.xlu0 %3137  ;;  %v4208_v1 = vpop.f32.mrb[5].mxu1 }
 0x56a   : > { %3206 = vst.msk [vmem:[#allocation3 + $0xd8] sm:$0xff] %vm1139_vm6, %v3138_v2  ;;  %v4209_v61 = vadd.f32 %v6879_v23, %v4208_v1 }
 0x56b   : > { %v4384_v32 = vadd.f32 %v4352_v4, %v4214_v26  ;;  %v4358_v26 = vld [vmem:[%s4947_s24 + $0x58] sm:$0xff] }
 0x56c   : > { %v4383_v46 = vadd.f32 %v4351_v6, %v4209_v61  ;;  %v3330_v0 = vpop.permute.xlu1 %3329  ;;  %v4003_v62 = vld [vmem:[#allocation3 + $0xc0] sm:$0xff] }
 0x56d   : > { %v4416_v28 = vmax.f32 %v4384_v32, 0.0  ;;  %3398 = vst.msk [vmem:[#allocation3 + $0xd8] sm:$0xff] %vm1332_vm7, %v3330_v0  ;;  %v3902_v14 = vpop.permute.xlu0 %3901  ;;  %4789 = vmatprep.mubr.msk.f32.mxu1 %vm1989_vm12, %v4003_v62  ;;  %v4357_v32 = vld [vmem:[%s4947_s24 + $0x50] sm:$0xff] }
 0x56e   : > { %v4415_v34 = vmax.f32 %v4383_v46, 0.0  ;;  %3972 = vst.msk [vmem:[#allocation3 + $0xc8] sm:$0xff] %vm1912_vm11, %v3902_v14 }
 0x56f   : > { %4448 = vst.msk [vmem:[%s6892_s13 + $0x28] sm:$0xff] %vm225_vm0, %v4416_v28 }
 0x570   : > { %4447 = vst.msk [vmem:[%s6892_s13 + $0x20] sm:$0xff] %vm225_vm0, %v4415_v34  ;;  %v2948_v13 = vpop.permute.xlu1 %2947 }
 0x571   : > { %3015 = vst.msk [vmem:[#allocation3 + $0xe0] sm:$0xff] %vm946_vm5, %v2948_v13  ;;  %v3520_v43 = vpop.permute.xlu0 %3519 }
 0x572   : > { %3589 = vst.msk [vmem:[#allocation3 + $0xd0] sm:$0xff] %vm1526_vm9, %v3520_v43 }
 0x574   : > { %v3712_v8 = vpop.permute.xlu1 %3711 }
 0x575   : > { %3781 = vst.msk [vmem:[#allocation3 + $0xd0] sm:$0xff] %vm1719_vm10, %v3712_v8  ;;  %v3522_v56 = vpop.permute.xlu0 %3521  ;;  %v4004_v16 = vld [vmem:[#allocation3 + $0xc8] sm:$0xff] }
 0x576   : > { %3590 = vst.msk [vmem:[#allocation3 + $0xd8] sm:$0xff] %vm1526_vm9, %v3522_v56  ;;  %4790 = vmatmul.mubr.msk.f32.gmra.mrb[24].mxu1 %vm1989_vm12, %v4004_v16 }
 0x578   : > { %v3140_v5 = vpop.permute.xlu1 %3139 }
 0x579   : > { %3207 = vst.msk [vmem:[#allocation3 + $0xe0] sm:$0xff] %vm1139_vm6, %v3140_v5  ;;  %v2950_v10 = vpop.permute.xlu0 %2949  ;;  %v4360_v5 = vld [vmem:[%s4947_s24 + $0x68] sm:$0xff] }
 0x57a   : > { %3016 = vst.msk [vmem:[#allocation3 + $0xe8] sm:$0xff] %vm946_vm5, %v2950_v10 }
 0x57c   : > { %v3904_v9 = vpop.permute.xlu1 %3903  ;;  %v4764_v12 = vpop.f32.mrb[6].mxu1 }
 0x57d   : > { %3973 = vst.msk [vmem:[#allocation3 + $0xd0] sm:$0xff] %vm1912_vm11, %v3904_v9  ;;  %v4224_v48 = vadd.f32 %v4764_v12, %v6879_v23  ;;  %v3714_v42 = vpop.permute.xlu0 %3713  ;;  %v4218_v15 = vpop.f32.mrb[7].mxu1  ;;  %v4359_v12 = vld [vmem:[%s4947_s24 + $0x60] sm:$0xff] }
 0x57e   : > { %3782 = vst.msk [vmem:[#allocation3 + $0xd8] sm:$0xff] %vm1719_vm10, %v3714_v42  ;;  %v4219_v22 = vadd.f32 %v6879_v23, %v4218_v15 }
 0x57f   : > { %v4386_v11 = vadd.f32 %v4354_v63, %v4224_v48 }
 0x580   : > { %v4385_v54 = vadd.f32 %v4353_v33, %v4219_v22  ;;  %v3332_v24 = vpop.permute.xlu1 %3331 }
 0x581   : > { %v4418_v7 = vmax.f32 %v4386_v11, 0.0  ;;  %3399 = vst.msk [vmem:[#allocation3 + $0xe0] sm:$0xff] %vm1332_vm7, %v3332_v24  ;;  %v3142_v58 = vpop.permute.xlu0 %3141  ;;  %v4362_v11 = vld [vmem:[%s4947_s24 + $0x78] sm:$0xff] }
 0x582   : > { %v4417_v53 = vmax.f32 %v4385_v54, 0.0  ;;  %3208 = vst.msk [vmem:[#allocation3 + $0xe8] sm:$0xff] %vm1139_vm6, %v3142_v58 }
 0x583   : > { %4450 = vst.msk [vmem:[%s6892_s13 + $0x38] sm:$0xff] %vm225_vm0, %v4418_v7  ;;  %v4361_v7 = vld [vmem:[%s4947_s24 + $0x70] sm:$0xff] }
 0x584   : > { %4449 = vst.msk [vmem:[%s6892_s13 + $0x30] sm:$0xff] %vm225_vm0, %v4417_v53  ;;  %v3334_v25 = vpop.permute.xlu1 %3333  ;;  %v4005_v18 = vld [vmem:[#allocation3 + $0xd0] sm:$0xff] }
 0x585   : > { %3400 = vst.msk [vmem:[#allocation3 + $0xe8] sm:$0xff] %vm1332_vm7, %v3334_v25  ;;  %v3906_v27 = vpop.permute.xlu0 %3905  ;;  %4792 = vmatprep.mubr.msk.f32.mxu1 %vm1989_vm12, %v4005_v18 }
 0x586   : > { %3974 = vst.msk [vmem:[#allocation3 + $0xd8] sm:$0xff] %vm1912_vm11, %v3906_v27 }
 0x588   : > { %v2952_v38 = vpop.permute.xlu1 %2951 }
 0x589   : > { %3017 = vst.msk [vmem:[#allocation3 + $0xf0] sm:$0xff] %vm946_vm5, %v2952_v38  ;;  %v3524_v21 = vpop.permute.xlu0 %3523 }
 0x58a   : > { %3591 = vst.msk [vmem:[#allocation3 + $0xe0] sm:$0xff] %vm1526_vm9, %v3524_v21  ;;  %v4364_v21 = vld [vmem:[%s4947_s24 + $0x88] sm:$0xff] }
 0x58c   : > { %v3716_v29 = vpop.permute.xlu1 %3715 }
 0x58d   : > { %3783 = vst.msk [vmem:[#allocation3 + $0xe0] sm:$0xff] %vm1719_vm10, %v3716_v29  ;;  %v3526_v17 = vpop.permute.xlu0 %3525  ;;  %v4006_v19 = vld [vmem:[#allocation3 + $0xd8] sm:$0xff] }
 0x58e   : > { %3592 = vst.msk [vmem:[#allocation3 + $0xe8] sm:$0xff] %vm1526_vm9, %v3526_v17  ;;  %4793 = vmatmul.mubr.msk.f32.gmra.mrb[26].mxu1 %vm1989_vm12, %v4006_v19  ;;  %v4363_v19 = vld [vmem:[%s4947_s24 + $0x80] sm:$0xff] }
 0x590   : > { %v3144_v45 = vpop.permute.xlu1 %3143  ;;  %v4767_v36 = vpop.f32.mrb[8].mxu1 }
 0x591   : > { %3209 = vst.msk [vmem:[#allocation3 + $0xf0] sm:$0xff] %vm1139_vm6, %v3144_v45  ;;  %v4234_v49 = vadd.f32 %v4767_v36, %v6879_v23  ;;  %v2954_v30 = vpop.permute.xlu0 %2953  ;;  %v4228_v20 = vpop.f32.mrb[9].mxu1 }
 0x592   : > { %3018 = vst.msk [vmem:[#allocation3 + $0xf8] sm:$0xff] %vm946_vm5, %v2954_v30  ;;  %v4229_v59 = vadd.f32 %v6879_v23, %v4228_v20 }
 0x593   : > { %v4388_v52 = vadd.f32 %v4356_v47, %v4234_v49 }
 0x594   : > { %v4387_v40 = vadd.f32 %v4355_v41, %v4229_v59  ;;  %v3908_v35 = vpop.permute.xlu1 %3907  ;;  %v4366_v41 = vld [vmem:[%s4947_s24 + $0x98] sm:$0xff] }
 0x595   : > { %v4420_v55 = vmax.f32 %v4388_v52, 0.0  ;;  %3975 = vst.msk [vmem:[#allocation3 + $0xe0] sm:$0xff] %vm1912_vm11, %v3908_v35  ;;  %v3718_v51 = vpop.permute.xlu0 %3717 }
 0x596   : > { %v4419_v31 = vmax.f32 %v4387_v40, 0.0  ;;  %3784 = vst.msk [vmem:[#allocation3 + $0xe8] sm:$0xff] %vm1719_vm10, %v3718_v51  ;;  %v4365_v40 = vld [vmem:[%s4947_s24 + $0x90] sm:$0xff] }
 0x597   : > { %4452 = vst.msk [vmem:[%s6892_s13 + $0x48] sm:$0xff] %vm225_vm0, %v4420_v55 }
 0x598   : > { %4451 = vst.msk [vmem:[%s6892_s13 + $0x40] sm:$0xff] %vm225_vm0, %v4419_v31  ;;  %v3336_v44 = vpop.permute.xlu1 %3335 }
 0x599   : > { %3401 = vst.msk [vmem:[#allocation3 + $0xf0] sm:$0xff] %vm1332_vm7, %v3336_v44  ;;  %v3146_v37 = vpop.permute.xlu0 %3145 }
 0x59a   : > { %3210 = vst.msk [vmem:[#allocation3 + $0xf8] sm:$0xff] %vm1139_vm6, %v3146_v37 }
 0x59c   : > { %v3338_v57 = vpop.permute.xlu1 %3337  ;;  %v4007_v39 = vld [vmem:[#allocation3 + $0xe0] sm:$0xff] }
 0x59d   : > { %3402 = vst.msk [vmem:[#allocation3 + $0xf8] sm:$0xff] %vm1332_vm7, %v3338_v57  ;;  %v3910_v50 = vpop.permute.xlu0 %3909  ;;  %4795 = vmatprep.mubr.msk.f32.mxu1 %vm1989_vm12, %v4007_v39  ;;  %v4368_v57 = vld [vmem:[%s4947_s24 + $0xa8] sm:$0xff] }
 0x59e   : > { %3976 = vst.msk [vmem:[#allocation3 + $0xe8] sm:$0xff] %vm1912_vm11, %v3910_v50 }
 0x5a0   : > { %v3530_v3 = vpop.permute.xlu1 %3529 }
 0x5a1   : > { %v3528_v60 = vpop.permute.xlu0 %3527  ;;  %3594 = vst.msk [vmem:[#allocation3 + $0xf8] sm:$0xff] %vm1526_vm9, %v3530_v3  ;;  %v4367_v3 = vld [vmem:[%s4947_s24 + $0xa0] sm:$0xff] }
 0x5a2   : > { %3593 = vst.msk [vmem:[#allocation3 + $0xf0] sm:$0xff] %vm1526_vm9, %v3528_v60 }
 0x5a4   : > { %v4770_v4 = vpop.f32.mrb[10].mxu1  ;;  %v3722_v2 = vpop.permute.xlu1 %3721 }
 0x5a5   : > { %v4244_v1 = vadd.f32 %v4770_v4, %v6879_v23  ;;  %v3720_v6 = vpop.permute.xlu0 %3719  ;;  %v4238_v61 = vpop.f32.mrb[11].mxu1  ;;  %3786 = vst.msk [vmem:[#allocation3 + $0xf8] sm:$0xff] %vm1719_vm10, %v3722_v2  ;;  %v4008_v46 = vld [vmem:[#allocation3 + $0xe8] sm:$0xff] }
 0x5a6   : > { %3785 = vst.msk [vmem:[#allocation3 + $0xf0] sm:$0xff] %vm1719_vm10, %v3720_v6  ;;  %v4239_v0 = vadd.f32 %v6879_v23, %v4238_v61  ;;  %4796 = vmatmul.mubr.msk.f32.gmra.mrb[28].mxu1 %vm1989_vm12, %v4008_v46  ;;  %v4370_v61 = vld [vmem:[%s4947_s24 + $0xb8] sm:$0xff] }
 0x5a7   : > { %v4390_v62 = vadd.f32 %v4358_v26, %v4244_v1 }
 0x5a8   : > { %v4389_v28 = vadd.f32 %v4357_v32, %v4239_v0  ;;  %v3914_v14 = vpop.permute.xlu1 %3913  ;;  %v4369_v0 = vld [vmem:[%s4947_s24 + $0xb0] sm:$0xff] }
 0x5a9   : > { %v4422_v34 = vmax.f32 %v4390_v62, 0.0  ;;  %v3912_v13 = vpop.permute.xlu0 %3911  ;;  %3978 = vst.msk [vmem:[#allocation3 + $0xf8] sm:$0xff] %vm1912_vm11, %v3914_v14 }
 0x5aa   : > { %v4421_v43 = vmax.f32 %v4389_v28, 0.0  ;;  %3977 = vst.msk [vmem:[#allocation3 + $0xf0] sm:$0xff] %vm1912_vm11, %v3912_v13 }
 0x5ab   : > { %4454 = vst.msk [vmem:[%s6892_s13 + $0x58] sm:$0xff] %vm225_vm0, %v4422_v34 }
 0x5ac   : > { %4453 = vst.msk [vmem:[%s6892_s13 + $0x50] sm:$0xff] %vm225_vm0, %v4421_v43 }
 0x5b0   : > { %v4010_v8 = vld [vmem:[#allocation3 + $0xf8] sm:$0xff] }
 0x5b1   : > { %v4009_v56 = vld [vmem:[#allocation3 + $0xf0] sm:$0xff] }
 0x5b2   : > { %4798 = vmatprep.mubr.msk.f32.mxu1 %vm1989_vm12, %v4009_v56 }
 0x5b3   : > { %4799 = vmatmul.mubr.msk.f32.gmra.mrb[30].mxu1 %vm1989_vm12, %v4010_v8  ;;  %v4372_v8 = vld [vmem:[%s4947_s24 + $0xc8] sm:$0xff] }
 0x5b8   : > { %v4773_v16 = vpop.f32.mrb[12].mxu1 }
 0x5b9   : > { %v4254_v10 = vadd.f32 %v4773_v16, %v6879_v23  ;;  %v4248_v9 = vpop.f32.mrb[13].mxu1 }
 0x5ba   : > { %v4249_v63 = vadd.f32 %v6879_v23, %v4248_v9 }
 0x5bb   : > { %v4392_v48 = vadd.f32 %v4360_v5, %v4254_v10  ;;  %v4371_v5 = vld [vmem:[%s4947_s24 + $0xc0] sm:$0xff] }
 0x5bc   : > { %v4391_v42 = vadd.f32 %v4359_v12, %v4249_v63 }
 0x5bd   : > { %v4424_v15 = vmax.f32 %v4392_v48, 0.0 }
 0x5be   : > { %v4423_v33 = vmax.f32 %v4391_v42, 0.0 }
 0x5bf   : > { %4456 = vst.msk [vmem:[%s6892_s13 + $0x68] sm:$0xff] %vm225_vm0, %v4424_v15  ;;  %v4374_v15 = vld [vmem:[%s4947_s24 + $0xd8] sm:$0xff] }
 0x5c0   : > { %4455 = vst.msk [vmem:[%s6892_s13 + $0x60] sm:$0xff] %vm225_vm0, %v4423_v33 }
 0x5d1   : > { %v4776_v22 = vpop.f32.mrb[14].mxu1 }
 0x5d2   : > { %v4264_v54 = vadd.f32 %v4776_v22, %v6879_v23  ;;  %v4258_v24 = vpop.f32.mrb[15].mxu1 }
 0x5d3   : > { %v4259_v58 = vadd.f32 %v6879_v23, %v4258_v24 }
 0x5d4   : > { %v4394_v53 = vadd.f32 %v4362_v11, %v4264_v54  ;;  %v4373_v11 = vld [vmem:[%s4947_s24 + $0xd0] sm:$0xff] }
 0x5d5   : > { %v4393_v25 = vadd.f32 %v4361_v7, %v4259_v58 }
 0x5d6   : > { %v4426_v18 = vmax.f32 %v4394_v53, 0.0 }
 0x5d7   : > { %v4425_v27 = vmax.f32 %v4393_v25, 0.0 }
 0x5d8   : > { %4458 = vst.msk [vmem:[%s6892_s13 + $0x78] sm:$0xff] %vm225_vm0, %v4426_v18  ;;  %v4376_v18 = vld [vmem:[%s4947_s24 + $0xe8] sm:$0xff] }
 0x5d9   : > { %4457 = vst.msk [vmem:[%s6892_s13 + $0x70] sm:$0xff] %vm225_vm0, %v4425_v27 }
 0x5e9   : > { %v4779_v38 = vpop.f32.mrb[16].mxu1 }
 0x5ea   : > { %v4274_v29 = vadd.f32 %v4779_v38, %v6879_v23  ;;  %v4268_v17 = vpop.f32.mrb[17].mxu1 }
 0x5eb   : > { %v4269_v45 = vadd.f32 %v6879_v23, %v4268_v17 }
 0x5ec   : > { %v4396_v36 = vadd.f32 %v4364_v21, %v4274_v29  ;;  %v4375_v21 = vld [vmem:[%s4947_s24 + $0xe0] sm:$0xff] }
 0x5ed   : > { %v4395_v47 = vadd.f32 %v4363_v19, %v4269_v45 }
 0x5ee   : > { %v4428_v49 = vmax.f32 %v4396_v36, 0.0 }
 0x5ef   : > { %v4427_v30 = vmax.f32 %v4395_v47, 0.0 }
 0x5f0   : > { %4460 = vst.msk [vmem:[%s6892_s13 + $0x88] sm:$0xff] %vm225_vm0, %v4428_v49  ;;  %v4378_v49 = vld [vmem:[%s4947_s24 + $0xf8] sm:$0xff] }
 0x5f1   : > { %4459 = vst.msk [vmem:[%s6892_s13 + $0x80] sm:$0xff] %vm225_vm0, %v4427_v30 }
 0x601   : > { %v4782_v20 = vpop.f32.mrb[18].mxu1 }
 0x602   : > { %v4284_v59 = vadd.f32 %v4782_v20, %v6879_v23  ;;  %v4278_v52 = vpop.f32.mrb[19].mxu1 }
 0x603   : > { %v4279_v35 = vadd.f32 %v6879_v23, %v4278_v52 }
 0x604   : > { %v4398_v55 = vadd.f32 %v4366_v41, %v4284_v59  ;;  %v4377_v41 = vld [vmem:[%s4947_s24 + $0xf0] sm:$0xff] }
 0x605   : > { %v4397_v51 = vadd.f32 %v4365_v40, %v4279_v35 }
 0x606   : > { %v4430_v31 = vmax.f32 %v4398_v55, 0.0 }
 0x607   : > { %v4429_v44 = vmax.f32 %v4397_v51, 0.0 }
 0x608   : > { %4462 = vst.msk [vmem:[%s6892_s13 + $0x98] sm:$0xff] %vm225_vm0, %v4430_v31 }
 0x609   : > { %4461 = vst.msk [vmem:[%s6892_s13 + $0x90] sm:$0xff] %vm225_vm0, %v4429_v44 }
 0x619   : > { %v4785_v37 = vpop.f32.mrb[20].mxu1 }
 0x61a   : > { %v4294_v39 = vadd.f32 %v4785_v37, %v6879_v23  ;;  %v4288_v50 = vpop.f32.mrb[21].mxu1 }
 0x61b   : > { %v4289_v60 = vadd.f32 %v6879_v23, %v4288_v50 }
 0x61c   : > { %v4400_v4 = vadd.f32 %v4368_v57, %v4294_v39 }
 0x61d   : > { %v4399_v26 = vadd.f32 %v4367_v3, %v4289_v60 }
 0x61e   : > { %v4432_v2 = vmax.f32 %v4400_v4, 0.0 }
 0x61f   : > { %v4431_v1 = vmax.f32 %v4399_v26, 0.0 }
 0x620   : > { %4464 = vst.msk [vmem:[%s6892_s13 + $0xa8] sm:$0xff] %vm225_vm0, %v4432_v2 }
 0x621   : > { %4463 = vst.msk [vmem:[%s6892_s13 + $0xa0] sm:$0xff] %vm225_vm0, %v4431_v1 }
 0x631   : > { %v4788_v6 = vpop.f32.mrb[22].mxu1 }
 0x632   : > { %v4304_v32 = vadd.f32 %v4788_v6, %v6879_v23  ;;  %v4298_v46 = vpop.f32.mrb[23].mxu1 }
 0x633   : > { %v4299_v62 = vadd.f32 %v6879_v23, %v4298_v46 }
 0x634   : > { %v4402_v28 = vadd.f32 %v4370_v61, %v4304_v32 }
 0x635   : > { %v4401_v14 = vadd.f32 %v4369_v0, %v4299_v62 }
 0x636   : > { %v4434_v34 = vmax.f32 %v4402_v28, 0.0 }
 0x637   : > { %v4433_v13 = vmax.f32 %v4401_v14, 0.0 }
 0x638   : > { %4466 = vst.msk [vmem:[%s6892_s13 + $0xb8] sm:$0xff] %vm225_vm0, %v4434_v34 }
 0x639   : > { %4465 = vst.msk [vmem:[%s6892_s13 + $0xb0] sm:$0xff] %vm225_vm0, %v4433_v13 }
 0x649   : > { %v4791_v43 = vpop.f32.mrb[24].mxu1 }
 0x64a   : > { %v4314_v56 = vadd.f32 %v4791_v43, %v6879_v23  ;;  %v4308_v16 = vpop.f32.mrb[25].mxu1 }
 0x64b   : > { %v4309_v10 = vadd.f32 %v6879_v23, %v4308_v16 }
 0x64c   : > { %v4404_v9 = vadd.f32 %v4372_v8, %v4314_v56 }
 0x64d   : > { %v4403_v12 = vadd.f32 %v4371_v5, %v4309_v10 }
 0x64e   : > { %v4436_v63 = vmax.f32 %v4404_v9, 0.0 }
 0x64f   : > { %v4435_v48 = vmax.f32 %v4403_v12, 0.0 }
 0x650   : > { %4468 = vst.msk [vmem:[%s6892_s13 + $0xc8] sm:$0xff] %vm225_vm0, %v4436_v63 }
 0x651   : > { %4467 = vst.msk [vmem:[%s6892_s13 + $0xc0] sm:$0xff] %vm225_vm0, %v4435_v48 }
 0x661   : > { %v4794_v42 = vpop.f32.mrb[26].mxu1 }
 0x662   : > { %v4324_v33 = vadd.f32 %v4794_v42, %v6879_v23  ;;  %v4318_v22 = vpop.f32.mrb[27].mxu1 }
 0x663   : > { %v4319_v54 = vadd.f32 %v6879_v23, %v4318_v22 }
 0x664   : > { %v4406_v24 = vadd.f32 %v4374_v15, %v4324_v33 }
 0x665   : > { %v4405_v7 = vadd.f32 %v4373_v11, %v4319_v54 }
 0x666   : > { %v4438_v58 = vmax.f32 %v4406_v24, 0.0 }
 0x667   : > { %v4437_v53 = vmax.f32 %v4405_v7, 0.0 }
 0x668   : > { %4470 = vst.msk [vmem:[%s6892_s13 + $0xd8] sm:$0xff] %vm225_vm0, %v4438_v58 }
 0x669   : > { %4469 = vst.msk [vmem:[%s6892_s13 + $0xd0] sm:$0xff] %vm225_vm0, %v4437_v53 }
 0x679   : > { %v4797_v25 = vpop.f32.mrb[28].mxu1 }
 0x67a   : > { %v4334_v27 = vadd.f32 %v4797_v25, %v6879_v23  ;;  %v4328_v38 = vpop.f32.mrb[29].mxu1 }
 0x67b   : > { %v4329_v29 = vadd.f32 %v6879_v23, %v4328_v38 }
 0x67c   : > { %v4408_v17 = vadd.f32 %v4376_v18, %v4334_v27 }
 0x67d   : > { %v4407_v19 = vadd.f32 %v4375_v21, %v4329_v29 }
 0x67e   : > { %v4440_v45 = vmax.f32 %v4408_v17, 0.0 }
 0x67f   : > { %v4439_v36 = vmax.f32 %v4407_v19, 0.0 }
 0x680   : > { %4472 = vst.msk [vmem:[%s6892_s13 + $0xe8] sm:$0xff] %vm225_vm0, %v4440_v45 }
 0x681   : > { %4471 = vst.msk [vmem:[%s6892_s13 + $0xe0] sm:$0xff] %vm225_vm0, %v4439_v36 }
 0x686   : > { %v4800_v47 = vpop.f32.mrb[30].mxu1 }
 0x687   : > { %v4344_v30 = vadd.f32 %v4800_v47, %v6879_v23  ;;  %v4338_v20 = vpop.f32.mrb[31].mxu1 }
 0x688   : > { %v4339_v59 = vadd.f32 %v6879_v23, %v4338_v20 }
 0x689   : > { %v4410_v52 = vadd.f32 %v4378_v49, %v4344_v30 }
 0x68a   : > { %v4409_v40 = vadd.f32 %v4377_v41, %v4339_v59 }
 0x68b   : > { %v4442_v35 = vmax.f32 %v4410_v52, 0.0 }
 0x68c   : > { %v4441_v55 = vmax.f32 %v4409_v40, 0.0 }
 0x68d   : > { %4474 = vst.msk [vmem:[%s6892_s13 + $0xf8] sm:$0xff] %vm225_vm0, %v4442_v35 }
 0x68e   : > { %4473 = vst.msk [vmem:[%s6892_s13 + $0xf0] sm:$0xff] %vm225_vm0, %v4441_v55 }
 0x68f PF: > { %s15_s18 = sadd.s32 1, %s4840_s18  }
 0x690   : > { %p12_p4 = scmp.ge.s32.totalorder %s15_s18, 4  }
 0x692   :  { %14 = sbr.rel (!%p12_p4) target bundleno = 1 (0x1), region = 73 }

</bundles_post_ra>
